<compile_context>
chip_gen: v5e
topology: v5e:2x2
jax: 0.10.0
libtpu: 0.0.40
codegen_flags: <defaults>
</compile_context>

<pallas_src>
import functools

import jax
import jax.numpy as jnp
from jax.experimental import pallas as pl
from jax.experimental.pallas import tpu as pltpu

LANE = 128      # lane width (last dim)
SUBLANE = 8     # f32 sublane width (second-to-last dim)


def _round_up(x, m):
    return (x + m - 1) // m * m


# ----------------------------------------------------------------------------
# Shared in-kernel LSTM recurrence (operates on one layer, whole sequence).
# x_ref is the flattened (T*Bp, Din) sequence; returns the final hidden state.
# ----------------------------------------------------------------------------
def _lstm_recurrence(x_ref, wih_ref, whh_ref, b_ref, y_ref, seq_len):
    tb, _ = x_ref.shape
    bp = tb // seq_len
    hp = whh_ref.shape[0]

    # (1) Hoisted input projection: one big MXU matmul over ALL timesteps.
    gx = jnp.dot(x_ref[...].astype(jnp.bfloat16), wih_ref[...],
                 preferred_element_type=jnp.float32) + b_ref[...]   # (T*Bp, 4Hp)

    whh = whh_ref[...]                                              # (Hp, 4Hp) bf16
    h = jnp.zeros((bp, hp), jnp.float32)
    c = jnp.zeros((bp, hp), jnp.float32)

    # (2) Fully unrolled recurrence (T is static & small); only h @ W_hh is
    #     serial.  Gate slices are 128-lane aligned (Hp multiple of 128).
    for t in range(seq_len):
        gates = gx[t * bp:(t + 1) * bp, :] + jnp.dot(
            h.astype(jnp.bfloat16), whh, preferred_element_type=jnp.float32)
        i = jax.nn.sigmoid(gates[:, 0 * hp:1 * hp])
        f = jax.nn.sigmoid(gates[:, 1 * hp:2 * hp])
        g = jnp.tanh(gates[:, 2 * hp:3 * hp])
        o = jax.nn.sigmoid(gates[:, 3 * hp:4 * hp])
        c = f * c + i * g
        h = o * jnp.tanh(c)
        if y_ref is not None:
            y_ref[t * bp:(t + 1) * bp, :] = h.astype(y_ref.dtype)
    return h


def lstm_layer_kernel(x_ref, wih_ref, whh_ref, b_ref, y_ref, *, seq_len):
    _lstm_recurrence(x_ref, wih_ref, whh_ref, b_ref, y_ref, seq_len)


def lstm_classifier_kernel(x_ref, wih_ref, whh_ref, b_ref, wcls_ref, bcls_ref,
                           out_ref, *, seq_len):
    # Last LSTM layer; only the final hidden state is needed, so no y writes.
    h_last = _lstm_recurrence(x_ref, wih_ref, whh_ref, b_ref, None, seq_len)
    out_ref[...] = (jnp.dot(h_last.astype(jnp.bfloat16), wcls_ref[...],
                            preferred_element_type=jnp.float32)
                    + bcls_ref[...]).astype(out_ref.dtype)


# ----------------------------------------------------------------------------
# pallas_call wrappers.
# ----------------------------------------------------------------------------
def lstm_layer(x_2d, w_ih_t, w_hh_t, bias, seq_len):
    """x_2d: (T*Bp, Din) f32 -> (T*Bp, Hp) f32."""
    tb, din = x_2d.shape
    hp = w_hh_t.shape[0]
    return pl.pallas_call(
        functools.partial(lstm_layer_kernel, seq_len=seq_len),
        out_shape=jax.ShapeDtypeStruct((tb, hp), jnp.float32),
        grid=(1,),
        in_specs=[
            pl.BlockSpec((tb, din), lambda i: (0, 0)),        # x (whole seq)
            pl.BlockSpec((din, 4 * hp), lambda i: (0, 0)),    # W_ih^T (bf16)
            pl.BlockSpec((hp, 4 * hp), lambda i: (0, 0)),     # W_hh^T (bf16)
            pl.BlockSpec((1, 4 * hp), lambda i: (0, 0)),      # bias (f32)
        ],
        out_specs=pl.BlockSpec((tb, hp), lambda i: (0, 0)),
        compiler_params=pltpu.CompilerParams(
            dimension_semantics=("arbitrary",)),
    )(x_2d, w_ih_t, w_hh_t, bias)


def lstm_classify(x_2d, w_ih_t, w_hh_t, bias, w_cls_t, b_cls, seq_len):
    """Last LSTM layer fused with the Linear classifier. -> (Bp, Cp) f32."""
    tb, din = x_2d.shape
    hp = w_hh_t.shape[0]
    bp = tb // seq_len
    cp = w_cls_t.shape[1]
    return pl.pallas_call(
        functools.partial(lstm_classifier_kernel, seq_len=seq_len),
        out_shape=jax.ShapeDtypeStruct((bp, cp), jnp.float32),
        grid=(1,),
        in_specs=[
            pl.BlockSpec((tb, din), lambda i: (0, 0)),
            pl.BlockSpec((din, 4 * hp), lambda i: (0, 0)),
            pl.BlockSpec((hp, 4 * hp), lambda i: (0, 0)),
            pl.BlockSpec((1, 4 * hp), lambda i: (0, 0)),
            pl.BlockSpec((hp, cp), lambda i: (0, 0)),         # W_cls^T (bf16)
            pl.BlockSpec((1, cp), lambda i: (0, 0)),          # b_cls (f32)
        ],
        out_specs=pl.BlockSpec((bp, cp), lambda i: (0, 0)),
        compiler_params=pltpu.CompilerParams(
            dimension_semantics=("arbitrary",)),
    )(x_2d, w_ih_t, w_hh_t, bias, w_cls_t, b_cls)


# ----------------------------------------------------------------------------
# Parameter construction: PyTorch-layout raw weights + padded bf16 kernel
# operands (gate-block padded so each gate occupies a 128-lane-aligned slice).
# ----------------------------------------------------------------------------
def _pad_gate_blocks(w, h, hp, pad_cols):
    # w: (4H, K).  Split into the 4 PyTorch gates [i, f, g, o], zero-pad each
    # block to (Hp, K + pad_cols), re-concatenate -> (4Hp, Kp).
    blocks = [jnp.pad(w[g * h:(g + 1) * h], ((0, hp - h), (0, pad_cols)))
              for g in range(4)]
    return jnp.concatenate(blocks, axis=0)


def _pad_gate_bias(b, h, hp):
    blocks = [jnp.pad(b[g * h:(g + 1) * h], (0, hp - h)) for g in range(4)]
    return jnp.concatenate(blocks, axis=0)


def init_params(key, in_dim, hidden_dim, n_layer, n_class):
    h = hidden_dim
    hp = _round_up(h, LANE)
    cp = _round_up(n_class, LANE)
    k = 1.0 / (hidden_dim ** 0.5)

    layers, raw_layers = [], []
    for layer in range(n_layer):
        d = in_dim if layer == 0 else hidden_dim
        dp = _round_up(d, LANE)
        key, k1, k2, k3, k4 = jax.random.split(key, 5)
        w_ih = jax.random.uniform(k1, (4 * h, d), jnp.float32, -k, k)
        w_hh = jax.random.uniform(k2, (4 * h, h), jnp.float32, -k, k)
        b_ih = jax.random.uniform(k3, (4 * h,), jnp.float32, -k, k)
        b_hh = jax.random.uniform(k4, (4 * h,), jnp.float32, -k, k)
        raw_layers.append({"w_ih": w_ih, "w_hh": w_hh, "b_ih": b_ih, "b_hh": b_hh})
        layers.append({
            "w_ih_t": _pad_gate_blocks(w_ih, h, hp, dp - d).T.astype(jnp.bfloat16),
            "w_hh_t": _pad_gate_blocks(w_hh, h, hp, hp - h).T.astype(jnp.bfloat16),
            "bias": _pad_gate_bias(b_ih + b_hh, h, hp).reshape(1, 4 * hp),  # f32
        })

    key, k5, k6 = jax.random.split(key, 3)
    w_c = jax.random.uniform(k5, (n_class, h), jnp.float32, -k, k)
    b_c = jax.random.uniform(k6, (n_class,), jnp.float32, -k, k)
    params = {
        "layers": layers,
        "w_cls_t": jnp.pad(w_c, ((0, cp - n_class), (0, hp - h))).T.astype(jnp.bfloat16),
        "b_cls": jnp.pad(b_c, (0, cp - n_class)).reshape(1, cp),
    }
    raw = {"layers": raw_layers, "w_cls": w_c, "b_cls": b_c}
    return params, raw


# ----------------------------------------------------------------------------
# Full forward (batch_first like the PyTorch module).
# ----------------------------------------------------------------------------
@functools.partial(jax.jit, static_argnames=("n_class",))
def rnn_forward(params, x, n_class):
    """x: (B, T, in_dim) -> (B, n_class)."""
    b, t, d = x.shape
    bp = _round_up(b, SUBLANE)
    d0p = params["layers"][0]["w_ih_t"].shape[0]

    h = jnp.transpose(x, (1, 0, 2))                           # (T, B, D)
    h = jnp.pad(h, ((0, 0), (0, bp - b), (0, d0p - d)))       # (T, Bp, D0p)
    h = h.reshape(t * bp, d0p)                                # time-major flat

    for layer in params["layers"][:-1]:
        h = lstm_layer(h, layer["w_ih_t"], layer["w_hh_t"], layer["bias"], t)

    last = params["layers"][-1]
    logits = lstm_classify(h, last["w_ih_t"], last["w_hh_t"], last["bias"],
                           params["w_cls_t"], params["b_cls"], t)
    return logits[:b, :n_class]


def rnn_forward_reference(raw, x):
    """Pure-JAX f32 reference of nn.LSTM(batch_first=True) + nn.Linear."""
    b, t, _ = x.shape
    h_seq = jnp.transpose(x, (1, 0, 2))
    for lw in raw["layers"]:
        hdim = lw["w_hh"].shape[1]
        h = jnp.zeros((b, hdim), jnp.float32)
        c = jnp.zeros((b, hdim), jnp.float32)
        outs = []
        for step in range(t):
            g = (h_seq[step] @ lw["w_ih"].T + h @ lw["w_hh"].T
                 + lw["b_ih"] + lw["b_hh"])
            i = jax.nn.sigmoid(g[:, 0 * hdim:1 * hdim])
            f = jax.nn.sigmoid(g[:, 1 * hdim:2 * hdim])
            gg = jnp.tanh(g[:, 2 * hdim:3 * hdim])
            o = jax.nn.sigmoid(g[:, 3 * hdim:4 * hdim])
            c = f * c + i * gg
            h = o * jnp.tanh(c)
            outs.append(h)
        h_seq = jnp.stack(outs, axis=0)
    return h_seq[-1] @ raw["w_cls"].T + raw["b_cls"]


if __name__ == "__main__":
    B, T, IN_DIM, HIDDEN, N_LAYER, N_CLASS = 2, 8, 32, 32, 2, 10

    key = jax.random.PRNGKey(0)
    key, kp, kx = jax.random.split(key, 3)
    params, raw = init_params(kp, IN_DIM, HIDDEN, N_LAYER, N_CLASS)
    x = jax.random.normal(kx, (B, T, IN_DIM), jnp.float32)

    out = rnn_forward(params, x, n_class=N_CLASS)
    jax.block_until_ready(out)
    assert out.shape == (B, N_CLASS), out.shape

    # Correctness vs. f32 reference (bf16 matmul operands -> small drift).
    ref = rnn_forward_reference(raw, x)
    max_err = float(jnp.max(jnp.abs(out - ref)))
    assert max_err < 5e-2, f"max abs err {max_err}"

    print("KERNEL_OK")
</pallas_src>

<mosaic_0001>
module attributes {stable_mosaic.version = 11 : i64} {
  func.func @lstm_classifier_kernel(%arg0: i32, %arg1: memref<64x128xf32, #tpu.memory_space<vmem>>, %arg2: memref<128x512xbf16, #tpu.memory_space<vmem>>, %arg3: memref<128x512xbf16, #tpu.memory_space<vmem>>, %arg4: memref<1x512xf32, #tpu.memory_space<vmem>>, %arg5: memref<128x128xbf16, #tpu.memory_space<vmem>>, %arg6: memref<1x128xf32, #tpu.memory_space<vmem>>, %arg7: memref<8x128xf32, #tpu.memory_space<vmem>>) attributes {dimension_semantics = [#tpu.dimension_semantics<arbitrary>], iteration_bounds = array<i64: 1>, scalar_prefetch = 0 : i64, scratch_operands = 0 : i64, tpu.core_type = #tpu.core_type<tc>, window_params = [{pipeline_mode = #tpu.pipeline_mode<synchronous>, transform_indices = @transform_0, window_bounds = array<i64: 64, 128>}, {pipeline_mode = #tpu.pipeline_mode<synchronous>, transform_indices = @transform_1, window_bounds = array<i64: 128, 512>}, {pipeline_mode = #tpu.pipeline_mode<synchronous>, transform_indices = @transform_2, window_bounds = array<i64: 128, 512>}, {pipeline_mode = #tpu.pipeline_mode<synchronous>, transform_indices = @transform_3, window_bounds = array<i64: 1, 512>}, {pipeline_mode = #tpu.pipeline_mode<synchronous>, transform_indices = @transform_4, window_bounds = array<i64: 128, 128>}, {pipeline_mode = #tpu.pipeline_mode<synchronous>, transform_indices = @transform_5, window_bounds = array<i64: 1, 128>}, {pipeline_mode = #tpu.pipeline_mode<synchronous>, transform_indices = @transform_6, window_bounds = array<i64: 8, 128>}]} {
    %c0 = arith.constant 0 : index
    %c0_0 = arith.constant 0 : index
    %0 = vector.load %arg1[%c0, %c0_0] : memref<64x128xf32, #tpu.memory_space<vmem>>, vector<64x128xf32>
    %1 = arith.truncf %0 : vector<64x128xf32> to vector<64x128xbf16>
    %c0_1 = arith.constant 0 : index
    %c0_2 = arith.constant 0 : index
    %2 = vector.load %arg2[%c0_1, %c0_2] : memref<128x512xbf16, #tpu.memory_space<vmem>>, vector<128x512xbf16>
    %cst = arith.constant dense<0.000000e+00> : vector<64x512xf32>
    %3 = tpu.matmul %1, %2, %cst {dimension_numbers = #tpu.dot_dimension_numbers<[1], [0], [0], [1], [0, 0, 1, 1], [], []>} : vector<64x128xbf16>, vector<128x512xbf16>, vector<64x512xf32> -> vector<64x512xf32>
    %c0_3 = arith.constant 0 : index
    %c0_4 = arith.constant 0 : index
    %4 = vector.load %arg4[%c0_3, %c0_4] : memref<1x512xf32, #tpu.memory_space<vmem>>, vector<1x512xf32>
    %5 = vector.broadcast %4 : vector<1x512xf32> to vector<64x512xf32>
    %6 = arith.addf %3, %5 : vector<64x512xf32>
    %c0_5 = arith.constant 0 : index
    %c0_6 = arith.constant 0 : index
    %7 = vector.load %arg3[%c0_5, %c0_6] : memref<128x512xbf16, #tpu.memory_space<vmem>>, vector<128x512xbf16>
    %cst_7 = arith.constant 0.000000e+00 : f32
    %8 = vector.broadcast %cst_7 : f32 to vector<8x128xf32>
    %cst_8 = arith.constant 0.000000e+00 : f32
    %9 = vector.broadcast %cst_8 : f32 to vector<8x128xf32>
    %10 = vector.extract_strided_slice %6 {offsets = [0, 0], sizes = [8, 512], strides = [1, 1]} : vector<64x512xf32> to vector<8x512xf32>
    %11 = arith.truncf %8 : vector<8x128xf32> to vector<8x128xbf16>
    %cst_9 = arith.constant dense<0.000000e+00> : vector<8x512xf32>
    %12 = tpu.matmul %11, %7, %cst_9 {dimension_numbers = #tpu.dot_dimension_numbers<[1], [0], [0], [1], [0, 0, 1, 1], [], []>} : vector<8x128xbf16>, vector<128x512xbf16>, vector<8x512xf32> -> vector<8x512xf32>
    %13 = arith.addf %10, %12 : vector<8x512xf32>
    %14 = vector.extract_strided_slice %13 {offsets = [0, 0], sizes = [8, 128], strides = [1, 1]} : vector<8x512xf32> to vector<8x128xf32>
    %15 = arith.negf %14 : vector<8x128xf32>
    %16 = math.exp %15 : vector<8x128xf32>
    %cst_10 = arith.constant 1.000000e+00 : f32
    %17 = vector.broadcast %cst_10 : f32 to vector<8x128xf32>
    %18 = arith.addf %17, %16 : vector<8x128xf32>
    %19 = arith.divf %17, %18 : vector<8x128xf32>
    %20 = vector.extract_strided_slice %13 {offsets = [0, 128], sizes = [8, 128], strides = [1, 1]} : vector<8x512xf32> to vector<8x128xf32>
    %21 = arith.negf %20 : vector<8x128xf32>
    %22 = math.exp %21 : vector<8x128xf32>
    %cst_11 = arith.constant 1.000000e+00 : f32
    %23 = vector.broadcast %cst_11 : f32 to vector<8x128xf32>
    %24 = arith.addf %23, %22 : vector<8x128xf32>
    %25 = arith.divf %23, %24 : vector<8x128xf32>
    %26 = vector.extract_strided_slice %13 {offsets = [0, 256], sizes = [8, 128], strides = [1, 1]} : vector<8x512xf32> to vector<8x128xf32>
    %27 = math.tanh %26 : vector<8x128xf32>
    %28 = vector.extract_strided_slice %13 {offsets = [0, 384], sizes = [8, 128], strides = [1, 1]} : vector<8x512xf32> to vector<8x128xf32>
    %29 = arith.negf %28 : vector<8x128xf32>
    %30 = math.exp %29 : vector<8x128xf32>
    %cst_12 = arith.constant 1.000000e+00 : f32
    %31 = vector.broadcast %cst_12 : f32 to vector<8x128xf32>
    %32 = arith.addf %31, %30 : vector<8x128xf32>
    %33 = arith.divf %31, %32 : vector<8x128xf32>
    %34 = arith.mulf %25, %9 : vector<8x128xf32>
    %35 = arith.mulf %19, %27 : vector<8x128xf32>
    %36 = arith.addf %34, %35 : vector<8x128xf32>
    %37 = math.tanh %36 : vector<8x128xf32>
    %38 = arith.mulf %33, %37 : vector<8x128xf32>
    %39 = vector.extract_strided_slice %6 {offsets = [8, 0], sizes = [8, 512], strides = [1, 1]} : vector<64x512xf32> to vector<8x512xf32>
    %40 = arith.truncf %38 : vector<8x128xf32> to vector<8x128xbf16>
    %cst_13 = arith.constant dense<0.000000e+00> : vector<8x512xf32>
    %41 = tpu.matmul %40, %7, %cst_13 {dimension_numbers = #tpu.dot_dimension_numbers<[1], [0], [0], [1], [0, 0, 1, 1], [], []>} : vector<8x128xbf16>, vector<128x512xbf16>, vector<8x512xf32> -> vector<8x512xf32>
    %42 = arith.addf %39, %41 : vector<8x512xf32>
    %43 = vector.extract_strided_slice %42 {offsets = [0, 0], sizes = [8, 128], strides = [1, 1]} : vector<8x512xf32> to vector<8x128xf32>
    %44 = arith.negf %43 : vector<8x128xf32>
    %45 = math.exp %44 : vector<8x128xf32>
    %cst_14 = arith.constant 1.000000e+00 : f32
    %46 = vector.broadcast %cst_14 : f32 to vector<8x128xf32>
    %47 = arith.addf %46, %45 : vector<8x128xf32>
    %48 = arith.divf %46, %47 : vector<8x128xf32>
    %49 = vector.extract_strided_slice %42 {offsets = [0, 128], sizes = [8, 128], strides = [1, 1]} : vector<8x512xf32> to vector<8x128xf32>
    %50 = arith.negf %49 : vector<8x128xf32>
    %51 = math.exp %50 : vector<8x128xf32>
    %cst_15 = arith.constant 1.000000e+00 : f32
    %52 = vector.broadcast %cst_15 : f32 to vector<8x128xf32>
    %53 = arith.addf %52, %51 : vector<8x128xf32>
    %54 = arith.divf %52, %53 : vector<8x128xf32>
    %55 = vector.extract_strided_slice %42 {offsets = [0, 256], sizes = [8, 128], strides = [1, 1]} : vector<8x512xf32> to vector<8x128xf32>
    %56 = math.tanh %55 : vector<8x128xf32>
    %57 = vector.extract_strided_slice %42 {offsets = [0, 384], sizes = [8, 128], strides = [1, 1]} : vector<8x512xf32> to vector<8x128xf32>
    %58 = arith.negf %57 : vector<8x128xf32>
    %59 = math.exp %58 : vector<8x128xf32>
    %cst_16 = arith.constant 1.000000e+00 : f32
    %60 = vector.broadcast %cst_16 : f32 to vector<8x128xf32>
    %61 = arith.addf %60, %59 : vector<8x128xf32>
    %62 = arith.divf %60, %61 : vector<8x128xf32>
    %63 = arith.mulf %54, %36 : vector<8x128xf32>
    %64 = arith.mulf %48, %56 : vector<8x128xf32>
    %65 = arith.addf %63, %64 : vector<8x128xf32>
    %66 = math.tanh %65 : vector<8x128xf32>
    %67 = arith.mulf %62, %66 : vector<8x128xf32>
    %68 = vector.extract_strided_slice %6 {offsets = [16, 0], sizes = [8, 512], strides = [1, 1]} : vector<64x512xf32> to vector<8x512xf32>
    %69 = arith.truncf %67 : vector<8x128xf32> to vector<8x128xbf16>
    %cst_17 = arith.constant dense<0.000000e+00> : vector<8x512xf32>
    %70 = tpu.matmul %69, %7, %cst_17 {dimension_numbers = #tpu.dot_dimension_numbers<[1], [0], [0], [1], [0, 0, 1, 1], [], []>} : vector<8x128xbf16>, vector<128x512xbf16>, vector<8x512xf32> -> vector<8x512xf32>
    %71 = arith.addf %68, %70 : vector<8x512xf32>
    %72 = vector.extract_strided_slice %71 {offsets = [0, 0], sizes = [8, 128], strides = [1, 1]} : vector<8x512xf32> to vector<8x128xf32>
    %73 = arith.negf %72 : vector<8x128xf32>
    %74 = math.exp %73 : vector<8x128xf32>
    %cst_18 = arith.constant 1.000000e+00 : f32
    %75 = vector.broadcast %cst_18 : f32 to vector<8x128xf32>
    %76 = arith.addf %75, %74 : vector<8x128xf32>
    %77 = arith.divf %75, %76 : vector<8x128xf32>
    %78 = vector.extract_strided_slice %71 {offsets = [0, 128], sizes = [8, 128], strides = [1, 1]} : vector<8x512xf32> to vector<8x128xf32>
    %79 = arith.negf %78 : vector<8x128xf32>
    %80 = math.exp %79 : vector<8x128xf32>
    %cst_19 = arith.constant 1.000000e+00 : f32
    %81 = vector.broadcast %cst_19 : f32 to vector<8x128xf32>
    %82 = arith.addf %81, %80 : vector<8x128xf32>
    %83 = arith.divf %81, %82 : vector<8x128xf32>
    %84 = vector.extract_strided_slice %71 {offsets = [0, 256], sizes = [8, 128], strides = [1, 1]} : vector<8x512xf32> to vector<8x128xf32>
    %85 = math.tanh %84 : vector<8x128xf32>
    %86 = vector.extract_strided_slice %71 {offsets = [0, 384], sizes = [8, 128], strides = [1, 1]} : vector<8x512xf32> to vector<8x128xf32>
    %87 = arith.negf %86 : vector<8x128xf32>
    %88 = math.exp %87 : vector<8x128xf32>
    %cst_20 = arith.constant 1.000000e+00 : f32
    %89 = vector.broadcast %cst_20 : f32 to vector<8x128xf32>
    %90 = arith.addf %89, %88 : vector<8x128xf32>
    %91 = arith.divf %89, %90 : vector<8x128xf32>
    %92 = arith.mulf %83, %65 : vector<8x128xf32>
    %93 = arith.mulf %77, %85 : vector<8x128xf32>
    %94 = arith.addf %92, %93 : vector<8x128xf32>
    %95 = math.tanh %94 : vector<8x128xf32>
    %96 = arith.mulf %91, %95 : vector<8x128xf32>
    %97 = vector.extract_strided_slice %6 {offsets = [24, 0], sizes = [8, 512], strides = [1, 1]} : vector<64x512xf32> to vector<8x512xf32>
    %98 = arith.truncf %96 : vector<8x128xf32> to vector<8x128xbf16>
    %cst_21 = arith.constant dense<0.000000e+00> : vector<8x512xf32>
    %99 = tpu.matmul %98, %7, %cst_21 {dimension_numbers = #tpu.dot_dimension_numbers<[1], [0], [0], [1], [0, 0, 1, 1], [], []>} : vector<8x128xbf16>, vector<128x512xbf16>, vector<8x512xf32> -> vector<8x512xf32>
    %100 = arith.addf %97, %99 : vector<8x512xf32>
    %101 = vector.extract_strided_slice %100 {offsets = [0, 0], sizes = [8, 128], strides = [1, 1]} : vector<8x512xf32> to vector<8x128xf32>
    %102 = arith.negf %101 : vector<8x128xf32>
    %103 = math.exp %102 : vector<8x128xf32>
    %cst_22 = arith.constant 1.000000e+00 : f32
    %104 = vector.broadcast %cst_22 : f32 to vector<8x128xf32>
    %105 = arith.addf %104, %103 : vector<8x128xf32>
    %106 = arith.divf %104, %105 : vector<8x128xf32>
    %107 = vector.extract_strided_slice %100 {offsets = [0, 128], sizes = [8, 128], strides = [1, 1]} : vector<8x512xf32> to vector<8x128xf32>
    %108 = arith.negf %107 : vector<8x128xf32>
    %109 = math.exp %108 : vector<8x128xf32>
    %cst_23 = arith.constant 1.000000e+00 : f32
    %110 = vector.broadcast %cst_23 : f32 to vector<8x128xf32>
    %111 = arith.addf %110, %109 : vector<8x128xf32>
    %112 = arith.divf %110, %111 : vector<8x128xf32>
    %113 = vector.extract_strided_slice %100 {offsets = [0, 256], sizes = [8, 128], strides = [1, 1]} : vector<8x512xf32> to vector<8x128xf32>
    %114 = math.tanh %113 : vector<8x128xf32>
    %115 = vector.extract_strided_slice %100 {offsets = [0, 384], sizes = [8, 128], strides = [1, 1]} : vector<8x512xf32> to vector<8x128xf32>
    %116 = arith.negf %115 : vector<8x128xf32>
    %117 = math.exp %116 : vector<8x128xf32>
    %cst_24 = arith.constant 1.000000e+00 : f32
    %118 = vector.broadcast %cst_24 : f32 to vector<8x128xf32>
    %119 = arith.addf %118, %117 : vector<8x128xf32>
    %120 = arith.divf %118, %119 : vector<8x128xf32>
    %121 = arith.mulf %112, %94 : vector<8x128xf32>
    %122 = arith.mulf %106, %114 : vector<8x128xf32>
    %123 = arith.addf %121, %122 : vector<8x128xf32>
    %124 = math.tanh %123 : vector<8x128xf32>
    %125 = arith.mulf %120, %124 : vector<8x128xf32>
    %126 = vector.extract_strided_slice %6 {offsets = [32, 0], sizes = [8, 512], strides = [1, 1]} : vector<64x512xf32> to vector<8x512xf32>
    %127 = arith.truncf %125 : vector<8x128xf32> to vector<8x128xbf16>
    %cst_25 = arith.constant dense<0.000000e+00> : vector<8x512xf32>
    %128 = tpu.matmul %127, %7, %cst_25 {dimension_numbers = #tpu.dot_dimension_numbers<[1], [0], [0], [1], [0, 0, 1, 1], [], []>} : vector<8x128xbf16>, vector<128x512xbf16>, vector<8x512xf32> -> vector<8x512xf32>
    %129 = arith.addf %126, %128 : vector<8x512xf32>
    %130 = vector.extract_strided_slice %129 {offsets = [0, 0], sizes = [8, 128], strides = [1, 1]} : vector<8x512xf32> to vector<8x128xf32>
    %131 = arith.negf %130 : vector<8x128xf32>
    %132 = math.exp %131 : vector<8x128xf32>
    %cst_26 = arith.constant 1.000000e+00 : f32
    %133 = vector.broadcast %cst_26 : f32 to vector<8x128xf32>
    %134 = arith.addf %133, %132 : vector<8x128xf32>
    %135 = arith.divf %133, %134 : vector<8x128xf32>
    %136 = vector.extract_strided_slice %129 {offsets = [0, 128], sizes = [8, 128], strides = [1, 1]} : vector<8x512xf32> to vector<8x128xf32>
    %137 = arith.negf %136 : vector<8x128xf32>
    %138 = math.exp %137 : vector<8x128xf32>
    %cst_27 = arith.constant 1.000000e+00 : f32
    %139 = vector.broadcast %cst_27 : f32 to vector<8x128xf32>
    %140 = arith.addf %139, %138 : vector<8x128xf32>
    %141 = arith.divf %139, %140 : vector<8x128xf32>
    %142 = vector.extract_strided_slice %129 {offsets = [0, 256], sizes = [8, 128], strides = [1, 1]} : vector<8x512xf32> to vector<8x128xf32>
    %143 = math.tanh %142 : vector<8x128xf32>
    %144 = vector.extract_strided_slice %129 {offsets = [0, 384], sizes = [8, 128], strides = [1, 1]} : vector<8x512xf32> to vector<8x128xf32>
    %145 = arith.negf %144 : vector<8x128xf32>
    %146 = math.exp %145 : vector<8x128xf32>
    %cst_28 = arith.constant 1.000000e+00 : f32
    %147 = vector.broadcast %cst_28 : f32 to vector<8x128xf32>
    %148 = arith.addf %147, %146 : vector<8x128xf32>
    %149 = arith.divf %147, %148 : vector<8x128xf32>
    %150 = arith.mulf %141, %123 : vector<8x128xf32>
    %151 = arith.mulf %135, %143 : vector<8x128xf32>
    %152 = arith.addf %150, %151 : vector<8x128xf32>
    %153 = math.tanh %152 : vector<8x128xf32>
    %154 = arith.mulf %149, %153 : vector<8x128xf32>
    %155 = vector.extract_strided_slice %6 {offsets = [40, 0], sizes = [8, 512], strides = [1, 1]} : vector<64x512xf32> to vector<8x512xf32>
    %156 = arith.truncf %154 : vector<8x128xf32> to vector<8x128xbf16>
    %cst_29 = arith.constant dense<0.000000e+00> : vector<8x512xf32>
    %157 = tpu.matmul %156, %7, %cst_29 {dimension_numbers = #tpu.dot_dimension_numbers<[1], [0], [0], [1], [0, 0, 1, 1], [], []>} : vector<8x128xbf16>, vector<128x512xbf16>, vector<8x512xf32> -> vector<8x512xf32>
    %158 = arith.addf %155, %157 : vector<8x512xf32>
    %159 = vector.extract_strided_slice %158 {offsets = [0, 0], sizes = [8, 128], strides = [1, 1]} : vector<8x512xf32> to vector<8x128xf32>
    %160 = arith.negf %159 : vector<8x128xf32>
    %161 = math.exp %160 : vector<8x128xf32>
    %cst_30 = arith.constant 1.000000e+00 : f32
    %162 = vector.broadcast %cst_30 : f32 to vector<8x128xf32>
    %163 = arith.addf %162, %161 : vector<8x128xf32>
    %164 = arith.divf %162, %163 : vector<8x128xf32>
    %165 = vector.extract_strided_slice %158 {offsets = [0, 128], sizes = [8, 128], strides = [1, 1]} : vector<8x512xf32> to vector<8x128xf32>
    %166 = arith.negf %165 : vector<8x128xf32>
    %167 = math.exp %166 : vector<8x128xf32>
    %cst_31 = arith.constant 1.000000e+00 : f32
    %168 = vector.broadcast %cst_31 : f32 to vector<8x128xf32>
    %169 = arith.addf %168, %167 : vector<8x128xf32>
    %170 = arith.divf %168, %169 : vector<8x128xf32>
    %171 = vector.extract_strided_slice %158 {offsets = [0, 256], sizes = [8, 128], strides = [1, 1]} : vector<8x512xf32> to vector<8x128xf32>
    %172 = math.tanh %171 : vector<8x128xf32>
    %173 = vector.extract_strided_slice %158 {offsets = [0, 384], sizes = [8, 128], strides = [1, 1]} : vector<8x512xf32> to vector<8x128xf32>
    %174 = arith.negf %173 : vector<8x128xf32>
    %175 = math.exp %174 : vector<8x128xf32>
    %cst_32 = arith.constant 1.000000e+00 : f32
    %176 = vector.broadcast %cst_32 : f32 to vector<8x128xf32>
    %177 = arith.addf %176, %175 : vector<8x128xf32>
    %178 = arith.divf %176, %177 : vector<8x128xf32>
    %179 = arith.mulf %170, %152 : vector<8x128xf32>
    %180 = arith.mulf %164, %172 : vector<8x128xf32>
    %181 = arith.addf %179, %180 : vector<8x128xf32>
    %182 = math.tanh %181 : vector<8x128xf32>
    %183 = arith.mulf %178, %182 : vector<8x128xf32>
    %184 = vector.extract_strided_slice %6 {offsets = [48, 0], sizes = [8, 512], strides = [1, 1]} : vector<64x512xf32> to vector<8x512xf32>
    %185 = arith.truncf %183 : vector<8x128xf32> to vector<8x128xbf16>
    %cst_33 = arith.constant dense<0.000000e+00> : vector<8x512xf32>
    %186 = tpu.matmul %185, %7, %cst_33 {dimension_numbers = #tpu.dot_dimension_numbers<[1], [0], [0], [1], [0, 0, 1, 1], [], []>} : vector<8x128xbf16>, vector<128x512xbf16>, vector<8x512xf32> -> vector<8x512xf32>
    %187 = arith.addf %184, %186 : vector<8x512xf32>
    %188 = vector.extract_strided_slice %187 {offsets = [0, 0], sizes = [8, 128], strides = [1, 1]} : vector<8x512xf32> to vector<8x128xf32>
    %189 = arith.negf %188 : vector<8x128xf32>
    %190 = math.exp %189 : vector<8x128xf32>
    %cst_34 = arith.constant 1.000000e+00 : f32
    %191 = vector.broadcast %cst_34 : f32 to vector<8x128xf32>
    %192 = arith.addf %191, %190 : vector<8x128xf32>
    %193 = arith.divf %191, %192 : vector<8x128xf32>
    %194 = vector.extract_strided_slice %187 {offsets = [0, 128], sizes = [8, 128], strides = [1, 1]} : vector<8x512xf32> to vector<8x128xf32>
    %195 = arith.negf %194 : vector<8x128xf32>
    %196 = math.exp %195 : vector<8x128xf32>
    %cst_35 = arith.constant 1.000000e+00 : f32
    %197 = vector.broadcast %cst_35 : f32 to vector<8x128xf32>
    %198 = arith.addf %197, %196 : vector<8x128xf32>
    %199 = arith.divf %197, %198 : vector<8x128xf32>
    %200 = vector.extract_strided_slice %187 {offsets = [0, 256], sizes = [8, 128], strides = [1, 1]} : vector<8x512xf32> to vector<8x128xf32>
    %201 = math.tanh %200 : vector<8x128xf32>
    %202 = vector.extract_strided_slice %187 {offsets = [0, 384], sizes = [8, 128], strides = [1, 1]} : vector<8x512xf32> to vector<8x128xf32>
    %203 = arith.negf %202 : vector<8x128xf32>
    %204 = math.exp %203 : vector<8x128xf32>
    %cst_36 = arith.constant 1.000000e+00 : f32
    %205 = vector.broadcast %cst_36 : f32 to vector<8x128xf32>
    %206 = arith.addf %205, %204 : vector<8x128xf32>
    %207 = arith.divf %205, %206 : vector<8x128xf32>
    %208 = arith.mulf %199, %181 : vector<8x128xf32>
    %209 = arith.mulf %193, %201 : vector<8x128xf32>
    %210 = arith.addf %208, %209 : vector<8x128xf32>
    %211 = math.tanh %210 : vector<8x128xf32>
    %212 = arith.mulf %207, %211 : vector<8x128xf32>
    %213 = vector.extract_strided_slice %6 {offsets = [56, 0], sizes = [8, 512], strides = [1, 1]} : vector<64x512xf32> to vector<8x512xf32>
    %214 = arith.truncf %212 : vector<8x128xf32> to vector<8x128xbf16>
    %cst_37 = arith.constant dense<0.000000e+00> : vector<8x512xf32>
    %215 = tpu.matmul %214, %7, %cst_37 {dimension_numbers = #tpu.dot_dimension_numbers<[1], [0], [0], [1], [0, 0, 1, 1], [], []>} : vector<8x128xbf16>, vector<128x512xbf16>, vector<8x512xf32> -> vector<8x512xf32>
    %216 = arith.addf %213, %215 : vector<8x512xf32>
    %217 = vector.extract_strided_slice %216 {offsets = [0, 0], sizes = [8, 128], strides = [1, 1]} : vector<8x512xf32> to vector<8x128xf32>
    %218 = arith.negf %217 : vector<8x128xf32>
    %219 = math.exp %218 : vector<8x128xf32>
    %cst_38 = arith.constant 1.000000e+00 : f32
    %220 = vector.broadcast %cst_38 : f32 to vector<8x128xf32>
    %221 = arith.addf %220, %219 : vector<8x128xf32>
    %222 = arith.divf %220, %221 : vector<8x128xf32>
    %223 = vector.extract_strided_slice %216 {offsets = [0, 128], sizes = [8, 128], strides = [1, 1]} : vector<8x512xf32> to vector<8x128xf32>
    %224 = arith.negf %223 : vector<8x128xf32>
    %225 = math.exp %224 : vector<8x128xf32>
    %cst_39 = arith.constant 1.000000e+00 : f32
    %226 = vector.broadcast %cst_39 : f32 to vector<8x128xf32>
    %227 = arith.addf %226, %225 : vector<8x128xf32>
    %228 = arith.divf %226, %227 : vector<8x128xf32>
    %229 = vector.extract_strided_slice %216 {offsets = [0, 256], sizes = [8, 128], strides = [1, 1]} : vector<8x512xf32> to vector<8x128xf32>
    %230 = math.tanh %229 : vector<8x128xf32>
    %231 = vector.extract_strided_slice %216 {offsets = [0, 384], sizes = [8, 128], strides = [1, 1]} : vector<8x512xf32> to vector<8x128xf32>
    %232 = arith.negf %231 : vector<8x128xf32>
    %233 = math.exp %232 : vector<8x128xf32>
    %cst_40 = arith.constant 1.000000e+00 : f32
    %234 = vector.broadcast %cst_40 : f32 to vector<8x128xf32>
    %235 = arith.addf %234, %233 : vector<8x128xf32>
    %236 = arith.divf %234, %235 : vector<8x128xf32>
    %237 = arith.mulf %228, %210 : vector<8x128xf32>
    %238 = arith.mulf %222, %230 : vector<8x128xf32>
    %239 = arith.addf %237, %238 : vector<8x128xf32>
    %240 = math.tanh %239 : vector<8x128xf32>
    %241 = arith.mulf %236, %240 : vector<8x128xf32>
    %242 = arith.truncf %241 : vector<8x128xf32> to vector<8x128xbf16>
    %c0_41 = arith.constant 0 : index
    %c0_42 = arith.constant 0 : index
    %243 = vector.load %arg5[%c0_41, %c0_42] : memref<128x128xbf16, #tpu.memory_space<vmem>>, vector<128x128xbf16>
    %cst_43 = arith.constant dense<0.000000e+00> : vector<8x128xf32>
    %244 = tpu.matmul %242, %243, %cst_43 {dimension_numbers = #tpu.dot_dimension_numbers<[1], [0], [0], [1], [0, 0, 1, 1], [], []>} : vector<8x128xbf16>, vector<128x128xbf16>, vector<8x128xf32> -> vector<8x128xf32>
    %c0_44 = arith.constant 0 : index
    %c0_45 = arith.constant 0 : index
    %245 = vector.load %arg6[%c0_44, %c0_45] : memref<1x128xf32, #tpu.memory_space<vmem>>, vector<1x128xf32>
    %246 = vector.broadcast %245 : vector<1x128xf32> to vector<8x128xf32>
    %247 = arith.addf %244, %246 : vector<8x128xf32>
    %c0_46 = arith.constant 0 : index
    %c0_47 = arith.constant 0 : index
    %248 = vector.load %arg7[%c0_46, %c0_47] : memref<8x128xf32, #tpu.memory_space<vmem>>, vector<8x128xf32>
    tpu.vector_store %arg7[%c0_46, %c0_47], %247 {strides = array<i32>} : memref<8x128xf32, #tpu.memory_space<vmem>>, vector<8x128xf32>,
    return
  }
  func.func @transform_0(%arg0: i32) -> (i32, i32) {
    %c0_i32 = arith.constant 0 : i32
    %c0_i32_0 = arith.constant 0 : i32
    %c0_i32_1 = arith.constant 0 : i32
    return %c0_i32, %c0_i32_0 : i32, i32
  }
  func.func @transform_1(%arg0: i32) -> (i32, i32) {
    %c0_i32 = arith.constant 0 : i32
    %c0_i32_0 = arith.constant 0 : i32
    %c0_i32_1 = arith.constant 0 : i32
    return %c0_i32, %c0_i32_0 : i32, i32
  }
  func.func @transform_2(%arg0: i32) -> (i32, i32) {
    %c0_i32 = arith.constant 0 : i32
    %c0_i32_0 = arith.constant 0 : i32
    %c0_i32_1 = arith.constant 0 : i32
    return %c0_i32, %c0_i32_0 : i32, i32
  }
  func.func @transform_3(%arg0: i32) -> (i32, i32) {
    %c0_i32 = arith.constant 0 : i32
    %c0_i32_0 = arith.constant 0 : i32
    %c0_i32_1 = arith.constant 0 : i32
    return %c0_i32, %c0_i32_0 : i32, i32
  }
  func.func @transform_4(%arg0: i32) -> (i32, i32) {
    %c0_i32 = arith.constant 0 : i32
    %c0_i32_0 = arith.constant 0 : i32
    %c0_i32_1 = arith.constant 0 : i32
    return %c0_i32, %c0_i32_0 : i32, i32
  }
  func.func @transform_5(%arg0: i32) -> (i32, i32) {
    %c0_i32 = arith.constant 0 : i32
    %c0_i32_0 = arith.constant 0 : i32
    %c0_i32_1 = arith.constant 0 : i32
    return %c0_i32, %c0_i32_0 : i32, i32
  }
  func.func @transform_6(%arg0: i32) -> (i32, i32) {
    %c0_i32 = arith.constant 0 : i32
    %c0_i32_0 = arith.constant 0 : i32
    %c0_i32_1 = arith.constant 0 : i32
    return %c0_i32, %c0_i32_0 : i32, i32
  }
}

module attributes {stable_mosaic.version = 11 : i64} {
  func.func @lstm_layer_kernel(%arg0: i32, %arg1: memref<64x128xf32, #tpu.memory_space<vmem>>, %arg2: memref<128x512xbf16, #tpu.memory_space<vmem>>, %arg3: memref<128x512xbf16, #tpu.memory_space<vmem>>, %arg4: memref<1x512xf32, #tpu.memory_space<vmem>>, %arg5: memref<64x128xf32, #tpu.memory_space<vmem>>) attributes {dimension_semantics = [#tpu.dimension_semantics<arbitrary>], iteration_bounds = array<i64: 1>, scalar_prefetch = 0 : i64, scratch_operands = 0 : i64, tpu.core_type = #tpu.core_type<tc>, window_params = [{pipeline_mode = #tpu.pipeline_mode<synchronous>, transform_indices = @transform_0, window_bounds = array<i64: 64, 128>}, {pipeline_mode = #tpu.pipeline_mode<synchronous>, transform_indices = @transform_1, window_bounds = array<i64: 128, 512>}, {pipeline_mode = #tpu.pipeline_mode<synchronous>, transform_indices = @transform_2, window_bounds = array<i64: 128, 512>}, {pipeline_mode = #tpu.pipeline_mode<synchronous>, transform_indices = @transform_3, window_bounds = array<i64: 1, 512>}, {pipeline_mode = #tpu.pipeline_mode<synchronous>, transform_indices = @transform_4, window_bounds = array<i64: 64, 128>}]} {
    %c0 = arith.constant 0 : index
    %c0_0 = arith.constant 0 : index
    %0 = vector.load %arg1[%c0, %c0_0] : memref<64x128xf32, #tpu.memory_space<vmem>>, vector<64x128xf32>
    %1 = arith.truncf %0 : vector<64x128xf32> to vector<64x128xbf16>
    %c0_1 = arith.constant 0 : index
    %c0_2 = arith.constant 0 : index
    %2 = vector.load %arg2[%c0_1, %c0_2] : memref<128x512xbf16, #tpu.memory_space<vmem>>, vector<128x512xbf16>
    %cst = arith.constant dense<0.000000e+00> : vector<64x512xf32>
    %3 = tpu.matmul %1, %2, %cst {dimension_numbers = #tpu.dot_dimension_numbers<[1], [0], [0], [1], [0, 0, 1, 1], [], []>} : vector<64x128xbf16>, vector<128x512xbf16>, vector<64x512xf32> -> vector<64x512xf32>
    %c0_3 = arith.constant 0 : index
    %c0_4 = arith.constant 0 : index
    %4 = vector.load %arg4[%c0_3, %c0_4] : memref<1x512xf32, #tpu.memory_space<vmem>>, vector<1x512xf32>
    %5 = vector.broadcast %4 : vector<1x512xf32> to vector<64x512xf32>
    %6 = arith.addf %3, %5 : vector<64x512xf32>
    %c0_5 = arith.constant 0 : index
    %c0_6 = arith.constant 0 : index
    %7 = vector.load %arg3[%c0_5, %c0_6] : memref<128x512xbf16, #tpu.memory_space<vmem>>, vector<128x512xbf16>
    %cst_7 = arith.constant 0.000000e+00 : f32
    %8 = vector.broadcast %cst_7 : f32 to vector<8x128xf32>
    %cst_8 = arith.constant 0.000000e+00 : f32
    %9 = vector.broadcast %cst_8 : f32 to vector<8x128xf32>
    %10 = vector.extract_strided_slice %6 {offsets = [0, 0], sizes = [8, 512], strides = [1, 1]} : vector<64x512xf32> to vector<8x512xf32>
    %11 = arith.truncf %8 : vector<8x128xf32> to vector<8x128xbf16>
    %cst_9 = arith.constant dense<0.000000e+00> : vector<8x512xf32>
    %12 = tpu.matmul %11, %7, %cst_9 {dimension_numbers = #tpu.dot_dimension_numbers<[1], [0], [0], [1], [0, 0, 1, 1], [], []>} : vector<8x128xbf16>, vector<128x512xbf16>, vector<8x512xf32> -> vector<8x512xf32>
    %13 = arith.addf %10, %12 : vector<8x512xf32>
    %14 = vector.extract_strided_slice %13 {offsets = [0, 0], sizes = [8, 128], strides = [1, 1]} : vector<8x512xf32> to vector<8x128xf32>
    %15 = arith.negf %14 : vector<8x128xf32>
    %16 = math.exp %15 : vector<8x128xf32>
    %cst_10 = arith.constant 1.000000e+00 : f32
    %17 = vector.broadcast %cst_10 : f32 to vector<8x128xf32>
    %18 = arith.addf %17, %16 : vector<8x128xf32>
    %19 = arith.divf %17, %18 : vector<8x128xf32>
    %20 = vector.extract_strided_slice %13 {offsets = [0, 128], sizes = [8, 128], strides = [1, 1]} : vector<8x512xf32> to vector<8x128xf32>
    %21 = arith.negf %20 : vector<8x128xf32>
    %22 = math.exp %21 : vector<8x128xf32>
    %cst_11 = arith.constant 1.000000e+00 : f32
    %23 = vector.broadcast %cst_11 : f32 to vector<8x128xf32>
    %24 = arith.addf %23, %22 : vector<8x128xf32>
    %25 = arith.divf %23, %24 : vector<8x128xf32>
    %26 = vector.extract_strided_slice %13 {offsets = [0, 256], sizes = [8, 128], strides = [1, 1]} : vector<8x512xf32> to vector<8x128xf32>
    %27 = math.tanh %26 : vector<8x128xf32>
    %28 = vector.extract_strided_slice %13 {offsets = [0, 384], sizes = [8, 128], strides = [1, 1]} : vector<8x512xf32> to vector<8x128xf32>
    %29 = arith.negf %28 : vector<8x128xf32>
    %30 = math.exp %29 : vector<8x128xf32>
    %cst_12 = arith.constant 1.000000e+00 : f32
    %31 = vector.broadcast %cst_12 : f32 to vector<8x128xf32>
    %32 = arith.addf %31, %30 : vector<8x128xf32>
    %33 = arith.divf %31, %32 : vector<8x128xf32>
    %34 = arith.mulf %25, %9 : vector<8x128xf32>
    %35 = arith.mulf %19, %27 : vector<8x128xf32>
    %36 = arith.addf %34, %35 : vector<8x128xf32>
    %37 = math.tanh %36 : vector<8x128xf32>
    %38 = arith.mulf %33, %37 : vector<8x128xf32>
    %c0_13 = arith.constant 0 : index
    %c0_14 = arith.constant 0 : index
    %39 = vector.load %arg5[%c0_13, %c0_14] : memref<64x128xf32, #tpu.memory_space<vmem>>, vector<8x128xf32>
    tpu.vector_store %arg5[%c0_13, %c0_14], %38 {strides = array<i32>} : memref<64x128xf32, #tpu.memory_space<vmem>>, vector<8x128xf32>,
    %40 = vector.extract_strided_slice %6 {offsets = [8, 0], sizes = [8, 512], strides = [1, 1]} : vector<64x512xf32> to vector<8x512xf32>
    %41 = arith.truncf %38 : vector<8x128xf32> to vector<8x128xbf16>
    %cst_15 = arith.constant dense<0.000000e+00> : vector<8x512xf32>
    %42 = tpu.matmul %41, %7, %cst_15 {dimension_numbers = #tpu.dot_dimension_numbers<[1], [0], [0], [1], [0, 0, 1, 1], [], []>} : vector<8x128xbf16>, vector<128x512xbf16>, vector<8x512xf32> -> vector<8x512xf32>
    %43 = arith.addf %40, %42 : vector<8x512xf32>
    %44 = vector.extract_strided_slice %43 {offsets = [0, 0], sizes = [8, 128], strides = [1, 1]} : vector<8x512xf32> to vector<8x128xf32>
    %45 = arith.negf %44 : vector<8x128xf32>
    %46 = math.exp %45 : vector<8x128xf32>
    %cst_16 = arith.constant 1.000000e+00 : f32
    %47 = vector.broadcast %cst_16 : f32 to vector<8x128xf32>
    %48 = arith.addf %47, %46 : vector<8x128xf32>
    %49 = arith.divf %47, %48 : vector<8x128xf32>
    %50 = vector.extract_strided_slice %43 {offsets = [0, 128], sizes = [8, 128], strides = [1, 1]} : vector<8x512xf32> to vector<8x128xf32>
    %51 = arith.negf %50 : vector<8x128xf32>
    %52 = math.exp %51 : vector<8x128xf32>
    %cst_17 = arith.constant 1.000000e+00 : f32
    %53 = vector.broadcast %cst_17 : f32 to vector<8x128xf32>
    %54 = arith.addf %53, %52 : vector<8x128xf32>
    %55 = arith.divf %53, %54 : vector<8x128xf32>
    %56 = vector.extract_strided_slice %43 {offsets = [0, 256], sizes = [8, 128], strides = [1, 1]} : vector<8x512xf32> to vector<8x128xf32>
    %57 = math.tanh %56 : vector<8x128xf32>
    %58 = vector.extract_strided_slice %43 {offsets = [0, 384], sizes = [8, 128], strides = [1, 1]} : vector<8x512xf32> to vector<8x128xf32>
    %59 = arith.negf %58 : vector<8x128xf32>
    %60 = math.exp %59 : vector<8x128xf32>
    %cst_18 = arith.constant 1.000000e+00 : f32
    %61 = vector.broadcast %cst_18 : f32 to vector<8x128xf32>
    %62 = arith.addf %61, %60 : vector<8x128xf32>
    %63 = arith.divf %61, %62 : vector<8x128xf32>
    %64 = arith.mulf %55, %36 : vector<8x128xf32>
    %65 = arith.mulf %49, %57 : vector<8x128xf32>
    %66 = arith.addf %64, %65 : vector<8x128xf32>
    %67 = math.tanh %66 : vector<8x128xf32>
    %68 = arith.mulf %63, %67 : vector<8x128xf32>
    %c8 = arith.constant 8 : index
    %c0_19 = arith.constant 0 : index
    %69 = vector.load %arg5[%c8, %c0_19] : memref<64x128xf32, #tpu.memory_space<vmem>>, vector<8x128xf32>
    tpu.vector_store %arg5[%c8, %c0_19], %68 {strides = array<i32>} : memref<64x128xf32, #tpu.memory_space<vmem>>, vector<8x128xf32>,
    %70 = vector.extract_strided_slice %6 {offsets = [16, 0], sizes = [8, 512], strides = [1, 1]} : vector<64x512xf32> to vector<8x512xf32>
    %71 = arith.truncf %68 : vector<8x128xf32> to vector<8x128xbf16>
    %cst_20 = arith.constant dense<0.000000e+00> : vector<8x512xf32>
    %72 = tpu.matmul %71, %7, %cst_20 {dimension_numbers = #tpu.dot_dimension_numbers<[1], [0], [0], [1], [0, 0, 1, 1], [], []>} : vector<8x128xbf16>, vector<128x512xbf16>, vector<8x512xf32> -> vector<8x512xf32>
    %73 = arith.addf %70, %72 : vector<8x512xf32>
    %74 = vector.extract_strided_slice %73 {offsets = [0, 0], sizes = [8, 128], strides = [1, 1]} : vector<8x512xf32> to vector<8x128xf32>
    %75 = arith.negf %74 : vector<8x128xf32>
    %76 = math.exp %75 : vector<8x128xf32>
    %cst_21 = arith.constant 1.000000e+00 : f32
    %77 = vector.broadcast %cst_21 : f32 to vector<8x128xf32>
    %78 = arith.addf %77, %76 : vector<8x128xf32>
    %79 = arith.divf %77, %78 : vector<8x128xf32>
    %80 = vector.extract_strided_slice %73 {offsets = [0, 128], sizes = [8, 128], strides = [1, 1]} : vector<8x512xf32> to vector<8x128xf32>
    %81 = arith.negf %80 : vector<8x128xf32>
    %82 = math.exp %81 : vector<8x128xf32>
    %cst_22 = arith.constant 1.000000e+00 : f32
    %83 = vector.broadcast %cst_22 : f32 to vector<8x128xf32>
    %84 = arith.addf %83, %82 : vector<8x128xf32>
    %85 = arith.divf %83, %84 : vector<8x128xf32>
    %86 = vector.extract_strided_slice %73 {offsets = [0, 256], sizes = [8, 128], strides = [1, 1]} : vector<8x512xf32> to vector<8x128xf32>
    %87 = math.tanh %86 : vector<8x128xf32>
    %88 = vector.extract_strided_slice %73 {offsets = [0, 384], sizes = [8, 128], strides = [1, 1]} : vector<8x512xf32> to vector<8x128xf32>
    %89 = arith.negf %88 : vector<8x128xf32>
    %90 = math.exp %89 : vector<8x128xf32>
    %cst_23 = arith.constant 1.000000e+00 : f32
    %91 = vector.broadcast %cst_23 : f32 to vector<8x128xf32>
    %92 = arith.addf %91, %90 : vector<8x128xf32>
    %93 = arith.divf %91, %92 : vector<8x128xf32>
    %94 = arith.mulf %85, %66 : vector<8x128xf32>
    %95 = arith.mulf %79, %87 : vector<8x128xf32>
    %96 = arith.addf %94, %95 : vector<8x128xf32>
    %97 = math.tanh %96 : vector<8x128xf32>
    %98 = arith.mulf %93, %97 : vector<8x128xf32>
    %c16 = arith.constant 16 : index
    %c0_24 = arith.constant 0 : index
    %99 = vector.load %arg5[%c16, %c0_24] : memref<64x128xf32, #tpu.memory_space<vmem>>, vector<8x128xf32>
    tpu.vector_store %arg5[%c16, %c0_24], %98 {strides = array<i32>} : memref<64x128xf32, #tpu.memory_space<vmem>>, vector<8x128xf32>,
    %100 = vector.extract_strided_slice %6 {offsets = [24, 0], sizes = [8, 512], strides = [1, 1]} : vector<64x512xf32> to vector<8x512xf32>
    %101 = arith.truncf %98 : vector<8x128xf32> to vector<8x128xbf16>
    %cst_25 = arith.constant dense<0.000000e+00> : vector<8x512xf32>
    %102 = tpu.matmul %101, %7, %cst_25 {dimension_numbers = #tpu.dot_dimension_numbers<[1], [0], [0], [1], [0, 0, 1, 1], [], []>} : vector<8x128xbf16>, vector<128x512xbf16>, vector<8x512xf32> -> vector<8x512xf32>
    %103 = arith.addf %100, %102 : vector<8x512xf32>
    %104 = vector.extract_strided_slice %103 {offsets = [0, 0], sizes = [8, 128], strides = [1, 1]} : vector<8x512xf32> to vector<8x128xf32>
    %105 = arith.negf %104 : vector<8x128xf32>
    %106 = math.exp %105 : vector<8x128xf32>
    %cst_26 = arith.constant 1.000000e+00 : f32
    %107 = vector.broadcast %cst_26 : f32 to vector<8x128xf32>
    %108 = arith.addf %107, %106 : vector<8x128xf32>
    %109 = arith.divf %107, %108 : vector<8x128xf32>
    %110 = vector.extract_strided_slice %103 {offsets = [0, 128], sizes = [8, 128], strides = [1, 1]} : vector<8x512xf32> to vector<8x128xf32>
    %111 = arith.negf %110 : vector<8x128xf32>
    %112 = math.exp %111 : vector<8x128xf32>
    %cst_27 = arith.constant 1.000000e+00 : f32
    %113 = vector.broadcast %cst_27 : f32 to vector<8x128xf32>
    %114 = arith.addf %113, %112 : vector<8x128xf32>
    %115 = arith.divf %113, %114 : vector<8x128xf32>
    %116 = vector.extract_strided_slice %103 {offsets = [0, 256], sizes = [8, 128], strides = [1, 1]} : vector<8x512xf32> to vector<8x128xf32>
    %117 = math.tanh %116 : vector<8x128xf32>
    %118 = vector.extract_strided_slice %103 {offsets = [0, 384], sizes = [8, 128], strides = [1, 1]} : vector<8x512xf32> to vector<8x128xf32>
    %119 = arith.negf %118 : vector<8x128xf32>
    %120 = math.exp %119 : vector<8x128xf32>
    %cst_28 = arith.constant 1.000000e+00 : f32
    %121 = vector.broadcast %cst_28 : f32 to vector<8x128xf32>
    %122 = arith.addf %121, %120 : vector<8x128xf32>
    %123 = arith.divf %121, %122 : vector<8x128xf32>
    %124 = arith.mulf %115, %96 : vector<8x128xf32>
    %125 = arith.mulf %109, %117 : vector<8x128xf32>
    %126 = arith.addf %124, %125 : vector<8x128xf32>
    %127 = math.tanh %126 : vector<8x128xf32>
    %128 = arith.mulf %123, %127 : vector<8x128xf32>
    %c24 = arith.constant 24 : index
    %c0_29 = arith.constant 0 : index
    %129 = vector.load %arg5[%c24, %c0_29] : memref<64x128xf32, #tpu.memory_space<vmem>>, vector<8x128xf32>
    tpu.vector_store %arg5[%c24, %c0_29], %128 {strides = array<i32>} : memref<64x128xf32, #tpu.memory_space<vmem>>, vector<8x128xf32>,
    %130 = vector.extract_strided_slice %6 {offsets = [32, 0], sizes = [8, 512], strides = [1, 1]} : vector<64x512xf32> to vector<8x512xf32>
    %131 = arith.truncf %128 : vector<8x128xf32> to vector<8x128xbf16>
    %cst_30 = arith.constant dense<0.000000e+00> : vector<8x512xf32>
    %132 = tpu.matmul %131, %7, %cst_30 {dimension_numbers = #tpu.dot_dimension_numbers<[1], [0], [0], [1], [0, 0, 1, 1], [], []>} : vector<8x128xbf16>, vector<128x512xbf16>, vector<8x512xf32> -> vector<8x512xf32>
    %133 = arith.addf %130, %132 : vector<8x512xf32>
    %134 = vector.extract_strided_slice %133 {offsets = [0, 0], sizes = [8, 128], strides = [1, 1]} : vector<8x512xf32> to vector<8x128xf32>
    %135 = arith.negf %134 : vector<8x128xf32>
    %136 = math.exp %135 : vector<8x128xf32>
    %cst_31 = arith.constant 1.000000e+00 : f32
    %137 = vector.broadcast %cst_31 : f32 to vector<8x128xf32>
    %138 = arith.addf %137, %136 : vector<8x128xf32>
    %139 = arith.divf %137, %138 : vector<8x128xf32>
    %140 = vector.extract_strided_slice %133 {offsets = [0, 128], sizes = [8, 128], strides = [1, 1]} : vector<8x512xf32> to vector<8x128xf32>
    %141 = arith.negf %140 : vector<8x128xf32>
    %142 = math.exp %141 : vector<8x128xf32>
    %cst_32 = arith.constant 1.000000e+00 : f32
    %143 = vector.broadcast %cst_32 : f32 to vector<8x128xf32>
    %144 = arith.addf %143, %142 : vector<8x128xf32>
    %145 = arith.divf %143, %144 : vector<8x128xf32>
    %146 = vector.extract_strided_slice %133 {offsets = [0, 256], sizes = [8, 128], strides = [1, 1]} : vector<8x512xf32> to vector<8x128xf32>
    %147 = math.tanh %146 : vector<8x128xf32>
    %148 = vector.extract_strided_slice %133 {offsets = [0, 384], sizes = [8, 128], strides = [1, 1]} : vector<8x512xf32> to vector<8x128xf32>
    %149 = arith.negf %148 : vector<8x128xf32>
    %150 = math.exp %149 : vector<8x128xf32>
    %cst_33 = arith.constant 1.000000e+00 : f32
    %151 = vector.broadcast %cst_33 : f32 to vector<8x128xf32>
    %152 = arith.addf %151, %150 : vector<8x128xf32>
    %153 = arith.divf %151, %152 : vector<8x128xf32>
    %154 = arith.mulf %145, %126 : vector<8x128xf32>
    %155 = arith.mulf %139, %147 : vector<8x128xf32>
    %156 = arith.addf %154, %155 : vector<8x128xf32>
    %157 = math.tanh %156 : vector<8x128xf32>
    %158 = arith.mulf %153, %157 : vector<8x128xf32>
    %c32 = arith.constant 32 : index
    %c0_34 = arith.constant 0 : index
    %159 = vector.load %arg5[%c32, %c0_34] : memref<64x128xf32, #tpu.memory_space<vmem>>, vector<8x128xf32>
    tpu.vector_store %arg5[%c32, %c0_34], %158 {strides = array<i32>} : memref<64x128xf32, #tpu.memory_space<vmem>>, vector<8x128xf32>,
    %160 = vector.extract_strided_slice %6 {offsets = [40, 0], sizes = [8, 512], strides = [1, 1]} : vector<64x512xf32> to vector<8x512xf32>
    %161 = arith.truncf %158 : vector<8x128xf32> to vector<8x128xbf16>
    %cst_35 = arith.constant dense<0.000000e+00> : vector<8x512xf32>
    %162 = tpu.matmul %161, %7, %cst_35 {dimension_numbers = #tpu.dot_dimension_numbers<[1], [0], [0], [1], [0, 0, 1, 1], [], []>} : vector<8x128xbf16>, vector<128x512xbf16>, vector<8x512xf32> -> vector<8x512xf32>
    %163 = arith.addf %160, %162 : vector<8x512xf32>
    %164 = vector.extract_strided_slice %163 {offsets = [0, 0], sizes = [8, 128], strides = [1, 1]} : vector<8x512xf32> to vector<8x128xf32>
    %165 = arith.negf %164 : vector<8x128xf32>
    %166 = math.exp %165 : vector<8x128xf32>
    %cst_36 = arith.constant 1.000000e+00 : f32
    %167 = vector.broadcast %cst_36 : f32 to vector<8x128xf32>
    %168 = arith.addf %167, %166 : vector<8x128xf32>
    %169 = arith.divf %167, %168 : vector<8x128xf32>
    %170 = vector.extract_strided_slice %163 {offsets = [0, 128], sizes = [8, 128], strides = [1, 1]} : vector<8x512xf32> to vector<8x128xf32>
    %171 = arith.negf %170 : vector<8x128xf32>
    %172 = math.exp %171 : vector<8x128xf32>
    %cst_37 = arith.constant 1.000000e+00 : f32
    %173 = vector.broadcast %cst_37 : f32 to vector<8x128xf32>
    %174 = arith.addf %173, %172 : vector<8x128xf32>
    %175 = arith.divf %173, %174 : vector<8x128xf32>
    %176 = vector.extract_strided_slice %163 {offsets = [0, 256], sizes = [8, 128], strides = [1, 1]} : vector<8x512xf32> to vector<8x128xf32>
    %177 = math.tanh %176 : vector<8x128xf32>
    %178 = vector.extract_strided_slice %163 {offsets = [0, 384], sizes = [8, 128], strides = [1, 1]} : vector<8x512xf32> to vector<8x128xf32>
    %179 = arith.negf %178 : vector<8x128xf32>
    %180 = math.exp %179 : vector<8x128xf32>
    %cst_38 = arith.constant 1.000000e+00 : f32
    %181 = vector.broadcast %cst_38 : f32 to vector<8x128xf32>
    %182 = arith.addf %181, %180 : vector<8x128xf32>
    %183 = arith.divf %181, %182 : vector<8x128xf32>
    %184 = arith.mulf %175, %156 : vector<8x128xf32>
    %185 = arith.mulf %169, %177 : vector<8x128xf32>
    %186 = arith.addf %184, %185 : vector<8x128xf32>
    %187 = math.tanh %186 : vector<8x128xf32>
    %188 = arith.mulf %183, %187 : vector<8x128xf32>
    %c40 = arith.constant 40 : index
    %c0_39 = arith.constant 0 : index
    %189 = vector.load %arg5[%c40, %c0_39] : memref<64x128xf32, #tpu.memory_space<vmem>>, vector<8x128xf32>
    tpu.vector_store %arg5[%c40, %c0_39], %188 {strides = array<i32>} : memref<64x128xf32, #tpu.memory_space<vmem>>, vector<8x128xf32>,
    %190 = vector.extract_strided_slice %6 {offsets = [48, 0], sizes = [8, 512], strides = [1, 1]} : vector<64x512xf32> to vector<8x512xf32>
    %191 = arith.truncf %188 : vector<8x128xf32> to vector<8x128xbf16>
    %cst_40 = arith.constant dense<0.000000e+00> : vector<8x512xf32>
    %192 = tpu.matmul %191, %7, %cst_40 {dimension_numbers = #tpu.dot_dimension_numbers<[1], [0], [0], [1], [0, 0, 1, 1], [], []>} : vector<8x128xbf16>, vector<128x512xbf16>, vector<8x512xf32> -> vector<8x512xf32>
    %193 = arith.addf %190, %192 : vector<8x512xf32>
    %194 = vector.extract_strided_slice %193 {offsets = [0, 0], sizes = [8, 128], strides = [1, 1]} : vector<8x512xf32> to vector<8x128xf32>
    %195 = arith.negf %194 : vector<8x128xf32>
    %196 = math.exp %195 : vector<8x128xf32>
    %cst_41 = arith.constant 1.000000e+00 : f32
    %197 = vector.broadcast %cst_41 : f32 to vector<8x128xf32>
    %198 = arith.addf %197, %196 : vector<8x128xf32>
    %199 = arith.divf %197, %198 : vector<8x128xf32>
    %200 = vector.extract_strided_slice %193 {offsets = [0, 128], sizes = [8, 128], strides = [1, 1]} : vector<8x512xf32> to vector<8x128xf32>
    %201 = arith.negf %200 : vector<8x128xf32>
    %202 = math.exp %201 : vector<8x128xf32>
    %cst_42 = arith.constant 1.000000e+00 : f32
    %203 = vector.broadcast %cst_42 : f32 to vector<8x128xf32>
    %204 = arith.addf %203, %202 : vector<8x128xf32>
    %205 = arith.divf %203, %204 : vector<8x128xf32>
    %206 = vector.extract_strided_slice %193 {offsets = [0, 256], sizes = [8, 128], strides = [1, 1]} : vector<8x512xf32> to vector<8x128xf32>
    %207 = math.tanh %206 : vector<8x128xf32>
    %208 = vector.extract_strided_slice %193 {offsets = [0, 384], sizes = [8, 128], strides = [1, 1]} : vector<8x512xf32> to vector<8x128xf32>
    %209 = arith.negf %208 : vector<8x128xf32>
    %210 = math.exp %209 : vector<8x128xf32>
    %cst_43 = arith.constant 1.000000e+00 : f32
    %211 = vector.broadcast %cst_43 : f32 to vector<8x128xf32>
    %212 = arith.addf %211, %210 : vector<8x128xf32>
    %213 = arith.divf %211, %212 : vector<8x128xf32>
    %214 = arith.mulf %205, %186 : vector<8x128xf32>
    %215 = arith.mulf %199, %207 : vector<8x128xf32>
    %216 = arith.addf %214, %215 : vector<8x128xf32>
    %217 = math.tanh %216 : vector<8x128xf32>
    %218 = arith.mulf %213, %217 : vector<8x128xf32>
    %c48 = arith.constant 48 : index
    %c0_44 = arith.constant 0 : index
    %219 = vector.load %arg5[%c48, %c0_44] : memref<64x128xf32, #tpu.memory_space<vmem>>, vector<8x128xf32>
    tpu.vector_store %arg5[%c48, %c0_44], %218 {strides = array<i32>} : memref<64x128xf32, #tpu.memory_space<vmem>>, vector<8x128xf32>,
    %220 = vector.extract_strided_slice %6 {offsets = [56, 0], sizes = [8, 512], strides = [1, 1]} : vector<64x512xf32> to vector<8x512xf32>
    %221 = arith.truncf %218 : vector<8x128xf32> to vector<8x128xbf16>
    %cst_45 = arith.constant dense<0.000000e+00> : vector<8x512xf32>
    %222 = tpu.matmul %221, %7, %cst_45 {dimension_numbers = #tpu.dot_dimension_numbers<[1], [0], [0], [1], [0, 0, 1, 1], [], []>} : vector<8x128xbf16>, vector<128x512xbf16>, vector<8x512xf32> -> vector<8x512xf32>
    %223 = arith.addf %220, %222 : vector<8x512xf32>
    %224 = vector.extract_strided_slice %223 {offsets = [0, 0], sizes = [8, 128], strides = [1, 1]} : vector<8x512xf32> to vector<8x128xf32>
    %225 = arith.negf %224 : vector<8x128xf32>
    %226 = math.exp %225 : vector<8x128xf32>
    %cst_46 = arith.constant 1.000000e+00 : f32
    %227 = vector.broadcast %cst_46 : f32 to vector<8x128xf32>
    %228 = arith.addf %227, %226 : vector<8x128xf32>
    %229 = arith.divf %227, %228 : vector<8x128xf32>
    %230 = vector.extract_strided_slice %223 {offsets = [0, 128], sizes = [8, 128], strides = [1, 1]} : vector<8x512xf32> to vector<8x128xf32>
    %231 = arith.negf %230 : vector<8x128xf32>
    %232 = math.exp %231 : vector<8x128xf32>
    %cst_47 = arith.constant 1.000000e+00 : f32
    %233 = vector.broadcast %cst_47 : f32 to vector<8x128xf32>
    %234 = arith.addf %233, %232 : vector<8x128xf32>
    %235 = arith.divf %233, %234 : vector<8x128xf32>
    %236 = vector.extract_strided_slice %223 {offsets = [0, 256], sizes = [8, 128], strides = [1, 1]} : vector<8x512xf32> to vector<8x128xf32>
    %237 = math.tanh %236 : vector<8x128xf32>
    %238 = vector.extract_strided_slice %223 {offsets = [0, 384], sizes = [8, 128], strides = [1, 1]} : vector<8x512xf32> to vector<8x128xf32>
    %239 = arith.negf %238 : vector<8x128xf32>
    %240 = math.exp %239 : vector<8x128xf32>
    %cst_48 = arith.constant 1.000000e+00 : f32
    %241 = vector.broadcast %cst_48 : f32 to vector<8x128xf32>
    %242 = arith.addf %241, %240 : vector<8x128xf32>
    %243 = arith.divf %241, %242 : vector<8x128xf32>
    %244 = arith.mulf %235, %216 : vector<8x128xf32>
    %245 = arith.mulf %229, %237 : vector<8x128xf32>
    %246 = arith.addf %244, %245 : vector<8x128xf32>
    %247 = math.tanh %246 : vector<8x128xf32>
    %248 = arith.mulf %243, %247 : vector<8x128xf32>
    %c56 = arith.constant 56 : index
    %c0_49 = arith.constant 0 : index
    %249 = vector.load %arg5[%c56, %c0_49] : memref<64x128xf32, #tpu.memory_space<vmem>>, vector<8x128xf32>
    tpu.vector_store %arg5[%c56, %c0_49], %248 {strides = array<i32>} : memref<64x128xf32, #tpu.memory_space<vmem>>, vector<8x128xf32>,
    return
  }
  func.func @transform_0(%arg0: i32) -> (i32, i32) {
    %c0_i32 = arith.constant 0 : i32
    %c0_i32_0 = arith.constant 0 : i32
    %c0_i32_1 = arith.constant 0 : i32
    return %c0_i32, %c0_i32_0 : i32, i32
  }
  func.func @transform_1(%arg0: i32) -> (i32, i32) {
    %c0_i32 = arith.constant 0 : i32
    %c0_i32_0 = arith.constant 0 : i32
    %c0_i32_1 = arith.constant 0 : i32
    return %c0_i32, %c0_i32_0 : i32, i32
  }
  func.func @transform_2(%arg0: i32) -> (i32, i32) {
    %c0_i32 = arith.constant 0 : i32
    %c0_i32_0 = arith.constant 0 : i32
    %c0_i32_1 = arith.constant 0 : i32
    return %c0_i32, %c0_i32_0 : i32, i32
  }
  func.func @transform_3(%arg0: i32) -> (i32, i32) {
    %c0_i32 = arith.constant 0 : i32
    %c0_i32_0 = arith.constant 0 : i32
    %c0_i32_1 = arith.constant 0 : i32
    return %c0_i32, %c0_i32_0 : i32, i32
  }
  func.func @transform_4(%arg0: i32) -> (i32, i32) {
    %c0_i32 = arith.constant 0 : i32
    %c0_i32_0 = arith.constant 0 : i32
    %c0_i32_1 = arith.constant 0 : i32
    return %c0_i32, %c0_i32_0 : i32, i32
  }
}

</mosaic_0001>

<bundles_post_ra>
// kernel: rnn_forward.2
= control target key start
LH: loop header
LB: loop body
LE: loop exit
PB: predicated region body
PF: predicated region fallthrough
CT: control target
= control target key end

     0   :  { %9 = vsyncpa [#allocation3], 0  ;;  %s2619_s0 = inlined_call_operand.vmem [shape: f32[64,128], index: 0, kind: input, shape index: {}]   ;;  %s2620_s1 = inlined_call_operand.hbm [shape: bf16[128,512], index: 1, kind: input, shape index: {}]   ;;  %s2621_s2 = inlined_call_operand.hbm [shape: bf16[128,512], index: 2, kind: input, shape index: {}]   ;;  %s2622_s3 = inlined_call_operand.vmem [shape: f32[1,512], index: 3, kind: input, shape index: {}]   ;;  %s2623_s4 = inlined_call_operand.vmem [shape: f32[64,128], index: 4, kind: output, shape index: {}]  }
   0x1   :  { %s17_s17 = sshll.u32 %s2620_s1, 4  ;;  %s18_s17 = int_to_ptr.hbm [resolvable:$true] %s17_s17 }
   0x2   :  { %10 = vsyncpa [#allocation5], 0  ;;  %s2074_s18 = smov [#allocation2]   ;;  %s30_s22 = sshll.u32 %s2621_s2, 4  ;;  %s31_s22 = int_to_ptr.hbm [resolvable:$true] %s30_s22 }
   0x3   :  { %s19_s19 = sshll.u32 %s2074_s18, 4  ;;  %s2075_s23 = smov 256   ;;  %s20_s19 = int_to_ptr.vmem [resolvable:$true] %s19_s19 }
   0x4   :  { %s2076_s24 = smov 16   ;;  %s2077_s25 = smov [#allocation4]  }
   0x5   :  { %25 = dma.hbm_to_vmem [thread:$0]  %s18_s17, 4096, %s20_s19, [#allocation3], %s2075_s23, %s2075_s23, %s2076_s24  }
   0x6   :  { %s32_s26 = sshll.u32 %s2077_s25, 4  ;;  %s33_s26 = int_to_ptr.vmem [resolvable:$true] %s32_s26 }
   0x7   :  { %38 = dma.hbm_to_vmem [thread:$0]  %s31_s22, 4096, %s33_s26, [#allocation5], %s2075_s23, %s2075_s23, %s2076_s24  }
   0x8   :  { %2070 = dma.done.wait [#allocation3], 4096  }
   0x9   :  { %2071 = vsyncadd [#allocation3], 4294963200 }
   0xa   :  { %2072 = dma.done.wait [#allocation5], 4096  }
   0xb   :  { %2073 = vsyncadd [#allocation5], 4294963200  ;;  %v1659_v0 = vld [vmem:[#allocation2 + $0xe0] sm:$0xf]  ;;  %v1855_v1 = vld [vmem:[#allocation2 + $0xec] sm:$0xf0] }
   0xc   :  { %v1853_v2 = vld [vmem:[#allocation2 + $0xe4] sm:$0xf]  ;;  %v1660_v3 = vor.u32 %v1855_v1, %v1659_v0  ;;  %v1661_v4 = vld [vmem:[#allocation2 + $0xf0] sm:$0xf0]  ;;  %v1667_v5 = vld [vmem:[#allocation2 + $0xe8] sm:$0xf] }
   0xd   :  { %v1856_v6 = vld [vmem:[#allocation2 + $0xf4] sm:$0xf0]  ;;  %v1664_v7 = vor.u32 %v1853_v2, %v1661_v4  ;;  %v1854_v9 = vld [vmem:[#allocation2 + $0xec] sm:$0xf]  ;;  %v1669_v10 = vld [vmem:[#allocation2 + $0xf8] sm:$0xf0] }
   0xe   :  { %v1668_v8 = vor.u32 %v1856_v6, %v1667_v5  ;;  %v1643_v11 = vld [vmem:[#allocation2 + $0xc0] sm:$0xf]  ;;  %264 = vmatpush.bf16.msra.mxu0 %v1660_v3  ;;  %v1672_v12 = vor.u32 %v1854_v9, %v1669_v10  ;;  %v1851_v13 = vld [vmem:[#allocation2 + $0xcc] sm:$0xf0]  ;;  %v1849_v14 = vld [vmem:[#allocation2 + $0xc4] sm:$0xf] }
   0xf   :  { %v1645_v15 = vld [vmem:[#allocation2 + $0xd0] sm:$0xf0]  ;;  %293 = vmatpush.bf16.msra.mxu1 %v1664_v7  ;;  %v1644_v16 = vor.u32 %v1851_v13, %v1643_v11  ;;  %v1651_v18 = vld [vmem:[#allocation2 + $0xc8] sm:$0xf]  ;;  %v1852_v19 = vld [vmem:[#allocation2 + $0xd4] sm:$0xf0] }
  0x10   :  { %322 = vmatpush.bf16.msra.mxu2 %v1668_v8  ;;  %v1648_v17 = vor.u32 %v1849_v14, %v1645_v15  ;;  %v1850_v20 = vld [vmem:[#allocation2 + $0xcc] sm:$0xf]  ;;  %351 = vmatpush.bf16.msra.mxu3 %v1672_v12  ;;  %v1652_v21 = vor.u32 %v1852_v19, %v1651_v18  ;;  %v1653_v22 = vld [vmem:[#allocation2 + $0xd8] sm:$0xf0]  ;;  %v1627_v23 = vld [vmem:[#allocation2 + $0xa0] sm:$0xf] }
  0x11   :  { %v1847_v24 = vld [vmem:[#allocation2 + $0xac] sm:$0xf0]  ;;  %v1656_v25 = vor.u32 %v1850_v20, %v1653_v22  ;;  %v1845_v26 = vld [vmem:[#allocation2 + $0xa4] sm:$0xf]  ;;  %v1629_v27 = vld [vmem:[#allocation2 + $0xb0] sm:$0xf0] }
  0x12   :  { %v1635_v28 = vld [vmem:[#allocation2 + $0xa8] sm:$0xf]  ;;  %265 = vmatpush.bf16.msra.mxu0 %v1644_v16  ;;  %v1628_v29 = vor.u32 %v1847_v24, %v1627_v23  ;;  %v1848_v30 = vld [vmem:[#allocation2 + $0xb4] sm:$0xf0]  ;;  %v1846_v31 = vld [vmem:[#allocation2 + $0xac] sm:$0xf]  ;;  %v1632_v33 = vor.u32 %v1845_v26, %v1629_v27 }
  0x13   :  { %v1637_v32 = vld [vmem:[#allocation2 + $0xb8] sm:$0xf0]  ;;  %294 = vmatpush.bf16.msra.mxu1 %v1648_v17  ;;  %v1636_v34 = vor.u32 %v1848_v30, %v1635_v28  ;;  %v1611_v35 = vld [vmem:[#allocation2 + $0x80] sm:$0xf]  ;;  %v1843_v36 = vld [vmem:[#allocation2 + $0x8c] sm:$0xf0] }
  0x14   :  { %323 = vmatpush.bf16.msra.mxu2 %v1652_v21  ;;  %v1841_v37 = vld [vmem:[#allocation2 + $0x84] sm:$0xf]  ;;  %352 = vmatpush.bf16.msra.mxu3 %v1656_v25  ;;  %v1640_v38 = vor.u32 %v1846_v31, %v1637_v32  ;;  %v1613_v39 = vld [vmem:[#allocation2 + $0x90] sm:$0xf0]  ;;  %v1619_v40 = vld [vmem:[#allocation2 + $0x88] sm:$0xf]  ;;  %v1612_v44 = vor.u32 %v1843_v36, %v1611_v35 }
  0x15   :  { %v1844_v41 = vld [vmem:[#allocation2 + $0x94] sm:$0xf0]  ;;  %v1842_v42 = vld [vmem:[#allocation2 + $0x8c] sm:$0xf]  ;;  %v1621_v43 = vld [vmem:[#allocation2 + $0x98] sm:$0xf0]  ;;  %v1616_v45 = vor.u32 %v1841_v37, %v1613_v39 }
  0x16   :  { %266 = vmatpush.bf16.msra.mxu0 %v1628_v29  ;;  %v1620_v46 = vor.u32 %v1844_v41, %v1619_v40  ;;  %v1595_v47 = vld [vmem:[#allocation2 + $0x60] sm:$0xf]  ;;  %v1839_v48 = vld [vmem:[#allocation2 + $0x6c] sm:$0xf0]  ;;  %v1837_v49 = vld [vmem:[#allocation2 + $0x64] sm:$0xf]  ;;  %v1624_v50 = vor.u32 %v1842_v42, %v1621_v43 }
  0x17   :  { %295 = vmatpush.bf16.msra.mxu1 %v1632_v33  ;;  %v1597_v51 = vld [vmem:[#allocation2 + $0x70] sm:$0xf0]  ;;  %v1603_v52 = vld [vmem:[#allocation2 + $0x68] sm:$0xf]  ;;  %v1840_v53 = vld [vmem:[#allocation2 + $0x74] sm:$0xf0]  ;;  %v1596_v56 = vor.u32 %v1839_v48, %v1595_v47 }
  0x18   :  { %324 = vmatpush.bf16.msra.mxu2 %v1636_v34  ;;  %353 = vmatpush.bf16.msra.mxu3 %v1640_v38  ;;  %v1838_v54 = vld [vmem:[#allocation2 + $0x6c] sm:$0xf]  ;;  %v1605_v55 = vld [vmem:[#allocation2 + $0x78] sm:$0xf0]  ;;  %v1600_v57 = vor.u32 %v1837_v49, %v1597_v51  ;;  %v1604_v58 = vor.u32 %v1840_v53, %v1603_v52  ;;  %v1579_v59 = vld [vmem:[#allocation2 + $0x40] sm:$0xf] }
  0x19   :  { %v1835_v60 = vld [vmem:[#allocation2 + $0x4c] sm:$0xf0]  ;;  %v1833_v61 = vld [vmem:[#allocation2 + $0x44] sm:$0xf]  ;;  %v1608_v62 = vor.u32 %v1838_v54, %v1605_v55  ;;  %v1581_v63 = vld [vmem:[#allocation2 + $0x50] sm:$0xf0] }
  0x1a   :  { %267 = vmatpush.bf16.msra.mxu0 %v1612_v44  ;;  %v1587_v0 = vld [vmem:[#allocation2 + $0x48] sm:$0xf]  ;;  %v1836_v1 = vld [vmem:[#allocation2 + $0x54] sm:$0xf0]  ;;  %v1834_v2 = vld [vmem:[#allocation2 + $0x4c] sm:$0xf]  ;;  %v1580_v4 = vor.u32 %v1835_v60, %v1579_v59  ;;  %v1584_v5 = vor.u32 %v1833_v61, %v1581_v63 }
  0x1b   :  { %296 = vmatpush.bf16.msra.mxu1 %v1616_v45  ;;  %v1589_v3 = vld [vmem:[#allocation2 + $0x58] sm:$0xf0]  ;;  %v1588_v6 = vor.u32 %v1836_v1, %v1587_v0  ;;  %v1563_v7 = vld [vmem:[#allocation2 + $0x20] sm:$0xf]  ;;  %v1831_v8 = vld [vmem:[#allocation2 + $0x2c] sm:$0xf0] }
  0x1c   :  { %325 = vmatpush.bf16.msra.mxu2 %v1620_v46  ;;  %354 = vmatpush.bf16.msra.mxu3 %v1624_v50  ;;  %v1829_v9 = vld [vmem:[#allocation2 + $0x24] sm:$0xf]  ;;  %v1592_v10 = vor.u32 %v1834_v2, %v1589_v3  ;;  %v1565_v11 = vld [vmem:[#allocation2 + $0x30] sm:$0xf0]  ;;  %v1571_v12 = vld [vmem:[#allocation2 + $0x28] sm:$0xf]  ;;  %v1564_v16 = vor.u32 %v1831_v8, %v1563_v7 }
  0x1d   :  { %v1832_v13 = vld [vmem:[#allocation2 + $0x34] sm:$0xf0]  ;;  %v1830_v14 = vld [vmem:[#allocation2 + $0x2c] sm:$0xf]  ;;  %v1573_v15 = vld [vmem:[#allocation2 + $0x38] sm:$0xf0]  ;;  %v1568_v19 = vor.u32 %v1829_v9, %v1565_v11 }
  0x1e   :  { %268 = vmatpush.bf16.msra.mxu0 %v1596_v56  ;;  %v1547_v17 = vld [vmem:[#allocation2] sm:$0xf]  ;;  %v1827_v18 = vld [vmem:[#allocation2 + $0xc] sm:$0xf0]  ;;  %v1572_v20 = vor.u32 %v1832_v13, %v1571_v12  ;;  %v1825_v21 = vld [vmem:[#allocation2 + $0x4] sm:$0xf]  ;;  %v1576_v24 = vor.u32 %v1830_v14, %v1573_v15 }
  0x1f   :  { %297 = vmatpush.bf16.msra.mxu1 %v1600_v57  ;;  %v1549_v22 = vld [vmem:[#allocation2 + $0x10] sm:$0xf0]  ;;  %v1555_v23 = vld [vmem:[#allocation2 + $0x8] sm:$0xf]  ;;  %v1828_v25 = vld [vmem:[#allocation2 + $0x14] sm:$0xf0]  ;;  %v1548_v31 = vor.u32 %v1827_v18, %v1547_v17 }
  0x20   :  { %326 = vmatpush.bf16.msra.mxu2 %v1604_v58  ;;  %355 = vmatpush.bf16.msra.mxu3 %v1608_v62  ;;  %v1826_v26 = vld [vmem:[#allocation2 + $0xc] sm:$0xf]  ;;  %v1557_v27 = vld [vmem:[#allocation2 + $0x18] sm:$0xf0]  ;;  %v50_v28 = vld [vmem:[%s2619_s0] sm:$0xff]  ;;  %v1552_v35 = vor.u32 %v1825_v21, %v1549_v22  ;;  %v1556_v36 = vor.u32 %v1828_v25, %v1555_v23 }
  0x21   :  { %v1787_v29 = vld [vmem:[#allocation4 + $0xe0] sm:$0xf]  ;;  %v1887_v30 = vld [vmem:[#allocation4 + $0xec] sm:$0xf0]  ;;  %v51_v32 = vld [vmem:[%s2619_s0 + $0x8] sm:$0xff]  ;;  %v1560_v37 = vor.u32 %v1826_v26, %v1557_v27 }
  0x22   :  { %269 = vmatpush.bf16.msra.mxu0 %v1580_v4  ;;  %v1885_v33 = vld [vmem:[#allocation4 + $0xe4] sm:$0xf]  ;;  %v1789_v34 = vld [vmem:[#allocation4 + $0xf0] sm:$0xf0]  ;;  %v2116_v38 = vor.u32 %v1887_v30, %v1787_v29  ;;  %v1886_v39 = vld [vmem:[#allocation4 + $0xec] sm:$0xf]  ;;  %v58_v42 = vpack.c.bf16 %v51_v32, %v50_v28 }
  0x23   :  { %298 = vmatpush.bf16.msra.mxu1 %v1584_v5  ;;  %v1795_v40 = vld [vmem:[#allocation4 + $0xe8] sm:$0xf]  ;;  %v1888_v41 = vld [vmem:[#allocation4 + $0xf4] sm:$0xf0]  ;;  %v2118_v43 = vor.u32 %v1885_v33, %v1789_v34  ;;  %v1797_v44 = vld [vmem:[#allocation4 + $0xf8] sm:$0xf0] }
  0x24   :  { %327 = vmatpush.bf16.msra.mxu2 %v1588_v6  ;;  %356 = vmatpush.bf16.msra.mxu3 %v1592_v10  ;;  %v1771_v45 = vld [vmem:[#allocation4 + $0xc0] sm:$0xf]  ;;  %v1883_v46 = vld [vmem:[#allocation4 + $0xcc] sm:$0xf0]  ;;  %v1881_v47 = vld [vmem:[#allocation4 + $0xc4] sm:$0xf]  ;;  %v2120_v49 = vor.u32 %v1888_v41, %v1795_v40  ;;  %v2123_v50 = vor.u32 %v1886_v39, %v1797_v44 }
  0x25   :  { %v1773_v48 = vld [vmem:[#allocation4 + $0xd0] sm:$0xf0]  ;;  %v2125_v51 = vor.u32 %v1883_v46, %v1771_v45  ;;  %v1882_v52 = vld [vmem:[#allocation4 + $0xcc] sm:$0xf]  ;;  %v1779_v53 = vld [vmem:[#allocation4 + $0xc8] sm:$0xf] }
  0x26   :  { %270 = vmatpush.bf16.msra.mxu0 %v1564_v16  ;;  %v1884_v54 = vld [vmem:[#allocation4 + $0xd4] sm:$0xf0]  ;;  %v2128_v55 = vor.u32 %v1881_v47, %v1773_v48  ;;  %v1781_v56 = vld [vmem:[#allocation4 + $0xd8] sm:$0xf0]  ;;  %v1755_v57 = vld [vmem:[#allocation4 + $0xa0] sm:$0xf] }
  0x27   :  { %299 = vmatpush.bf16.msra.mxu1 %v1568_v19  ;;  %v1879_v58 = vld [vmem:[#allocation4 + $0xac] sm:$0xf0]  ;;  %v1877_v59 = vld [vmem:[#allocation4 + $0xa4] sm:$0xf]  ;;  %v1757_v60 = vld [vmem:[#allocation4 + $0xb0] sm:$0xf0]  ;;  %v2131_v61 = vor.u32 %v1884_v54, %v1779_v53  ;;  %v2135_v62 = vor.u32 %v1882_v52, %v1781_v56 }
  0x28   :  { %328 = vmatpush.bf16.msra.mxu2 %v1572_v20  ;;  %357 = vmatpush.bf16.msra.mxu3 %v1576_v24  ;;  %v2137_v63 = vor.u32 %v1879_v58, %v1755_v57  ;;  %v1878_v0 = vld [vmem:[#allocation4 + $0xac] sm:$0xf]  ;;  %v1763_v1 = vld [vmem:[#allocation4 + $0xa8] sm:$0xf]  ;;  %v1880_v2 = vld [vmem:[#allocation4 + $0xb4] sm:$0xf0]  ;;  %v2140_v3 = vor.u32 %v1877_v59, %v1757_v60 }
  0x29   :  { %v1765_v4 = vld [vmem:[#allocation4 + $0xb8] sm:$0xf0]  ;;  %v1739_v5 = vld [vmem:[#allocation4 + $0x80] sm:$0xf]  ;;  %v1875_v6 = vld [vmem:[#allocation4 + $0x8c] sm:$0xf0]  ;;  %v2143_v9 = vor.u32 %v1880_v2, %v1763_v1 }
  0x2a   :  { %271 = vmatpush.bf16.msra.mxu0 %v1548_v31  ;;  %v1873_v7 = vld [vmem:[#allocation4 + $0x84] sm:$0xf]  ;;  %v1741_v8 = vld [vmem:[#allocation4 + $0x90] sm:$0xf0]  ;;  %v2150_v11 = vor.u32 %v1878_v0, %v1765_v4  ;;  %v2152_v12 = vor.u32 %v1875_v6, %v1739_v5  ;;  %v1874_v13 = vld [vmem:[#allocation4 + $0x8c] sm:$0xf] }
  0x2b   :  { %300 = vmatpush.bf16.msra.mxu1 %v1552_v35  ;;  %v52_v10 = vld [vmem:[%s2619_s0 + $0x10] sm:$0xff]  ;;  %v1747_v14 = vld [vmem:[#allocation4 + $0x88] sm:$0xf]  ;;  %v1876_v15 = vld [vmem:[#allocation4 + $0x94] sm:$0xf0]  ;;  %v2155_v16 = vor.u32 %v1873_v7, %v1741_v8 }
  0x2c   :  { %329 = vmatpush.bf16.msra.mxu2 %v1556_v36  ;;  %358 = vmatpush.bf16.msra.mxu3 %v1560_v37  ;;  %v1749_v17 = vld [vmem:[#allocation4 + $0x98] sm:$0xf0]  ;;  %v1723_v18 = vld [vmem:[#allocation4 + $0x60] sm:$0xf]  ;;  %v1871_v19 = vld [vmem:[#allocation4 + $0x6c] sm:$0xf0]  ;;  %v2161_v23 = vor.u32 %v1876_v15, %v1747_v14 }
  0x2d   :  { %272 = vmatmul.bf16.vlgmr.msra.gmra.mxu0 %v58_v42  ;;  %v53_v20 = vld [vmem:[%s2619_s0 + $0x18] sm:$0xff]  ;;  %v1869_v21 = vld [vmem:[#allocation4 + $0x64] sm:$0xf]  ;;  %v1725_v22 = vld [vmem:[#allocation4 + $0x70] sm:$0xf0]  ;;  %v2165_v24 = vor.u32 %v1874_v13, %v1749_v17  ;;  %v2167_v25 = vor.u32 %v1871_v19, %v1723_v18 }
  0x2e   :  { %572 = vmatpush.bf16.msrb.mxu0 %v2116_v38  ;;  %301 = vmatmul.bf16.vlgmr.msra.gmra.mxu1 %v58_v42  ;;  %v1870_v26 = vld [vmem:[#allocation4 + $0x6c] sm:$0xf]  ;;  %v1731_v27 = vld [vmem:[#allocation4 + $0x68] sm:$0xf]  ;;  %v1872_v28 = vld [vmem:[#allocation4 + $0x74] sm:$0xf0]  ;;  %v59_v29 = vpack.c.bf16 %v53_v20, %v52_v10  ;;  %v2170_v30 = vor.u32 %v1869_v21, %v1725_v22 }
  0x2f   :  { %585 = vmatpush.bf16.msrb.mxu1 %v2118_v43  ;;  %330 = vmatmul.bf16.vlgmr.msra.gmra.mxu2 %v58_v42  ;;  %v1733_v31 = vld [vmem:[#allocation4 + $0x78] sm:$0xf0]  ;;  %v1707_v32 = vld [vmem:[#allocation4 + $0x40] sm:$0xf]  ;;  %v1867_v33 = vld [vmem:[#allocation4 + $0x4c] sm:$0xf0]  ;;  %v2173_v36 = vor.u32 %v1872_v28, %v1731_v27 }
  0x30   :  { %359 = vmatmul.bf16.vlgmr.msra.gmra.mxu3 %v58_v42  ;;  %598 = vmatpush.bf16.msrb.mxu2 %v2120_v49  ;;  %v1865_v34 = vld [vmem:[#allocation4 + $0x44] sm:$0xf]  ;;  %v1709_v35 = vld [vmem:[#allocation4 + $0x50] sm:$0xf0]  ;;  %v2177_v37 = vor.u32 %v1870_v26, %v1733_v31  ;;  %v2179_v39 = vor.u32 %v1867_v33, %v1707_v32  ;;  %v1866_v41 = vld [vmem:[#allocation4 + $0x4c] sm:$0xf] }
  0x31   :  { %611 = vmatpush.bf16.msrb.mxu3 %v2123_v50  ;;  %v2182_v40 = vor.u32 %v1865_v34, %v1709_v35  ;;  %v1717_v42 = vld [vmem:[#allocation4 + $0x58] sm:$0xf0]  ;;  %v1691_v44 = vld [vmem:[#allocation4 + $0x20] sm:$0xf]  ;;  %v1863_v45 = vld [vmem:[#allocation4 + $0x2c] sm:$0xf0] }
  0x32   :  { %573 = vmatpush.bf16.msrb.mxu0 %v2125_v51  ;;  %v1861_v46 = vld [vmem:[#allocation4 + $0x24] sm:$0xf]  ;;  %v2187_v47 = vor.u32 %v1866_v41, %v1717_v42  ;;  %v2189_v48 = vor.u32 %v1863_v45, %v1691_v44  ;;  %v1693_v52 = vld [vmem:[#allocation4 + $0x30] sm:$0xf0]  ;;  %v1715_v53 = vld [vmem:[#allocation4 + $0x48] sm:$0xf] }
  0x33   :  { %586 = vmatpush.bf16.msrb.mxu1 %v2128_v55  ;;  %v1868_v54 = vld [vmem:[#allocation4 + $0x54] sm:$0xf0]  ;;  %v2192_v56 = vor.u32 %v1861_v46, %v1693_v52  ;;  %v1862_v58 = vld [vmem:[#allocation4 + $0x2c] sm:$0xf]  ;;  %v1701_v59 = vld [vmem:[#allocation4 + $0x38] sm:$0xf0] }
  0x34   :  { %599 = vmatpush.bf16.msrb.mxu2 %v2131_v61  ;;  %v2194_v57 = vor.u32 %v1868_v54, %v1715_v53  ;;  %v1675_v60 = vld [vmem:[#allocation4] sm:$0xf]  ;;  %v1859_v0 = vld [vmem:[#allocation4 + $0xc] sm:$0xf0]  ;;  %v1857_v1 = vld [vmem:[#allocation4 + $0x4] sm:$0xf]  ;;  %v2199_v6 = vor.u32 %v1862_v58, %v1701_v59 }
  0x35   :  { %612 = vmatpush.bf16.msrb.mxu3 %v2135_v62  ;;  %v1677_v2 = vld [vmem:[#allocation4 + $0x10] sm:$0xf0]  ;;  %v1699_v4 = vld [vmem:[#allocation4 + $0x28] sm:$0xf]  ;;  %v1864_v5 = vld [vmem:[#allocation4 + $0x34] sm:$0xf0]  ;;  %v2201_v7 = vor.u32 %v1859_v0, %v1675_v60 }
  0x36   :  { %574 = vmatpush.bf16.msrb.mxu0 %v2137_v63  ;;  %v2203_v8 = vor.u32 %v1864_v5, %v1699_v4  ;;  %v1683_v10 = vld [vmem:[#allocation4 + $0x8] sm:$0xf]  ;;  %v1860_v13 = vld [vmem:[#allocation4 + $0x14] sm:$0xf0]  ;;  %v2206_v14 = vor.u32 %v1857_v1, %v1677_v2  ;;  %v1858_v15 = vld [vmem:[#allocation4 + $0xc] sm:$0xf] }
  0x37   :  { %587 = vmatpush.bf16.msrb.mxu1 %v2140_v3  ;;  %v1685_v17 = vld [vmem:[#allocation4 + $0x18] sm:$0xf0]  ;;  %v54_v18 = vld [vmem:[%s2619_s0 + $0x20] sm:$0xff]  ;;  %v55_v19 = vld [vmem:[%s2619_s0 + $0x28] sm:$0xff]  ;;  %v2215_v20 = vor.u32 %v1860_v13, %v1683_v10 }
  0x38   :  { %600 = vmatpush.bf16.msrb.mxu2 %v2143_v9  ;;  %v2219_v21 = vor.u32 %v1858_v15, %v1685_v17  ;;  %v60_v22 = vpack.c.bf16 %v55_v19, %v54_v18  ;;  %v56_v26 = vld [vmem:[%s2619_s0 + $0x30] sm:$0xff]  ;;  %v57_v27 = vld [vmem:[%s2619_s0 + $0x38] sm:$0xff]  ;;  %v94_v33 = vld [vmem:[%s2622_s3] sm:$0xf] }
  0x39   :  { %613 = vmatpush.bf16.msrb.mxu3 %v2150_v11  ;;  %v61_v28 = vpack.c.bf16 %v57_v27, %v56_v26  ;;  %v96_v34 = vperm.slane %v94_v33, 0  ;;  %v97_v41 = vperm.slane %v94_v33, 1  ;;  %v2305_v53 = vperm.slane %v94_v33, 2 }
  0x3a   :  { %575 = vmatpush.bf16.msrb.mxu0 %v2152_v12  ;;  %v2307_v54 = vperm.slane %v94_v33, 3 }
  0x3b   :  { %588 = vmatpush.bf16.msrb.mxu1 %v2155_v16 }
  0x3c   :  { %601 = vmatpush.bf16.msrb.mxu2 %v2161_v23 }
  0x3d   :  { %614 = vmatpush.bf16.msrb.mxu3 %v2165_v24  ;;  %277 = vmatmul.bf16.gmra.mxu0 %v59_v29 }
  0x3e   :  { %576 = vmatpush.bf16.msrb.mxu0 %v2167_v25  ;;  %306 = vmatmul.bf16.gmra.mxu1 %v59_v29 }
  0x3f   :  { %589 = vmatpush.bf16.msrb.mxu1 %v2170_v30  ;;  %335 = vmatmul.bf16.gmra.mxu2 %v59_v29 }
  0x40   :  { %364 = vmatmul.bf16.gmra.mxu3 %v59_v29  ;;  %602 = vmatpush.bf16.msrb.mxu2 %v2173_v36  ;;  %v2078_v29 = vmov 0  }
  0x41   :  { %615 = vmatpush.bf16.msrb.mxu3 %v2177_v37 }
  0x42   :  { %577 = vmatpush.bf16.msrb.mxu0 %v2179_v39 }
  0x43   :  { %590 = vmatpush.bf16.msrb.mxu1 %v2182_v40 }
  0x44   :  { %603 = vmatpush.bf16.msrb.mxu2 %v2194_v57 }
  0x45   :  { %616 = vmatpush.bf16.msrb.mxu3 %v2187_v47 }
  0x46   :  { %578 = vmatpush.bf16.msrb.mxu0 %v2189_v48 }
  0x47   :  { %591 = vmatpush.bf16.msrb.mxu1 %v2192_v56 }
  0x48   :  { %604 = vmatpush.bf16.msrb.mxu2 %v2203_v8 }
  0x49   :  { %617 = vmatpush.bf16.msrb.mxu3 %v2199_v6 }
  0x4a   :  { %579 = vmatpush.bf16.msrb.mxu0 %v2201_v7 }
  0x4b   :  { %592 = vmatpush.bf16.msrb.mxu1 %v2206_v14 }
  0x4c   :  { %605 = vmatpush.bf16.msrb.mxu2 %v2215_v20 }
  0x4d   :  { %618 = vmatpush.bf16.msrb.mxu3 %v2219_v21  ;;  %282 = vmatmul.bf16.gmra.mxu0 %v60_v22 }
  0x4e   :  { %693 = vmatpush.bf16.msra.mxu0 %v2116_v38  ;;  %311 = vmatmul.bf16.gmra.mxu1 %v60_v22 }
  0x4f   :  { %706 = vmatpush.bf16.msra.mxu1 %v2118_v43  ;;  %340 = vmatmul.bf16.gmra.mxu2 %v60_v22 }
  0x50   :  { %719 = vmatpush.bf16.msra.mxu2 %v2120_v49  ;;  %369 = vmatmul.bf16.gmra.mxu3 %v60_v22 }
  0x51   :  { %732 = vmatpush.bf16.msra.mxu3 %v2123_v50 }
  0x52   :  { %694 = vmatpush.bf16.msra.mxu0 %v2125_v51 }
  0x53   :  { %707 = vmatpush.bf16.msra.mxu1 %v2128_v55 }
  0x54   :  { %720 = vmatpush.bf16.msra.mxu2 %v2131_v61 }
  0x55   :  { %733 = vmatpush.bf16.msra.mxu3 %v2135_v62 }
  0x56   :  { %695 = vmatpush.bf16.msra.mxu0 %v2137_v63 }
  0x57   :  { %708 = vmatpush.bf16.msra.mxu1 %v2140_v3 }
  0x58   :  { %721 = vmatpush.bf16.msra.mxu2 %v2143_v9 }
  0x59   :  { %734 = vmatpush.bf16.msra.mxu3 %v2150_v11 }
  0x5a   :  { %696 = vmatpush.bf16.msra.mxu0 %v2152_v12 }
  0x5b   :  { %709 = vmatpush.bf16.msra.mxu1 %v2155_v16 }
  0x5c   :  { %722 = vmatpush.bf16.msra.mxu2 %v2161_v23 }
  0x5d   :  { %735 = vmatpush.bf16.msra.mxu3 %v2165_v24  ;;  %287 = vmatmul.bf16.gmra.mxu0 %v61_v28 }
  0x5e   :  { %697 = vmatpush.bf16.msra.mxu0 %v2167_v25  ;;  %316 = vmatmul.bf16.gmra.mxu1 %v61_v28 }
  0x5f   :  { %710 = vmatpush.bf16.msra.mxu1 %v2170_v30  ;;  %345 = vmatmul.bf16.gmra.mxu2 %v61_v28 }
  0x60   :  { %723 = vmatpush.bf16.msra.mxu2 %v2173_v36  ;;  %374 = vmatmul.bf16.gmra.mxu3 %v61_v28 }
  0x61   :  { %736 = vmatpush.bf16.msra.mxu3 %v2177_v37 }
  0x62   :  { %698 = vmatpush.bf16.msra.mxu0 %v2179_v39 }
  0x63   :  { %711 = vmatpush.bf16.msra.mxu1 %v2182_v40 }
  0x64   :  { %724 = vmatpush.bf16.msra.mxu2 %v2194_v57 }
  0x65   :  { %737 = vmatpush.bf16.msra.mxu3 %v2187_v47 }
  0x66   :  { %699 = vmatpush.bf16.msra.mxu0 %v2189_v48 }
  0x67   :  { %712 = vmatpush.bf16.msra.mxu1 %v2192_v56 }
  0x68   :  { %725 = vmatpush.bf16.msra.mxu2 %v2203_v8 }
  0x69   :  { %738 = vmatpush.bf16.msra.mxu3 %v2199_v6 }
  0x6a   :  { %700 = vmatpush.bf16.msra.mxu0 %v2201_v7 }
  0x6b   :  { %713 = vmatpush.bf16.msra.mxu1 %v2206_v14 }
  0x6c   :  { %726 = vmatpush.bf16.msra.mxu2 %v2215_v20 }
  0x6d   :  { %739 = vmatpush.bf16.msra.mxu3 %v2219_v21  ;;  %580 = vmatmul.bf16.vlgmr.msrb.gmra.mxu0 %v2078_v29 }
  0x6e   :  { %593 = vmatmul.bf16.vlgmr.msrb.gmra.mxu1 %v2078_v29  ;;  %814 = vmatpush.bf16.msrb.mxu0 %v2116_v38 }
  0x6f   :  { %606 = vmatmul.bf16.vlgmr.msrb.gmra.mxu2 %v2078_v29  ;;  %827 = vmatpush.bf16.msrb.mxu1 %v2118_v43 }
  0x70   :  { %619 = vmatmul.bf16.vlgmr.msrb.gmra.mxu3 %v2078_v29  ;;  %840 = vmatpush.bf16.msrb.mxu2 %v2120_v49 }
  0x71   :  { %853 = vmatpush.bf16.msrb.mxu3 %v2123_v50 }
  0x72   :  { %815 = vmatpush.bf16.msrb.mxu0 %v2125_v51 }
  0x73   :  { %828 = vmatpush.bf16.msrb.mxu1 %v2128_v55 }
  0x74   :  { %841 = vmatpush.bf16.msrb.mxu2 %v2131_v61 }
  0x75   :  { %854 = vmatpush.bf16.msrb.mxu3 %v2135_v62 }
  0x76   :  { %816 = vmatpush.bf16.msrb.mxu0 %v2137_v63 }
  0x77   :  { %829 = vmatpush.bf16.msrb.mxu1 %v2140_v3 }
  0x78   :  { %842 = vmatpush.bf16.msrb.mxu2 %v2143_v9 }
  0x79   :  { %855 = vmatpush.bf16.msrb.mxu3 %v2150_v11 }
  0x7a   :  { %817 = vmatpush.bf16.msrb.mxu0 %v2152_v12 }
  0x7b   :  { %830 = vmatpush.bf16.msrb.mxu1 %v2155_v16 }
  0x7c   :  { %843 = vmatpush.bf16.msrb.mxu2 %v2161_v23 }
  0x7d   :  { %856 = vmatpush.bf16.msrb.mxu3 %v2165_v24 }
  0x7e   :  { %818 = vmatpush.bf16.msrb.mxu0 %v2167_v25 }
  0x7f   :  { %831 = vmatpush.bf16.msrb.mxu1 %v2170_v30 }
  0x80   :  { %844 = vmatpush.bf16.msrb.mxu2 %v2173_v36 }
  0x81   :  { %857 = vmatpush.bf16.msrb.mxu3 %v2177_v37 }
  0x82   :  { %819 = vmatpush.bf16.msrb.mxu0 %v2179_v39 }
  0x83   :  { %832 = vmatpush.bf16.msrb.mxu1 %v2182_v40 }
  0x84   :  { %845 = vmatpush.bf16.msrb.mxu2 %v2194_v57 }
  0x85   :  { %858 = vmatpush.bf16.msrb.mxu3 %v2187_v47 }
  0x86   :  { %820 = vmatpush.bf16.msrb.mxu0 %v2189_v48 }
  0x87   :  { %833 = vmatpush.bf16.msrb.mxu1 %v2192_v56 }
  0x88   :  { %846 = vmatpush.bf16.msrb.mxu2 %v2203_v8 }
  0x89   :  { %859 = vmatpush.bf16.msrb.mxu3 %v2199_v6 }
  0x8a   :  { %821 = vmatpush.bf16.msrb.mxu0 %v2201_v7 }
  0x8b   :  { %834 = vmatpush.bf16.msrb.mxu1 %v2206_v14 }
  0x8c   :  { %847 = vmatpush.bf16.msrb.mxu2 %v2215_v20 }
  0x8d   :  { %860 = vmatpush.bf16.msrb.mxu3 %v2219_v21 }
  0xaa   :  { %v273_v31 = vpop.f32.mrf.mxu0 }
  0xab   :  { %v302_v32 = vpop.f32.mrf.mxu1 }
  0xb2   :  { %v2297_v35 = vpop.f32.mrf.mxu2  ;;  %v275_v44 = vpop.f32.mrf.mxu0 }
  0xb3   :  { %v2299_v42 = vpop.f32.mrf.mxu3  ;;  %v2301_v45 = vadd.f32 %v275_v44, %v96_v34  ;;  %v304_v46 = vpop.f32.mrf.mxu1 }
  0xb4   :  { %v2303_v52 = vadd.f32 %v304_v46, %v97_v41 }
  0xba   :  { %v333_v58 = vpop.f32.mrf.mxu2  ;;  %v278_v0 = vpop.f32.mrf.mxu0 }
  0xbb   :  { %v2310_v59 = vadd.f32 %v333_v58, %v2305_v53  ;;  %v362_v60 = vpop.f32.mrf.mxu3  ;;  %v2315_v2 = vadd.f32 %v278_v0, %v96_v34  ;;  %v307_v4 = vpop.f32.mrf.mxu1 }
  0xbc   :  { %v2313_v1 = vadd.f32 %v362_v60, %v2307_v54  ;;  %v2317_v5 = vadd.f32 %v307_v4, %v97_v41 }
  0xc2   :  { %v336_v10 = vpop.f32.mrf.mxu2  ;;  %v280_v17 = vpop.f32.mrf.mxu0 }
  0xc3   :  { %v2320_v13 = vadd.f32 %v336_v10, %v2305_v53  ;;  %v365_v15 = vpop.f32.mrf.mxu3  ;;  %v2325_v19 = vadd.f32 %v280_v17, %v96_v34  ;;  %v309_v22 = vpop.f32.mrf.mxu1 }
  0xc4   :  { %v2323_v18 = vadd.f32 %v365_v15, %v2307_v54  ;;  %v2327_v26 = vadd.f32 %v309_v22, %v97_v41 }
  0xc5   :  { %2624 = vst [vmem:[#allocation8_spill] sm:$0xff] %v2320_v13 }
  0xc6   :  { %2625 = vst [vmem:[#allocation9_spill] sm:$0xff] %v2325_v19 }
  0xc7   :  { %2626 = vst [vmem:[#allocation10_spill] sm:$0xff] %v2327_v26 }
  0xca   :  { %v338_v27 = vpop.f32.mrf.mxu2  ;;  %v283_v33 = vpop.f32.mrf.mxu0 }
  0xcb   :  { %v2330_v28 = vadd.f32 %v338_v27, %v2305_v53  ;;  %v367_v29 = vpop.f32.mrf.mxu3  ;;  %v2335_v46 = vadd.f32 %v283_v33, %v96_v34  ;;  %v312_v58 = vpop.f32.mrf.mxu1 }
  0xcc   :  { %v2333_v44 = vadd.f32 %v367_v29, %v2307_v54  ;;  %v2337_v60 = vadd.f32 %v312_v58, %v97_v41 }
  0xcd   :  { %2627 = vst [vmem:[#allocation11_spill] sm:$0xff] %v2330_v28 }
  0xce   :  { %2628 = vst [vmem:[#allocation12_spill] sm:$0xff] %v2333_v44 }
  0xcf   :  { %2629 = vst [vmem:[#allocation13_spill] sm:$0xff] %v2335_v46 }
  0xd0   :  { %2630 = vst [vmem:[#allocation14_spill] sm:$0xff] %v2337_v60 }
  0xd2   :  { %v341_v0 = vpop.f32.mrf.mxu2  ;;  %v285_v15 = vpop.f32.mrf.mxu0 }
  0xd3   :  { %v2340_v4 = vadd.f32 %v341_v0, %v2305_v53  ;;  %v370_v10 = vpop.f32.mrf.mxu3  ;;  %v2345_v22 = vadd.f32 %v285_v15, %v96_v34  ;;  %v314_v27 = vpop.f32.mrf.mxu1 }
  0xd4   :  { %v2343_v17 = vadd.f32 %v370_v10, %v2307_v54  ;;  %v2347_v28 = vadd.f32 %v314_v27, %v97_v41 }
  0xd5   :  { %2631 = vst [vmem:[#allocation15_spill] sm:$0xff] %v2340_v4 }
  0xd6   :  { %2632 = vst [vmem:[#allocation16_spill] sm:$0xff] %v2343_v17 }
  0xd7   :  { %2633 = vst [vmem:[#allocation17_spill] sm:$0xff] %v2345_v22 }
  0xd8   :  { %2634 = vst [vmem:[#allocation18_spill] sm:$0xff] %v2347_v28 }
  0xda   :  { %v343_v29 = vpop.f32.mrf.mxu2  ;;  %v288_v60 = vpop.f32.mrf.mxu0 }
  0xdb   :  { %v2350_v33 = vadd.f32 %v343_v29, %v2305_v53  ;;  %v372_v58 = vpop.f32.mrf.mxu3  ;;  %v2355_v0 = vadd.f32 %v288_v60, %v96_v34  ;;  %v317_v4 = vpop.f32.mrf.mxu1 }
  0xdc   :  { %v2353_v46 = vadd.f32 %v372_v58, %v2307_v54  ;;  %v2357_v44 = vadd.f32 %v317_v4, %v97_v41  ;;  %v274_v58 = vadd.f32 %v273_v31, %v96_v34  ;;  %v361_v31 = vadd.f32 %v2299_v42, %v2307_v54 }
  0xdd   :  { %2635 = vst [vmem:[#allocation19_spill] sm:$0xff] %v2350_v33 }
  0xde   :  { %2636 = vst [vmem:[#allocation20_spill] sm:$0xff] %v2353_v46 }
  0xdf   :  { %2637 = vst [vmem:[#allocation21_spill] sm:$0xff] %v2355_v0  ;;  %v303_v0 = vadd.f32 %v302_v32, %v97_v41 }
  0xe0   :  { %2638 = vst [vmem:[#allocation22_spill] sm:$0xff] %v2357_v44 }
  0xe2   :  { %v346_v10 = vpop.f32.mrf.mxu2  ;;  %v290_v28 = vpop.f32.mrf.mxu0 }
  0xe3   :  { %v2360_v15 = vadd.f32 %v346_v10, %v2305_v53  ;;  %v375_v27 = vpop.f32.mrf.mxu3  ;;  %v2365_v29 = vadd.f32 %v290_v28, %v96_v34  ;;  %v319_v33 = vpop.f32.mrf.mxu1 }
  0xe4   :  { %v2363_v22 = vadd.f32 %v375_v27, %v2307_v54  ;;  %v2367_v17 = vadd.f32 %v319_v33, %v97_v41 }
  0xe5   :  { %2639 = vst [vmem:[#allocation23_spill] sm:$0xff] %v2360_v15 }
  0xe6   :  { %2640 = vst [vmem:[#allocation24_spill] sm:$0xff] %v2363_v22 }
  0xe7   :  { %2641 = vst [vmem:[#allocation25_spill] sm:$0xff] %v2365_v29 }
  0xe8   :  { %2642 = vst [vmem:[#allocation26_spill] sm:$0xff] %v2367_v17 }
  0xea   :  { %v348_v60 = vpop.f32.mrf.mxu2  ;;  %v581_v46 = vpop.f32.mrf.mxu0 }
  0xeb   :  { %v2370_v4 = vadd.f32 %v348_v60, %v2305_v53  ;;  %v377_v44 = vpop.f32.mrf.mxu3  ;;  %v624_v15 = vadd.f32 %v581_v46, %v274_v58  ;;  %v594_v26 = vpop.f32.mrf.mxu1 }
  0xec   :  { %v2373_v10 = vadd.f32 %v377_v44, %v2307_v54  ;;  %v625_v27 = vadd.f32 %v594_v26, %v303_v0 }
  0xed   :  { %2643 = vst [vmem:[#allocation27_spill] sm:$0xff] %v2370_v4  ;;  %v1801_v22 = vmul.f32 -1.442695, %v624_v15 }
  0xee   :  { %2644 = vst [vmem:[#allocation28_spill] sm:$0xff] %v2373_v10  ;;  %v1802_v28 = vmul.f32 -1.442695, %v625_v27 }
  0xef   :  { %1894 = vpow2.f32 %v1801_v22  ;;  %v332_v22 = vadd.f32 %v2297_v35, %v2305_v53 }
  0xf0   :  { %1896 = vpow2.f32 %v1802_v28 }
  0xf2   :  { %v607_v34 = vpop.f32.mrf.mxu2  ;;  %v583_v41 = vpop.f32.mrf.mxu0 }
  0xf3   :  { %v620_v32 = vpop.f32.mrf.mxu3  ;;  %v596_v60 = vpop.f32.mrf.mxu1  ;;  %v626_v54 = vadd.f32 %v607_v34, %v332_v22 }
  0xf4   :  { %v627_v33 = vadd.f32 %v620_v32, %v361_v31 }
  0xf5   :  { %v1895_v4 = vpop.eup %1894 }
  0xf6   :  { %v1803_v17 = vmul.f32 -1.442695, %v627_v33  ;;  %v1897_v29 = vpop.eup %1896  ;;  %v631_v44 = vadd.f32 1.0, %v1895_v4 }
  0xf7   :  { %v650_v10 = vadd.f32 1.0, %v1897_v29 }
  0xf8   :  { %1898 = vpow2.f32 %v1803_v17  ;;  %v643_v4 = vand.u32 2147483648, %v631_v44  ;;  %v641_v41 = vand.u32 2147483647, %v631_v44  ;;  %vm637_vm2 = vweird.f32 %v631_v44 }
  0xf9   :  { %1900 = vrcp.f32 %v631_v44  ;;  %v662_v17 = vand.u32 2147483648, %v650_v10  ;;  %v660_v60 = vand.u32 2147483647, %v650_v10  ;;  %vm656_vm3 = vweird.f32 %v650_v10 }
  0xfa   :  { %1902 = vrcp.f32 %v650_v10  ;;  %v609_v26 = vpop.f32.mrf.mxu2  ;;  %v644_v34 = vor.u32 1.1754944e-38, %v643_v4  ;;  %vm642_vm5 = vcmp.eq.f32.partialorder %v641_v41, 8.507059e+37 }
  0xfb   :  { %v622_v46 = vpop.f32.mrf.mxu3  ;;  %vm661_vm7 = vcmp.eq.f32.partialorder %v660_v60, 8.507059e+37 }
  0xfc   :  { %v663_v46 = vor.u32 1.1754944e-38, %v662_v17 }
  0xfe   :  { %v1899_v0 = vpop.eup %1898 }
  0xff   :  { %v1901_v42 = vpop.eup %1900  ;;  %v670_v15 = vadd.f32 1.0, %v1899_v0 }
 0x100   :  { %v1903_v58 = vpop.eup %1902  ;;  %v633_v27 = vmul.f32 %v1901_v42, %v631_v44  ;;  %vm638_vm0 = vweird.f32 %v1901_v42 }
 0x101   :  { %v652_v28 = vmul.f32 %v1903_v58, %v650_v10  ;;  %1904 = vrcp.f32 %v670_v15  ;;  %vm657_vm1 = vweird.f32 %v1903_v58  ;;  %vm639_vm4 = vmor %vm637_vm2, %vm638_vm0  ;;  %v682_v4 = vand.u32 2147483648, %v670_v15 }
 0x102   :  { %v634_v31 = vsub.f32 1.0, %v633_v27  ;;  %1906 = vtanh.f32 %v626_v54  ;;  %vm658_vm6 = vmor %vm656_vm3, %vm657_vm1  ;;  %vm676_vm9 = vweird.f32 %v670_v15 }
 0x103   :  { %v653_v32 = vsub.f32 1.0, %v652_v28  ;;  %v683_v41 = vor.u32 1.1754944e-38, %v682_v4 }
 0x104   :  { %v635_v29 = vmul.f32 %v1901_v42, %v634_v31 }
 0x105   :  { %v654_v33 = vmul.f32 %v1903_v58, %v653_v32 }
 0x106   :  { %v636_v35 = vadd.f32 %v1901_v42, %v635_v29 }
 0x107   :  { %v1905_v53 = vpop.eup %1904  ;;  %v655_v26 = vadd.f32 %v1903_v58, %v654_v33 }
 0x108   :  { %v640_v22 = vsel %vm639_vm4, %v1901_v42, %v636_v35  ;;  %v672_v0 = vmul.f32 %v1905_v53, %v670_v15  ;;  %v1907_v54 = vpop.eup %1906  ;;  %vm677_vm8 = vweird.f32 %v1905_v53  ;;  %v680_v42 = vand.u32 2147483647, %v670_v15 }
 0x109   :  { %v645_v27 = vsel %vm642_vm5, %v644_v34, %v640_v22  ;;  %v659_v28 = vsel %vm658_vm6, %v1903_v58, %v655_v26  ;;  %vm678_vm10 = vmor %vm676_vm9, %vm677_vm8 }
 0x10a   :  { %v664_v31 = vsel %vm661_vm7, %v663_v46, %v659_v28  ;;  %v687_v32 = vmul.f32 %v1907_v54, %v645_v27  ;;  %v673_v19 = vsub.f32 1.0, %v672_v0  ;;  %vm681_vm11 = vcmp.eq.f32.partialorder %v680_v42, 8.507059e+37 }
 0x10b   :  { %v686_v13 = vmul.f32 0.0, %v664_v31 }
 0x10c   :  { %v674_v29 = vmul.f32 %v1905_v53, %v673_v19 }
 0x10d   :  { %v2379_v44 = vadd.f32 %v687_v32, %v686_v13 }
 0x10e   :  { %v675_v10 = vadd.f32 %v1905_v53, %v674_v29 }
 0x10f   :  { %1908 = vtanh.f32 %v2379_v44 }
 0x110   :  { %v679_v17 = vsel %vm678_vm10, %v1905_v53, %v675_v10 }
 0x111   :  { %v684_v33 = vsel %vm681_vm11, %v683_v41, %v679_v17 }
 0x115   :  { %v1909_v58 = vpop.eup %1908 }
 0x116   :  { %v690_v60 = vmul.f32 %v1909_v58, %v684_v33 }
 0x118   :  { %691 = vst [vmem:[%s2623_s4] sm:$0xff] %v690_v60  ;;  %v692_v13 = vpack.c.bf16 %v690_v60, %v690_v60 }
 0x11a   :  { %701 = vmatmul.bf16.vlgmr.msra.gmra.mxu0 %v692_v13  ;;  %714 = vmatmul.bf16.vlgmr.msra.gmra.mxu1 %v692_v13 }
 0x11b   :  { %727 = vmatmul.bf16.vlgmr.msra.gmra.mxu2 %v692_v13  ;;  %740 = vmatmul.bf16.vlgmr.msra.gmra.mxu3 %v692_v13 }
 0x11c   :  { %935 = vmatpush.bf16.msra.mxu0 %v2116_v38  ;;  %948 = vmatpush.bf16.msra.mxu1 %v2118_v43 }
 0x11d   :  { %961 = vmatpush.bf16.msra.mxu2 %v2120_v49  ;;  %974 = vmatpush.bf16.msra.mxu3 %v2123_v50 }
 0x120   :  { %936 = vmatpush.bf16.msra.mxu0 %v2125_v51  ;;  %949 = vmatpush.bf16.msra.mxu1 %v2128_v55 }
 0x121   :  { %962 = vmatpush.bf16.msra.mxu2 %v2131_v61  ;;  %975 = vmatpush.bf16.msra.mxu3 %v2135_v62 }
 0x124   :  { %937 = vmatpush.bf16.msra.mxu0 %v2137_v63  ;;  %950 = vmatpush.bf16.msra.mxu1 %v2140_v3 }
 0x125   :  { %963 = vmatpush.bf16.msra.mxu2 %v2143_v9  ;;  %976 = vmatpush.bf16.msra.mxu3 %v2150_v11 }
 0x128   :  { %938 = vmatpush.bf16.msra.mxu0 %v2152_v12  ;;  %951 = vmatpush.bf16.msra.mxu1 %v2155_v16 }
 0x129   :  { %964 = vmatpush.bf16.msra.mxu2 %v2161_v23  ;;  %977 = vmatpush.bf16.msra.mxu3 %v2165_v24 }
 0x12c   :  { %939 = vmatpush.bf16.msra.mxu0 %v2167_v25  ;;  %952 = vmatpush.bf16.msra.mxu1 %v2170_v30 }
 0x12d   :  { %965 = vmatpush.bf16.msra.mxu2 %v2173_v36  ;;  %978 = vmatpush.bf16.msra.mxu3 %v2177_v37 }
 0x130   :  { %940 = vmatpush.bf16.msra.mxu0 %v2179_v39  ;;  %953 = vmatpush.bf16.msra.mxu1 %v2182_v40 }
 0x131   :  { %966 = vmatpush.bf16.msra.mxu2 %v2194_v57  ;;  %979 = vmatpush.bf16.msra.mxu3 %v2187_v47 }
 0x134   :  { %941 = vmatpush.bf16.msra.mxu0 %v2189_v48  ;;  %954 = vmatpush.bf16.msra.mxu1 %v2192_v56 }
 0x135   :  { %967 = vmatpush.bf16.msra.mxu2 %v2203_v8  ;;  %980 = vmatpush.bf16.msra.mxu3 %v2199_v6 }
 0x138   :  { %942 = vmatpush.bf16.msra.mxu0 %v2201_v7  ;;  %955 = vmatpush.bf16.msra.mxu1 %v2206_v14 }
 0x139   :  { %968 = vmatpush.bf16.msra.mxu2 %v2215_v20  ;;  %981 = vmatpush.bf16.msra.mxu3 %v2219_v21 }
 0x197   :  { %v702_v19 = vpop.f32.mrf.mxu0  ;;  %v715_v15 = vpop.f32.mrf.mxu1 }
 0x198   :  { %v745_v35 = vadd.f32 %v702_v19, %v2301_v45  ;;  %v746_v53 = vadd.f32 %v715_v15, %v2303_v52 }
 0x19a   :  { %v1804_v34 = vmul.f32 -1.442695, %v745_v35  ;;  %v1805_v26 = vmul.f32 -1.442695, %v746_v53 }
 0x19c   :  { %1910 = vpow2.f32 %v1804_v34 }
 0x19d   :  { %1912 = vpow2.f32 %v1805_v26 }
 0x19e   :  { %v728_v46 = vpop.f32.mrf.mxu2  ;;  %v741_v22 = vpop.f32.mrf.mxu3 }
 0x19f   :  { %v748_v0 = vadd.f32 %v741_v22, %v2313_v1  ;;  %v704_v54 = vpop.f32.mrf.mxu0  ;;  %v717_v27 = vpop.f32.mrf.mxu1  ;;  %v747_v41 = vadd.f32 %v728_v46, %v2310_v59 }
 0x1a1   :  { %v1806_v28 = vmul.f32 -1.442695, %v748_v0 }
 0x1a2   :  { %v1911_v31 = vpop.eup %1910 }
 0x1a3   :  { %v1913_v32 = vpop.eup %1912  ;;  %v752_v29 = vadd.f32 1.0, %v1911_v31  ;;  %1914 = vpow2.f32 %v1806_v28 }
 0x1a4   :  { %v771_v10 = vadd.f32 1.0, %v1913_v32 }
 0x1a5   :  { %1916 = vrcp.f32 %v752_v29  ;;  %v764_v19 = vand.u32 2147483648, %v752_v29  ;;  %v762_v53 = vand.u32 2147483647, %v752_v29  ;;  %vm758_vm14 = vweird.f32 %v752_v29 }
 0x1a6   :  { %1918 = vrcp.f32 %v771_v10  ;;  %v730_v45 = vpop.f32.mrf.mxu2  ;;  %v743_v52 = vpop.f32.mrf.mxu3  ;;  %v783_v15 = vand.u32 2147483648, %v771_v10  ;;  %v781_v26 = vand.u32 2147483647, %v771_v10  ;;  %vm777_vm15 = vweird.f32 %v771_v10 }
 0x1a7   :  { %v765_v59 = vor.u32 1.1754944e-38, %v764_v19  ;;  %vm763_vm2 = vcmp.eq.f32.partialorder %v762_v53, 8.507059e+37 }
 0x1a8   :  { %v784_v27 = vor.u32 1.1754944e-38, %v783_v15  ;;  %vm782_vm3 = vcmp.eq.f32.partialorder %v781_v26, 8.507059e+37 }
 0x1a9   :  { %v1915_v4 = vpop.eup %1914 }
 0x1aa   :  { %v791_v42 = vadd.f32 1.0, %v1915_v4 }
 0x1ab   :  { %v1917_v17 = vpop.eup %1916 }
 0x1ac   :  { %v1919_v58 = vpop.eup %1918  ;;  %v754_v33 = vmul.f32 %v1917_v17, %v752_v29  ;;  %1920 = vrcp.f32 %v791_v42  ;;  %vm759_vm12 = vweird.f32 %v1917_v17  ;;  %vm797_vm5 = vweird.f32 %v791_v42 }
 0x1ad   :  { %v773_v1 = vmul.f32 %v1919_v58, %v771_v10  ;;  %1922 = vtanh.f32 %v747_v41  ;;  %vm778_vm13 = vweird.f32 %v1919_v58  ;;  %vm760_vm0 = vmor %vm758_vm14, %vm759_vm12 }
 0x1ae   :  { %v755_v60 = vsub.f32 1.0, %v754_v33  ;;  %vm779_vm1 = vmor %vm777_vm15, %vm778_vm13 }
 0x1af   :  { %v774_v13 = vsub.f32 1.0, %v773_v1 }
 0x1b0   :  { %v756_v35 = vmul.f32 %v1917_v17, %v755_v60  ;;  %v803_v60 = vand.u32 2147483648, %v791_v42 }
 0x1b1   :  { %v775_v34 = vmul.f32 %v1919_v58, %v774_v13 }
 0x1b2   :  { %v1921_v22 = vpop.eup %1920  ;;  %v757_v0 = vadd.f32 %v1917_v17, %v756_v35  ;;  %v804_v19 = vor.u32 1.1754944e-38, %v803_v60 }
 0x1b3   :  { %v776_v46 = vadd.f32 %v1919_v58, %v775_v34  ;;  %v793_v54 = vmul.f32 %v1921_v22, %v791_v42  ;;  %v1923_v31 = vpop.eup %1922  ;;  %vm798_vm4 = vweird.f32 %v1921_v22 }
 0x1b4   :  { %v761_v28 = vsel %vm760_vm0, %v1917_v17, %v757_v0  ;;  %v801_v17 = vand.u32 2147483647, %v791_v42  ;;  %vm799_vm6 = vmor %vm797_vm5, %vm798_vm4 }
 0x1b5   :  { %v766_v32 = vsel %vm763_vm2, %v765_v59, %v761_v28  ;;  %v780_v45 = vsel %vm779_vm1, %v1919_v58, %v776_v46  ;;  %v794_v52 = vsub.f32 1.0, %v793_v54 }
 0x1b6   :  { %v785_v4 = vsel %vm782_vm3, %v784_v27, %v780_v45  ;;  %v808_v41 = vmul.f32 %v1923_v31, %v766_v32  ;;  %vm802_vm7 = vcmp.eq.f32.partialorder %v801_v17, 8.507059e+37 }
 0x1b7   :  { %v807_v33 = vmul.f32 %v785_v4, %v2379_v44  ;;  %v795_v1 = vmul.f32 %v1921_v22, %v794_v52 }
 0x1b9   :  { %v2422_v29 = vadd.f32 %v808_v41, %v807_v33  ;;  %v796_v10 = vadd.f32 %v1921_v22, %v795_v1 }
 0x1bb   :  { %1924 = vtanh.f32 %v2422_v29  ;;  %v800_v13 = vsel %vm799_vm6, %v1921_v22, %v796_v10  ;;  %v2645_v10 = vld [vmem:[#allocation8_spill] sm:$0xff] }
 0x1bc   :  { %v805_v15 = vsel %vm802_vm7, %v804_v19, %v800_v13 }
 0x1c1   :  { %v1925_v58 = vpop.eup %1924 }
 0x1c2   :  { %v811_v35 = vmul.f32 %v1925_v58, %v805_v15 }
 0x1c4   :  { %812 = vst [vmem:[%s2623_s4 + $0x8] sm:$0xff] %v811_v35  ;;  %v813_v44 = vpack.c.bf16 %v811_v35, %v811_v35 }
 0x1c6   :  { %822 = vmatmul.bf16.vlgmr.msrb.gmra.mxu0 %v813_v44  ;;  %835 = vmatmul.bf16.vlgmr.msrb.gmra.mxu1 %v813_v44 }
 0x1c7   :  { %848 = vmatmul.bf16.vlgmr.msrb.gmra.mxu2 %v813_v44  ;;  %861 = vmatmul.bf16.vlgmr.msrb.gmra.mxu3 %v813_v44 }
 0x1c8   :  { %1056 = vmatpush.bf16.msrb.mxu0 %v2116_v38  ;;  %1069 = vmatpush.bf16.msrb.mxu1 %v2118_v43 }
 0x1c9   :  { %1082 = vmatpush.bf16.msrb.mxu2 %v2120_v49  ;;  %1095 = vmatpush.bf16.msrb.mxu3 %v2123_v50 }
 0x1cc   :  { %1057 = vmatpush.bf16.msrb.mxu0 %v2125_v51  ;;  %1070 = vmatpush.bf16.msrb.mxu1 %v2128_v55 }
 0x1cd   :  { %1083 = vmatpush.bf16.msrb.mxu2 %v2131_v61  ;;  %1096 = vmatpush.bf16.msrb.mxu3 %v2135_v62 }
 0x1d0   :  { %1058 = vmatpush.bf16.msrb.mxu0 %v2137_v63  ;;  %1071 = vmatpush.bf16.msrb.mxu1 %v2140_v3 }
 0x1d1   :  { %1084 = vmatpush.bf16.msrb.mxu2 %v2143_v9  ;;  %1097 = vmatpush.bf16.msrb.mxu3 %v2150_v11 }
 0x1d4   :  { %1059 = vmatpush.bf16.msrb.mxu0 %v2152_v12  ;;  %1072 = vmatpush.bf16.msrb.mxu1 %v2155_v16 }
 0x1d5   :  { %1085 = vmatpush.bf16.msrb.mxu2 %v2161_v23  ;;  %1098 = vmatpush.bf16.msrb.mxu3 %v2165_v24 }
 0x1d8   :  { %1060 = vmatpush.bf16.msrb.mxu0 %v2167_v25  ;;  %1073 = vmatpush.bf16.msrb.mxu1 %v2170_v30 }
 0x1d9   :  { %1086 = vmatpush.bf16.msrb.mxu2 %v2173_v36  ;;  %1099 = vmatpush.bf16.msrb.mxu3 %v2177_v37 }
 0x1dc   :  { %1061 = vmatpush.bf16.msrb.mxu0 %v2179_v39  ;;  %1074 = vmatpush.bf16.msrb.mxu1 %v2182_v40 }
 0x1dd   :  { %1087 = vmatpush.bf16.msrb.mxu2 %v2194_v57  ;;  %1100 = vmatpush.bf16.msrb.mxu3 %v2187_v47 }
 0x1e0   :  { %1062 = vmatpush.bf16.msrb.mxu0 %v2189_v48  ;;  %1075 = vmatpush.bf16.msrb.mxu1 %v2192_v56 }
 0x1e1   :  { %1088 = vmatpush.bf16.msrb.mxu2 %v2203_v8  ;;  %1101 = vmatpush.bf16.msrb.mxu3 %v2199_v6 }
 0x1e4   :  { %1063 = vmatpush.bf16.msrb.mxu0 %v2201_v7  ;;  %1076 = vmatpush.bf16.msrb.mxu1 %v2206_v14 }
 0x1e5   :  { %1089 = vmatpush.bf16.msrb.mxu2 %v2215_v20  ;;  %1102 = vmatpush.bf16.msrb.mxu3 %v2219_v21 }
 0x243   :  { %v823_v42 = vpop.f32.mrf.mxu0  ;;  %v836_v53 = vpop.f32.mrf.mxu1 }
 0x244   :  { %v866_v34 = vadd.f32 %v823_v42, %v2315_v2  ;;  %v867_v26 = vadd.f32 %v836_v53, %v2317_v5 }
 0x246   :  { %v1807_v22 = vmul.f32 -1.442695, %v866_v34  ;;  %v1808_v0 = vmul.f32 -1.442695, %v867_v26 }
 0x248   :  { %1926 = vpow2.f32 %v1807_v22 }
 0x249   :  { %1928 = vpow2.f32 %v1808_v0 }
 0x24a   :  { %v849_v59 = vpop.f32.mrf.mxu2  ;;  %v862_v46 = vpop.f32.mrf.mxu3 }
 0x24b   :  { %v869_v54 = vadd.f32 %v862_v46, %v2323_v18  ;;  %v825_v27 = vpop.f32.mrf.mxu0  ;;  %v838_v28 = vpop.f32.mrf.mxu1  ;;  %v868_v60 = vadd.f32 %v849_v59, %v2645_v10 }
 0x24d   :  { %v1809_v31 = vmul.f32 -1.442695, %v869_v54 }
 0x24e   :  { %v1927_v32 = vpop.eup %1926 }
 0x24f   :  { %v1929_v45 = vpop.eup %1928  ;;  %v873_v52 = vadd.f32 1.0, %v1927_v32  ;;  %1930 = vpow2.f32 %v1809_v31 }
 0x250   :  { %v892_v4 = vadd.f32 1.0, %v1929_v45 }
 0x251   :  { %1932 = vrcp.f32 %v873_v52  ;;  %v885_v15 = vand.u32 2147483648, %v873_v52  ;;  %v883_v42 = vand.u32 2147483647, %v873_v52  ;;  %vm879_vm10 = vweird.f32 %v873_v52 }
 0x252   :  { %1934 = vrcp.f32 %v892_v4  ;;  %v851_v2 = vpop.f32.mrf.mxu2  ;;  %v864_v5 = vpop.f32.mrf.mxu3  ;;  %v904_v35 = vand.u32 2147483648, %v892_v4  ;;  %v902_v34 = vand.u32 2147483647, %v892_v4  ;;  %vm898_vm11 = vweird.f32 %v892_v4 }
 0x253   :  { %v886_v0 = vor.u32 1.1754944e-38, %v885_v15  ;;  %vm884_vm14 = vcmp.eq.f32.partialorder %v883_v42, 8.507059e+37  ;;  %v2647_v42 = vld [vmem:[#allocation10_spill] sm:$0xff] }
 0x254   :  { %v905_v54 = vor.u32 1.1754944e-38, %v904_v35  ;;  %vm903_vm15 = vcmp.eq.f32.partialorder %v902_v34, 8.507059e+37  ;;  %v2646_v35 = vld [vmem:[#allocation9_spill] sm:$0xff] }
 0x255   :  { %v1931_v41 = vpop.eup %1930 }
 0x256   :  { %v912_v33 = vadd.f32 1.0, %v1931_v41 }
 0x257   :  { %v1933_v1 = vpop.eup %1932 }
 0x258   :  { %v1935_v17 = vpop.eup %1934  ;;  %v875_v13 = vmul.f32 %v1933_v1, %v873_v52  ;;  %1936 = vrcp.f32 %v912_v33  ;;  %vm880_vm8 = vweird.f32 %v1933_v1  ;;  %vm918_vm1 = vweird.f32 %v912_v33 }
 0x259   :  { %v894_v18 = vmul.f32 %v1935_v17, %v892_v4  ;;  %1938 = vtanh.f32 %v868_v60  ;;  %vm899_vm9 = vweird.f32 %v1935_v17  ;;  %vm881_vm12 = vmor %vm879_vm10, %vm880_vm8  ;;  %v924_v60 = vand.u32 2147483648, %v912_v33 }
 0x25a   :  { %v876_v19 = vsub.f32 1.0, %v875_v13  ;;  %vm900_vm13 = vmor %vm898_vm11, %vm899_vm9 }
 0x25b   :  { %v895_v58 = vsub.f32 1.0, %v894_v18  ;;  %v925_v18 = vor.u32 1.1754944e-38, %v924_v60 }
 0x25c   :  { %v877_v44 = vmul.f32 %v1933_v1, %v876_v19 }
 0x25d   :  { %v896_v53 = vmul.f32 %v1935_v17, %v895_v58 }
 0x25e   :  { %v1937_v26 = vpop.eup %1936  ;;  %v878_v22 = vadd.f32 %v1933_v1, %v877_v44 }
 0x25f   :  { %v897_v59 = vadd.f32 %v1935_v17, %v896_v53  ;;  %v914_v46 = vmul.f32 %v1937_v26, %v912_v33  ;;  %v1939_v28 = vpop.eup %1938  ;;  %vm919_vm0 = vweird.f32 %v1937_v26 }
 0x260   :  { %v882_v27 = vsel %vm881_vm12, %v1933_v1, %v878_v22  ;;  %v922_v1 = vand.u32 2147483647, %v912_v33  ;;  %vm920_vm2 = vmor %vm918_vm1, %vm919_vm0 }
 0x261   :  { %v887_v31 = vsel %vm884_vm14, %v886_v0, %v882_v27  ;;  %v901_v32 = vsel %vm900_vm13, %v1935_v17, %v897_v59  ;;  %v915_v45 = vsub.f32 1.0, %v914_v46  ;;  %v2648_v59 = vld [vmem:[#allocation12_spill] sm:$0xff] }
 0x262   :  { %v906_v2 = vsel %vm903_vm15, %v905_v54, %v901_v32  ;;  %v929_v5 = vmul.f32 %v1939_v28, %v887_v31  ;;  %vm923_vm3 = vcmp.eq.f32.partialorder %v922_v1, 8.507059e+37  ;;  %v2649_v1 = vld [vmem:[#allocation11_spill] sm:$0xff] }
 0x263   :  { %v928_v41 = vmul.f32 %v906_v2, %v2422_v29  ;;  %v916_v10 = vmul.f32 %v1937_v26, %v915_v45 }
 0x265   :  { %v2465_v52 = vadd.f32 %v929_v5, %v928_v41  ;;  %v917_v4 = vadd.f32 %v1937_v26, %v916_v10 }
 0x267   :  { %1940 = vtanh.f32 %v2465_v52  ;;  %v921_v13 = vsel %vm920_vm2, %v1937_v26, %v917_v4 }
 0x268   :  { %v926_v19 = vsel %vm923_vm3, %v925_v18, %v921_v13 }
 0x26d   :  { %v1941_v17 = vpop.eup %1940 }
 0x26e   :  { %v932_v58 = vmul.f32 %v1941_v17, %v926_v19 }
 0x270   :  { %933 = vst [vmem:[%s2623_s4 + $0x10] sm:$0xff] %v932_v58  ;;  %v934_v29 = vpack.c.bf16 %v932_v58, %v932_v58 }
 0x272   :  { %943 = vmatmul.bf16.vlgmr.msra.gmra.mxu0 %v934_v29  ;;  %956 = vmatmul.bf16.vlgmr.msra.gmra.mxu1 %v934_v29 }
 0x273   :  { %969 = vmatmul.bf16.vlgmr.msra.gmra.mxu2 %v934_v29  ;;  %982 = vmatmul.bf16.vlgmr.msra.gmra.mxu3 %v934_v29 }
 0x274   :  { %1177 = vmatpush.bf16.msra.mxu0 %v2116_v38  ;;  %1190 = vmatpush.bf16.msra.mxu1 %v2118_v43 }
 0x275   :  { %1203 = vmatpush.bf16.msra.mxu2 %v2120_v49  ;;  %1216 = vmatpush.bf16.msra.mxu3 %v2123_v50 }
 0x278   :  { %1178 = vmatpush.bf16.msra.mxu0 %v2125_v51  ;;  %1191 = vmatpush.bf16.msra.mxu1 %v2128_v55 }
 0x279   :  { %1204 = vmatpush.bf16.msra.mxu2 %v2131_v61  ;;  %1217 = vmatpush.bf16.msra.mxu3 %v2135_v62 }
 0x27c   :  { %1179 = vmatpush.bf16.msra.mxu0 %v2137_v63  ;;  %1192 = vmatpush.bf16.msra.mxu1 %v2140_v3 }
 0x27d   :  { %1205 = vmatpush.bf16.msra.mxu2 %v2143_v9  ;;  %1218 = vmatpush.bf16.msra.mxu3 %v2150_v11 }
 0x280   :  { %1180 = vmatpush.bf16.msra.mxu0 %v2152_v12  ;;  %1193 = vmatpush.bf16.msra.mxu1 %v2155_v16 }
 0x281   :  { %1206 = vmatpush.bf16.msra.mxu2 %v2161_v23  ;;  %1219 = vmatpush.bf16.msra.mxu3 %v2165_v24 }
 0x284   :  { %1181 = vmatpush.bf16.msra.mxu0 %v2167_v25  ;;  %1194 = vmatpush.bf16.msra.mxu1 %v2170_v30 }
 0x285   :  { %1207 = vmatpush.bf16.msra.mxu2 %v2173_v36  ;;  %1220 = vmatpush.bf16.msra.mxu3 %v2177_v37 }
 0x288   :  { %1182 = vmatpush.bf16.msra.mxu0 %v2179_v39  ;;  %1195 = vmatpush.bf16.msra.mxu1 %v2182_v40 }
 0x289   :  { %1208 = vmatpush.bf16.msra.mxu2 %v2194_v57  ;;  %1221 = vmatpush.bf16.msra.mxu3 %v2187_v47 }
 0x28c   :  { %1183 = vmatpush.bf16.msra.mxu0 %v2189_v48  ;;  %1196 = vmatpush.bf16.msra.mxu1 %v2192_v56 }
 0x28d   :  { %1209 = vmatpush.bf16.msra.mxu2 %v2203_v8  ;;  %1222 = vmatpush.bf16.msra.mxu3 %v2199_v6 }
 0x290   :  { %1184 = vmatpush.bf16.msra.mxu0 %v2201_v7  ;;  %1197 = vmatpush.bf16.msra.mxu1 %v2206_v14 }
 0x291   :  { %1210 = vmatpush.bf16.msra.mxu2 %v2215_v20  ;;  %1223 = vmatpush.bf16.msra.mxu3 %v2219_v21 }
 0x2ef   :  { %v944_v33 = vpop.f32.mrf.mxu0  ;;  %v957_v15 = vpop.f32.mrf.mxu1 }
 0x2f0   :  { %v987_v44 = vadd.f32 %v944_v33, %v2646_v35  ;;  %v988_v53 = vadd.f32 %v957_v15, %v2647_v42 }
 0x2f2   :  { %v1810_v34 = vmul.f32 -1.442695, %v987_v44  ;;  %v1811_v26 = vmul.f32 -1.442695, %v988_v53 }
 0x2f4   :  { %1942 = vpow2.f32 %v1810_v34 }
 0x2f5   :  { %1944 = vpow2.f32 %v1811_v26 }
 0x2f6   :  { %v970_v22 = vpop.f32.mrf.mxu2  ;;  %v983_v0 = vpop.f32.mrf.mxu3 }
 0x2f7   :  { %v990_v46 = vadd.f32 %v983_v0, %v2648_v59  ;;  %v946_v54 = vpop.f32.mrf.mxu0  ;;  %v959_v27 = vpop.f32.mrf.mxu1  ;;  %v989_v13 = vadd.f32 %v970_v22, %v2649_v1 }
 0x2f9   :  { %v1812_v28 = vmul.f32 -1.442695, %v990_v46 }
 0x2fa   :  { %v1943_v31 = vpop.eup %1942 }
 0x2fb   :  { %v1945_v32 = vpop.eup %1944  ;;  %v994_v45 = vadd.f32 1.0, %v1943_v31  ;;  %1946 = vpow2.f32 %v1812_v28 }
 0x2fc   :  { %v1013_v2 = vadd.f32 1.0, %v1945_v32 }
 0x2fd   :  { %1948 = vrcp.f32 %v994_v45  ;;  %v1006_v33 = vand.u32 2147483648, %v994_v45  ;;  %v1004_v44 = vand.u32 2147483647, %v994_v45  ;;  %vm1000_vm6 = vweird.f32 %v994_v45 }
 0x2fe   :  { %1950 = vrcp.f32 %v1013_v2  ;;  %v972_v5 = vpop.f32.mrf.mxu2  ;;  %v985_v41 = vpop.f32.mrf.mxu3  ;;  %v1025_v15 = vand.u32 2147483648, %v1013_v2  ;;  %v1023_v53 = vand.u32 2147483647, %v1013_v2  ;;  %vm1019_vm7 = vweird.f32 %v1013_v2 }
 0x2ff   :  { %v1007_v22 = vor.u32 1.1754944e-38, %v1006_v33  ;;  %vm1005_vm10 = vcmp.eq.f32.partialorder %v1004_v44, 8.507059e+37  ;;  %v2651_v44 = vld [vmem:[#allocation14_spill] sm:$0xff] }
 0x300   :  { %v1026_v46 = vor.u32 1.1754944e-38, %v1025_v15  ;;  %vm1024_vm11 = vcmp.eq.f32.partialorder %v1023_v53, 8.507059e+37  ;;  %v2650_v15 = vld [vmem:[#allocation13_spill] sm:$0xff] }
 0x301   :  { %v1947_v10 = vpop.eup %1946 }
 0x302   :  { %v1033_v4 = vadd.f32 1.0, %v1947_v10 }
 0x303   :  { %v1949_v60 = vpop.eup %1948 }
 0x304   :  { %v1951_v18 = vpop.eup %1950  ;;  %v996_v17 = vmul.f32 %v1949_v60, %v994_v45  ;;  %1952 = vrcp.f32 %v1033_v4  ;;  %vm1001_vm4 = vweird.f32 %v1949_v60  ;;  %vm1039_vm13 = vweird.f32 %v1033_v4 }
 0x305   :  { %v1015_v19 = vmul.f32 %v1951_v18, %v1013_v2  ;;  %1954 = vtanh.f32 %v989_v13  ;;  %vm1020_vm5 = vweird.f32 %v1951_v18  ;;  %vm1002_vm8 = vmor %vm1000_vm6, %vm1001_vm4  ;;  %v1045_v13 = vand.u32 2147483648, %v1033_v4 }
 0x306   :  { %v997_v58 = vsub.f32 1.0, %v996_v17  ;;  %vm1021_vm9 = vmor %vm1019_vm7, %vm1020_vm5 }
 0x307   :  { %v1016_v29 = vsub.f32 1.0, %v1015_v19  ;;  %v1046_v19 = vor.u32 1.1754944e-38, %v1045_v13 }
 0x308   :  { %v998_v35 = vmul.f32 %v1949_v60, %v997_v58 }
 0x309   :  { %v1017_v42 = vmul.f32 %v1951_v18, %v1016_v29 }
 0x30a   :  { %v1953_v34 = vpop.eup %1952  ;;  %v999_v26 = vadd.f32 %v1949_v60, %v998_v35 }
 0x30b   :  { %v1018_v0 = vadd.f32 %v1951_v18, %v1017_v42  ;;  %v1035_v59 = vmul.f32 %v1953_v34, %v1033_v4  ;;  %v1955_v27 = vpop.eup %1954  ;;  %vm1040_vm12 = vweird.f32 %v1953_v34 }
 0x30c   :  { %v1003_v54 = vsel %vm1002_vm8, %v1949_v60, %v999_v26  ;;  %v1043_v60 = vand.u32 2147483647, %v1033_v4  ;;  %vm1041_vm14 = vmor %vm1039_vm13, %vm1040_vm12 }
 0x30d   :  { %v1008_v28 = vsel %vm1005_vm10, %v1007_v22, %v1003_v54  ;;  %v1022_v31 = vsel %vm1021_vm9, %v1951_v18, %v1018_v0  ;;  %v1036_v32 = vsub.f32 1.0, %v1035_v59  ;;  %v2652_v0 = vld [vmem:[#allocation16_spill] sm:$0xff] }
 0x30e   :  { %v1027_v5 = vsel %vm1024_vm11, %v1026_v46, %v1022_v31  ;;  %v1050_v41 = vmul.f32 %v1955_v27, %v1008_v28  ;;  %vm1044_vm15 = vcmp.eq.f32.partialorder %v1043_v60, 8.507059e+37  ;;  %v2653_v60 = vld [vmem:[#allocation15_spill] sm:$0xff] }
 0x30f   :  { %v1049_v10 = vmul.f32 %v1027_v5, %v2465_v52  ;;  %v1037_v1 = vmul.f32 %v1953_v34, %v1036_v32 }
 0x311   :  { %v2508_v45 = vadd.f32 %v1050_v41, %v1049_v10  ;;  %v1038_v2 = vadd.f32 %v1953_v34, %v1037_v1 }
 0x313   :  { %1956 = vtanh.f32 %v2508_v45  ;;  %v1042_v17 = vsel %vm1041_vm14, %v1953_v34, %v1038_v2 }
 0x314   :  { %v1047_v58 = vsel %vm1044_vm15, %v1046_v19, %v1042_v17 }
 0x319   :  { %v1957_v18 = vpop.eup %1956 }
 0x31a   :  { %v1053_v29 = vmul.f32 %v1957_v18, %v1047_v58 }
 0x31c   :  { %1054 = vst [vmem:[%s2623_s4 + $0x18] sm:$0xff] %v1053_v29  ;;  %v1055_v52 = vpack.c.bf16 %v1053_v29, %v1053_v29 }
 0x31e   :  { %1064 = vmatmul.bf16.vlgmr.msrb.gmra.mxu0 %v1055_v52  ;;  %1077 = vmatmul.bf16.vlgmr.msrb.gmra.mxu1 %v1055_v52 }
 0x31f   :  { %1090 = vmatmul.bf16.vlgmr.msrb.gmra.mxu2 %v1055_v52  ;;  %1103 = vmatmul.bf16.vlgmr.msrb.gmra.mxu3 %v1055_v52 }
 0x320   :  { %1298 = vmatpush.bf16.msrb.mxu0 %v2116_v38  ;;  %1311 = vmatpush.bf16.msrb.mxu1 %v2118_v43 }
 0x321   :  { %1324 = vmatpush.bf16.msrb.mxu2 %v2120_v49  ;;  %1337 = vmatpush.bf16.msrb.mxu3 %v2123_v50 }
 0x324   :  { %1299 = vmatpush.bf16.msrb.mxu0 %v2125_v51  ;;  %1312 = vmatpush.bf16.msrb.mxu1 %v2128_v55 }
 0x325   :  { %1325 = vmatpush.bf16.msrb.mxu2 %v2131_v61  ;;  %1338 = vmatpush.bf16.msrb.mxu3 %v2135_v62 }
 0x328   :  { %1300 = vmatpush.bf16.msrb.mxu0 %v2137_v63  ;;  %1313 = vmatpush.bf16.msrb.mxu1 %v2140_v3 }
 0x329   :  { %1326 = vmatpush.bf16.msrb.mxu2 %v2143_v9  ;;  %1339 = vmatpush.bf16.msrb.mxu3 %v2150_v11 }
 0x32c   :  { %1301 = vmatpush.bf16.msrb.mxu0 %v2152_v12  ;;  %1314 = vmatpush.bf16.msrb.mxu1 %v2155_v16 }
 0x32d   :  { %1327 = vmatpush.bf16.msrb.mxu2 %v2161_v23  ;;  %1340 = vmatpush.bf16.msrb.mxu3 %v2165_v24 }
 0x330   :  { %1302 = vmatpush.bf16.msrb.mxu0 %v2167_v25  ;;  %1315 = vmatpush.bf16.msrb.mxu1 %v2170_v30 }
 0x331   :  { %1328 = vmatpush.bf16.msrb.mxu2 %v2173_v36  ;;  %1341 = vmatpush.bf16.msrb.mxu3 %v2177_v37 }
 0x334   :  { %1303 = vmatpush.bf16.msrb.mxu0 %v2179_v39  ;;  %1316 = vmatpush.bf16.msrb.mxu1 %v2182_v40 }
 0x335   :  { %1329 = vmatpush.bf16.msrb.mxu2 %v2194_v57  ;;  %1342 = vmatpush.bf16.msrb.mxu3 %v2187_v47 }
 0x338   :  { %1304 = vmatpush.bf16.msrb.mxu0 %v2189_v48  ;;  %1317 = vmatpush.bf16.msrb.mxu1 %v2192_v56 }
 0x339   :  { %1330 = vmatpush.bf16.msrb.mxu2 %v2203_v8  ;;  %1343 = vmatpush.bf16.msrb.mxu3 %v2199_v6 }
 0x33c   :  { %1305 = vmatpush.bf16.msrb.mxu0 %v2201_v7  ;;  %1318 = vmatpush.bf16.msrb.mxu1 %v2206_v14 }
 0x33d   :  { %1331 = vmatpush.bf16.msrb.mxu2 %v2215_v20  ;;  %1344 = vmatpush.bf16.msrb.mxu3 %v2219_v21 }
 0x39b   :  { %v1065_v4 = vpop.f32.mrf.mxu0  ;;  %v1078_v33 = vpop.f32.mrf.mxu1 }
 0x39c   :  { %v1108_v35 = vadd.f32 %v1065_v4, %v2650_v15  ;;  %v1109_v42 = vadd.f32 %v1078_v33, %v2651_v44 }
 0x39e   :  { %v1813_v53 = vmul.f32 -1.442695, %v1108_v35  ;;  %v1814_v34 = vmul.f32 -1.442695, %v1109_v42 }
 0x3a0   :  { %1958 = vpow2.f32 %v1813_v53 }
 0x3a1   :  { %1960 = vpow2.f32 %v1814_v34 }
 0x3a2   :  { %v1091_v26 = vpop.f32.mrf.mxu2  ;;  %v1104_v22 = vpop.f32.mrf.mxu3 }
 0x3a3   :  { %v1111_v59 = vadd.f32 %v1104_v22, %v2652_v0  ;;  %v1067_v46 = vpop.f32.mrf.mxu0  ;;  %v1080_v54 = vpop.f32.mrf.mxu1  ;;  %v1110_v17 = vadd.f32 %v1091_v26, %v2653_v60 }
 0x3a5   :  { %v1815_v27 = vmul.f32 -1.442695, %v1111_v59 }
 0x3a6   :  { %v1959_v28 = vpop.eup %1958 }
 0x3a7   :  { %v1961_v31 = vpop.eup %1960  ;;  %v1115_v32 = vadd.f32 1.0, %v1959_v28  ;;  %1962 = vpow2.f32 %v1815_v27 }
 0x3a8   :  { %v1134_v5 = vadd.f32 1.0, %v1961_v31 }
 0x3a9   :  { %1964 = vrcp.f32 %v1115_v32  ;;  %v1127_v4 = vand.u32 2147483648, %v1115_v32  ;;  %v1125_v35 = vand.u32 2147483647, %v1115_v32  ;;  %vm1121_vm2 = vweird.f32 %v1115_v32 }
 0x3aa   :  { %1966 = vrcp.f32 %v1134_v5  ;;  %v1093_v41 = vpop.f32.mrf.mxu2  ;;  %v1106_v10 = vpop.f32.mrf.mxu3  ;;  %v1146_v33 = vand.u32 2147483648, %v1134_v5  ;;  %v1144_v42 = vand.u32 2147483647, %v1134_v5  ;;  %vm1140_vm3 = vweird.f32 %v1134_v5 }
 0x3ab   :  { %v1128_v26 = vor.u32 1.1754944e-38, %v1127_v4  ;;  %vm1126_vm6 = vcmp.eq.f32.partialorder %v1125_v35, 8.507059e+37 }
 0x3ac   :  { %v1147_v59 = vor.u32 1.1754944e-38, %v1146_v33  ;;  %vm1145_vm7 = vcmp.eq.f32.partialorder %v1144_v42, 8.507059e+37 }
 0x3ad   :  { %v1963_v1 = vpop.eup %1962 }
 0x3ae   :  { %v1154_v2 = vadd.f32 1.0, %v1963_v1 }
 0x3af   :  { %v1965_v13 = vpop.eup %1964 }
 0x3b0   :  { %v1967_v19 = vpop.eup %1966  ;;  %v1117_v18 = vmul.f32 %v1965_v13, %v1115_v32  ;;  %1968 = vrcp.f32 %v1154_v2  ;;  %vm1122_vm0 = vweird.f32 %v1965_v13  ;;  %vm1160_vm9 = vweird.f32 %v1154_v2 }
 0x3b1   :  { %v1136_v58 = vmul.f32 %v1967_v19, %v1134_v5  ;;  %1970 = vtanh.f32 %v1110_v17  ;;  %vm1141_vm1 = vweird.f32 %v1967_v19  ;;  %vm1123_vm4 = vmor %vm1121_vm2, %vm1122_vm0  ;;  %v1166_v17 = vand.u32 2147483648, %v1154_v2 }
 0x3b2   :  { %v1118_v29 = vsub.f32 1.0, %v1117_v18  ;;  %vm1142_vm5 = vmor %vm1140_vm3, %vm1141_vm1 }
 0x3b3   :  { %v1137_v52 = vsub.f32 1.0, %v1136_v58  ;;  %v1167_v58 = vor.u32 1.1754944e-38, %v1166_v17 }
 0x3b4   :  { %v1119_v15 = vmul.f32 %v1965_v13, %v1118_v29 }
 0x3b5   :  { %v1138_v44 = vmul.f32 %v1967_v19, %v1137_v52 }
 0x3b6   :  { %v1969_v53 = vpop.eup %1968  ;;  %v1120_v34 = vadd.f32 %v1965_v13, %v1119_v15 }
 0x3b7   :  { %v1139_v22 = vadd.f32 %v1967_v19, %v1138_v44  ;;  %v1156_v0 = vmul.f32 %v1969_v53, %v1154_v2  ;;  %v1971_v54 = vpop.eup %1970  ;;  %vm1161_vm8 = vweird.f32 %v1969_v53 }
 0x3b8   :  { %v1124_v46 = vsel %vm1123_vm4, %v1965_v13, %v1120_v34  ;;  %v1164_v13 = vand.u32 2147483647, %v1154_v2  ;;  %vm1162_vm10 = vmor %vm1160_vm9, %vm1161_vm8 }
 0x3b9   :  { %v1129_v27 = vsel %vm1126_vm6, %v1128_v26, %v1124_v46  ;;  %v1143_v28 = vsel %vm1142_vm5, %v1967_v19, %v1139_v22  ;;  %v1157_v31 = vsub.f32 1.0, %v1156_v0 }
 0x3ba   :  { %v1148_v41 = vsel %vm1145_vm7, %v1147_v59, %v1143_v28  ;;  %v1171_v10 = vmul.f32 %v1971_v54, %v1129_v27  ;;  %vm1165_vm11 = vcmp.eq.f32.partialorder %v1164_v13, 8.507059e+37 }
 0x3bb   :  { %v1170_v1 = vmul.f32 %v1148_v41, %v2508_v45  ;;  %v1158_v60 = vmul.f32 %v1969_v53, %v1157_v31 }
 0x3bd   :  { %v2551_v32 = vadd.f32 %v1171_v10, %v1170_v1  ;;  %v1159_v5 = vadd.f32 %v1969_v53, %v1158_v60 }
 0x3bf   :  { %1972 = vtanh.f32 %v2551_v32  ;;  %v1163_v18 = vsel %vm1162_vm10, %v1969_v53, %v1159_v5 }
 0x3c0   :  { %v1168_v29 = vsel %vm1165_vm11, %v1167_v58, %v1163_v18 }
 0x3c5   :  { %v1973_v19 = vpop.eup %1972 }
 0x3c6   :  { %v1174_v52 = vmul.f32 %v1973_v19, %v1168_v29 }
 0x3c8   :  { %1175 = vst [vmem:[%s2623_s4 + $0x20] sm:$0xff] %v1174_v52  ;;  %v1176_v45 = vpack.c.bf16 %v1174_v52, %v1174_v52 }
 0x3ca   :  { %1185 = vmatmul.bf16.vlgmr.msra.gmra.mxu0 %v1176_v45  ;;  %1198 = vmatmul.bf16.vlgmr.msra.gmra.mxu1 %v1176_v45 }
 0x3cb   :  { %1211 = vmatmul.bf16.vlgmr.msra.gmra.mxu2 %v1176_v45  ;;  %1224 = vmatmul.bf16.vlgmr.msra.gmra.mxu3 %v1176_v45 }
 0x3cc   :  { %1419 = vmatpush.bf16.msra.mxu0 %v2116_v38  ;;  %1432 = vmatpush.bf16.msra.mxu1 %v2118_v43 }
 0x3cd   :  { %1445 = vmatpush.bf16.msra.mxu2 %v2120_v49  ;;  %1458 = vmatpush.bf16.msra.mxu3 %v2123_v50  ;;  %v2654_v49 = vld [vmem:[#allocation17_spill] sm:$0xff] }
 0x3d0   :  { %1420 = vmatpush.bf16.msra.mxu0 %v2125_v51  ;;  %1433 = vmatpush.bf16.msra.mxu1 %v2128_v55  ;;  %v2655_v51 = vld [vmem:[#allocation18_spill] sm:$0xff] }
 0x3d1   :  { %1446 = vmatpush.bf16.msra.mxu2 %v2131_v61  ;;  %1459 = vmatpush.bf16.msra.mxu3 %v2135_v62 }
 0x3d4   :  { %1421 = vmatpush.bf16.msra.mxu0 %v2137_v63  ;;  %1434 = vmatpush.bf16.msra.mxu1 %v2140_v3 }
 0x3d5   :  { %1447 = vmatpush.bf16.msra.mxu2 %v2143_v9  ;;  %1460 = vmatpush.bf16.msra.mxu3 %v2150_v11  ;;  %v2656_v9 = vld [vmem:[#allocation20_spill] sm:$0xff] }
 0x3d8   :  { %1422 = vmatpush.bf16.msra.mxu0 %v2152_v12  ;;  %1435 = vmatpush.bf16.msra.mxu1 %v2155_v16 }
 0x3d9   :  { %1448 = vmatpush.bf16.msra.mxu2 %v2161_v23  ;;  %1461 = vmatpush.bf16.msra.mxu3 %v2165_v24 }
 0x3dc   :  { %1423 = vmatpush.bf16.msra.mxu0 %v2167_v25  ;;  %1436 = vmatpush.bf16.msra.mxu1 %v2170_v30 }
 0x3dd   :  { %1449 = vmatpush.bf16.msra.mxu2 %v2173_v36  ;;  %1462 = vmatpush.bf16.msra.mxu3 %v2177_v37 }
 0x3e0   :  { %1424 = vmatpush.bf16.msra.mxu0 %v2179_v39  ;;  %1437 = vmatpush.bf16.msra.mxu1 %v2182_v40 }
 0x3e1   :  { %1450 = vmatpush.bf16.msra.mxu2 %v2194_v57  ;;  %1463 = vmatpush.bf16.msra.mxu3 %v2187_v47 }
 0x3e4   :  { %1425 = vmatpush.bf16.msra.mxu0 %v2189_v48  ;;  %1438 = vmatpush.bf16.msra.mxu1 %v2192_v56  ;;  %v2657_v56 = vld [vmem:[#allocation19_spill] sm:$0xff] }
 0x3e5   :  { %1451 = vmatpush.bf16.msra.mxu2 %v2203_v8  ;;  %1464 = vmatpush.bf16.msra.mxu3 %v2199_v6 }
 0x3e8   :  { %1426 = vmatpush.bf16.msra.mxu0 %v2201_v7  ;;  %1439 = vmatpush.bf16.msra.mxu1 %v2206_v14 }
 0x3e9   :  { %1452 = vmatpush.bf16.msra.mxu2 %v2215_v20  ;;  %1465 = vmatpush.bf16.msra.mxu3 %v2219_v21 }
 0x447   :  { %v1186_v38 = vpop.f32.mrf.mxu0  ;;  %v1199_v43 = vpop.f32.mrf.mxu1 }
 0x448   :  { %v1229_v50 = vadd.f32 %v1186_v38, %v2654_v49  ;;  %v1230_v55 = vadd.f32 %v1199_v43, %v2655_v51  ;;  %v2658_v38 = vld [vmem:[#allocation21_spill] sm:$0xff]  ;;  %v2659_v49 = vld [vmem:[#allocation22_spill] sm:$0xff] }
 0x44a   :  { %v1816_v61 = vmul.f32 -1.442695, %v1229_v50  ;;  %v1817_v62 = vmul.f32 -1.442695, %v1230_v55 }
 0x44c   :  { %1974 = vpow2.f32 %v1816_v61 }
 0x44d   :  { %1976 = vpow2.f32 %v1817_v62 }
 0x44e   :  { %v1212_v63 = vpop.f32.mrf.mxu2  ;;  %v1225_v3 = vpop.f32.mrf.mxu3 }
 0x44f   :  { %v1232_v11 = vadd.f32 %v1225_v3, %v2656_v9  ;;  %v1188_v12 = vpop.f32.mrf.mxu0  ;;  %v1201_v16 = vpop.f32.mrf.mxu1  ;;  %v1231_v57 = vadd.f32 %v1212_v63, %v2657_v56  ;;  %v2660_v63 = vld [vmem:[#allocation24_spill] sm:$0xff] }
 0x451   :  { %v1818_v23 = vmul.f32 -1.442695, %v1232_v11 }
 0x452   :  { %v1975_v24 = vpop.eup %1974 }
 0x453   :  { %v1977_v25 = vpop.eup %1976  ;;  %v1236_v30 = vadd.f32 1.0, %v1975_v24  ;;  %1978 = vpow2.f32 %v1818_v23 }
 0x454   :  { %v1255_v36 = vadd.f32 1.0, %v1977_v25 }
 0x455   :  { %1980 = vrcp.f32 %v1236_v30  ;;  %v1248_v21 = vand.u32 2147483648, %v1236_v30  ;;  %v1246_v33 = vand.u32 2147483647, %v1236_v30  ;;  %vm1242_vm14 = vweird.f32 %v1236_v30 }
 0x456   :  { %1982 = vrcp.f32 %v1255_v36  ;;  %v1214_v37 = vpop.f32.mrf.mxu2  ;;  %v1227_v39 = vpop.f32.mrf.mxu3  ;;  %v1267_v2 = vand.u32 2147483648, %v1255_v36  ;;  %v1265_v35 = vand.u32 2147483647, %v1255_v36  ;;  %vm1261_vm15 = vweird.f32 %v1255_v36 }
 0x457   :  { %v1249_v53 = vor.u32 1.1754944e-38, %v1248_v21  ;;  %vm1247_vm2 = vcmp.eq.f32.partialorder %v1246_v33, 8.507059e+37 }
 0x458   :  { %v1268_v22 = vor.u32 1.1754944e-38, %v1267_v2  ;;  %vm1266_vm3 = vcmp.eq.f32.partialorder %v1265_v35, 8.507059e+37 }
 0x459   :  { %v1979_v40 = vpop.eup %1978 }
 0x45a   :  { %v1275_v47 = vadd.f32 1.0, %v1979_v40 }
 0x45b   :  { %v1981_v48 = vpop.eup %1980 }
 0x45c   :  { %v1983_v6 = vpop.eup %1982  ;;  %v1238_v7 = vmul.f32 %v1981_v48, %v1236_v30  ;;  %1984 = vrcp.f32 %v1275_v47  ;;  %vm1243_vm12 = vweird.f32 %v1981_v48  ;;  %v1287_v5 = vand.u32 2147483648, %v1275_v47 }
 0x45d   :  { %v1257_v8 = vmul.f32 %v1983_v6, %v1255_v36  ;;  %1986 = vtanh.f32 %v1231_v57  ;;  %vm1262_vm13 = vweird.f32 %v1983_v6  ;;  %vm1244_vm0 = vmor %vm1242_vm14, %vm1243_vm12  ;;  %vm1281_vm5 = vweird.f32 %v1275_v47 }
 0x45e   :  { %v1239_v14 = vsub.f32 1.0, %v1238_v7  ;;  %vm1263_vm1 = vmor %vm1261_vm15, %vm1262_vm13  ;;  %v1285_v17 = vand.u32 2147483647, %v1275_v47  ;;  %v1288_v18 = vor.u32 1.1754944e-38, %v1287_v5 }
 0x45f   :  { %v1258_v20 = vsub.f32 1.0, %v1257_v8 }
 0x460   :  { %v1240_v4 = vmul.f32 %v1981_v48, %v1239_v14  ;;  %vm1286_vm7 = vcmp.eq.f32.partialorder %v1285_v17, 8.507059e+37 }
 0x461   :  { %v1259_v15 = vmul.f32 %v1983_v6, %v1258_v20 }
 0x462   :  { %v1985_v44 = vpop.eup %1984  ;;  %v1241_v42 = vadd.f32 %v1981_v48, %v1240_v4 }
 0x463   :  { %v1260_v34 = vadd.f32 %v1983_v6, %v1259_v15  ;;  %v1277_v26 = vmul.f32 %v1985_v44, %v1275_v47  ;;  %v1987_v59 = vpop.eup %1986  ;;  %vm1282_vm4 = vweird.f32 %v1985_v44  ;;  %v2661_v47 = vld [vmem:[#allocation23_spill] sm:$0xff] }
 0x464   :  { %v1245_v0 = vsel %vm1244_vm0, %v1981_v48, %v1241_v42  ;;  %vm1283_vm6 = vmor %vm1281_vm5, %vm1282_vm4 }
 0x465   :  { %v1250_v46 = vsel %vm1247_vm2, %v1249_v53, %v1245_v0  ;;  %v1264_v54 = vsel %vm1263_vm1, %v1983_v6, %v1260_v34  ;;  %v1278_v27 = vsub.f32 1.0, %v1277_v26 }
 0x466   :  { %v1269_v28 = vsel %vm1266_vm3, %v1268_v22, %v1264_v54  ;;  %v1292_v31 = vmul.f32 %v1987_v59, %v1250_v46 }
 0x467   :  { %v1291_v41 = vmul.f32 %v1269_v28, %v2551_v32  ;;  %v1279_v10 = vmul.f32 %v1985_v44, %v1278_v27 }
 0x469   :  { %v2594_v1 = vadd.f32 %v1292_v31, %v1291_v41  ;;  %v1280_v60 = vadd.f32 %v1985_v44, %v1279_v10 }
 0x46b   :  { %1988 = vtanh.f32 %v2594_v1  ;;  %v1284_v13 = vsel %vm1283_vm6, %v1985_v44, %v1280_v60 }
 0x46c   :  { %v1289_v19 = vsel %vm1286_vm7, %v1288_v18, %v1284_v13 }
 0x471   :  { %v1989_v58 = vpop.eup %1988 }
 0x472   :  { %v1295_v29 = vmul.f32 %v1989_v58, %v1289_v19 }
 0x474   :  { %1296 = vst [vmem:[%s2623_s4 + $0x28] sm:$0xff] %v1295_v29  ;;  %v1297_v32 = vpack.c.bf16 %v1295_v29, %v1295_v29 }
 0x476   :  { %1306 = vmatmul.bf16.vlgmr.msrb.gmra.mxu0 %v1297_v32  ;;  %1319 = vmatmul.bf16.vlgmr.msrb.gmra.mxu1 %v1297_v32 }
 0x477   :  { %1332 = vmatmul.bf16.vlgmr.msrb.gmra.mxu2 %v1297_v32  ;;  %1345 = vmatmul.bf16.vlgmr.msrb.gmra.mxu3 %v1297_v32 }
 0x4f3   :  { %v1307_v52 = vpop.f32.mrf.mxu0  ;;  %v1320_v45 = vpop.f32.mrf.mxu1 }
 0x4f4   :  { %v1350_v43 = vadd.f32 %v1307_v52, %v2658_v38  ;;  %v1351_v50 = vadd.f32 %v1320_v45, %v2659_v49  ;;  %v2662_v52 = vld [vmem:[#allocation25_spill] sm:$0xff]  ;;  %v2663_v38 = vld [vmem:[#allocation26_spill] sm:$0xff] }
 0x4f6   :  { %v1819_v51 = vmul.f32 -1.442695, %v1350_v43  ;;  %v1820_v55 = vmul.f32 -1.442695, %v1351_v50 }
 0x4f8   :  { %1990 = vpow2.f32 %v1819_v51 }
 0x4f9   :  { %1992 = vpow2.f32 %v1820_v55 }
 0x4fa   :  { %v1333_v61 = vpop.f32.mrf.mxu2  ;;  %v1346_v62 = vpop.f32.mrf.mxu3 }
 0x4fb   :  { %v1353_v3 = vadd.f32 %v1346_v62, %v2660_v63  ;;  %v1309_v9 = vpop.f32.mrf.mxu0  ;;  %v1322_v11 = vpop.f32.mrf.mxu1  ;;  %v1352_v48 = vadd.f32 %v1333_v61, %v2661_v47  ;;  %v2664_v61 = vld [vmem:[#allocation28_spill] sm:$0xff] }
 0x4fd   :  { %v1821_v12 = vmul.f32 -1.442695, %v1353_v3 }
 0x4fe   :  { %v1991_v16 = vpop.eup %1990 }
 0x4ff   :  { %v1993_v23 = vpop.eup %1992  ;;  %v1357_v24 = vadd.f32 1.0, %v1991_v16  ;;  %1994 = vpow2.f32 %v1821_v12 }
 0x500   :  { %v1376_v25 = vadd.f32 1.0, %v1993_v23 }
 0x501   :  { %1996 = vrcp.f32 %v1357_v24  ;;  %v1369_v14 = vand.u32 2147483648, %v1357_v24  ;;  %v1367_v2 = vand.u32 2147483647, %v1357_v24  ;;  %vm1363_vm10 = vweird.f32 %v1357_v24 }
 0x502   :  { %1998 = vrcp.f32 %v1376_v25  ;;  %v1335_v30 = vpop.f32.mrf.mxu2  ;;  %v1348_v36 = vpop.f32.mrf.mxu3  ;;  %v1388_v20 = vand.u32 2147483648, %v1376_v25  ;;  %v1386_v33 = vand.u32 2147483647, %v1376_v25  ;;  %vm1382_vm11 = vweird.f32 %v1376_v25 }
 0x503   :  { %v1370_v44 = vor.u32 1.1754944e-38, %v1369_v14  ;;  %vm1368_vm14 = vcmp.eq.f32.partialorder %v1367_v2, 8.507059e+37 }
 0x504   :  { %v1389_v34 = vor.u32 1.1754944e-38, %v1388_v20  ;;  %vm1387_vm15 = vcmp.eq.f32.partialorder %v1386_v33, 8.507059e+37 }
 0x505   :  { %v1995_v37 = vpop.eup %1994 }
 0x506   :  { %v1396_v39 = vadd.f32 1.0, %v1995_v37 }
 0x507   :  { %v1997_v40 = vpop.eup %1996 }
 0x508   :  { %v1999_v56 = vpop.eup %1998  ;;  %v1359_v57 = vmul.f32 %v1997_v40, %v1357_v24  ;;  %2000 = vrcp.f32 %v1396_v39  ;;  %vm1364_vm8 = vweird.f32 %v1997_v40  ;;  %v1408_v60 = vand.u32 2147483648, %v1396_v39 }
 0x509   :  { %v1378_v6 = vmul.f32 %v1999_v56, %v1376_v25  ;;  %2002 = vtanh.f32 %v1352_v48  ;;  %vm1383_vm9 = vweird.f32 %v1999_v56  ;;  %vm1365_vm12 = vmor %vm1363_vm10, %vm1364_vm8  ;;  %vm1402_vm1 = vweird.f32 %v1396_v39 }
 0x50a   :  { %v1360_v7 = vsub.f32 1.0, %v1359_v57  ;;  %vm1384_vm13 = vmor %vm1382_vm11, %vm1383_vm9  ;;  %v1406_v5 = vand.u32 2147483647, %v1396_v39  ;;  %v1409_v13 = vor.u32 1.1754944e-38, %v1408_v60 }
 0x50b   :  { %v1379_v8 = vsub.f32 1.0, %v1378_v6 }
 0x50c   :  { %v1361_v21 = vmul.f32 %v1997_v40, %v1360_v7  ;;  %vm1407_vm3 = vcmp.eq.f32.partialorder %v1406_v5, 8.507059e+37 }
 0x50d   :  { %v1380_v4 = vmul.f32 %v1999_v56, %v1379_v8 }
 0x50e   :  { %v2001_v15 = vpop.eup %2000  ;;  %v1362_v35 = vadd.f32 %v1997_v40, %v1361_v21 }
 0x50f   :  { %v1381_v42 = vadd.f32 %v1999_v56, %v1380_v4  ;;  %v1398_v53 = vmul.f32 %v2001_v15, %v1396_v39  ;;  %v2003_v22 = vpop.eup %2002  ;;  %vm1403_vm0 = vweird.f32 %v2001_v15  ;;  %v2665_v39 = vld [vmem:[#allocation27_spill] sm:$0xff] }
 0x510   :  { %v1366_v26 = vsel %vm1365_vm12, %v1997_v40, %v1362_v35  ;;  %vm1404_vm2 = vmor %vm1402_vm1, %vm1403_vm0 }
 0x511   :  { %v1371_v0 = vsel %vm1368_vm14, %v1370_v44, %v1366_v26  ;;  %v1385_v59 = vsel %vm1384_vm13, %v1999_v56, %v1381_v42  ;;  %v1399_v46 = vsub.f32 1.0, %v1398_v53 }
 0x512   :  { %v1390_v54 = vsel %vm1387_vm15, %v1389_v34, %v1385_v59  ;;  %v1413_v27 = vmul.f32 %v2003_v22, %v1371_v0 }
 0x513   :  { %v1412_v28 = vmul.f32 %v1390_v54, %v2594_v1  ;;  %v1400_v31 = vmul.f32 %v2001_v15, %v1399_v46 }
 0x515   :  { %v2605_v41 = vadd.f32 %v1413_v27, %v1412_v28  ;;  %v1401_v10 = vadd.f32 %v2001_v15, %v1400_v31 }
 0x517   :  { %2004 = vtanh.f32 %v2605_v41  ;;  %v1405_v17 = vsel %vm1404_vm2, %v2001_v15, %v1401_v10 }
 0x518   :  { %v1410_v58 = vsel %vm1407_vm3, %v1409_v13, %v1405_v17 }
 0x51d   :  { %v2005_v18 = vpop.eup %2004 }
 0x51e   :  { %v1416_v19 = vmul.f32 %v2005_v18, %v1410_v58 }
 0x520   :  { %1417 = vst [vmem:[%s2623_s4 + $0x30] sm:$0xff] %v1416_v19  ;;  %v1418_v1 = vpack.c.bf16 %v1416_v19, %v1416_v19 }
 0x522   :  { %1427 = vmatmul.bf16.vlgmr.msra.gmra.mxu0 %v1418_v1  ;;  %1440 = vmatmul.bf16.vlgmr.msra.gmra.mxu1 %v1418_v1 }
 0x523   :  { %1453 = vmatmul.bf16.vlgmr.msra.gmra.mxu2 %v1418_v1  ;;  %1466 = vmatmul.bf16.vlgmr.msra.gmra.mxu3 %v1418_v1 }
 0x59f   :  { %v1428_v29 = vpop.f32.mrf.mxu0  ;;  %v1441_v32 = vpop.f32.mrf.mxu1 }
 0x5a0   :  { %v1471_v45 = vadd.f32 %v1428_v29, %v2662_v52  ;;  %v1472_v43 = vadd.f32 %v1441_v32, %v2663_v38 }
 0x5a2   :  { %v1822_v49 = vmul.f32 -1.442695, %v1471_v45  ;;  %v1823_v50 = vmul.f32 -1.442695, %v1472_v43 }
 0x5a4   :  { %2006 = vpow2.f32 %v1822_v49 }
 0x5a5   :  { %2008 = vpow2.f32 %v1823_v50 }
 0x5a6   :  { %v1454_v51 = vpop.f32.mrf.mxu2  ;;  %v1467_v55 = vpop.f32.mrf.mxu3 }
 0x5a7   :  { %v1474_v62 = vadd.f32 %v1467_v55, %v2664_v61  ;;  %v1430_v63 = vpop.f32.mrf.mxu0  ;;  %v1443_v3 = vpop.f32.mrf.mxu1  ;;  %v1473_v40 = vadd.f32 %v1454_v51, %v2665_v39 }
 0x5a9   :  { %v1824_v9 = vmul.f32 -1.442695, %v1474_v62 }
 0x5aa   :  { %v2007_v11 = vpop.eup %2006 }
 0x5ab   :  { %v2009_v12 = vpop.eup %2008  ;;  %v1478_v16 = vadd.f32 1.0, %v2007_v11  ;;  %2010 = vpow2.f32 %v1824_v9 }
 0x5ac   :  { %v1497_v23 = vadd.f32 1.0, %v2009_v12 }
 0x5ad   :  { %2012 = vrcp.f32 %v1478_v16  ;;  %v1490_v7 = vand.u32 2147483648, %v1478_v16  ;;  %v1488_v20 = vand.u32 2147483647, %v1478_v16  ;;  %vm1484_vm6 = vweird.f32 %v1478_v16 }
 0x5ae   :  { %2014 = vrcp.f32 %v1497_v23  ;;  %v1456_v24 = vpop.f32.mrf.mxu2  ;;  %v1469_v25 = vpop.f32.mrf.mxu3  ;;  %v1509_v8 = vand.u32 2147483648, %v1497_v23  ;;  %v1507_v2 = vand.u32 2147483647, %v1497_v23  ;;  %vm1503_vm7 = vweird.f32 %v1497_v23 }
 0x5af   :  { %v1491_v15 = vor.u32 1.1754944e-38, %v1490_v7  ;;  %vm1489_vm10 = vcmp.eq.f32.partialorder %v1488_v20, 8.507059e+37 }
 0x5b0   :  { %v1510_v42 = vor.u32 1.1754944e-38, %v1509_v8  ;;  %vm1508_vm11 = vcmp.eq.f32.partialorder %v1507_v2, 8.507059e+37 }
 0x5b1   :  { %v2011_v30 = vpop.eup %2010 }
 0x5b2   :  { %v1517_v36 = vadd.f32 1.0, %v2011_v30 }
 0x5b3   :  { %v2013_v37 = vpop.eup %2012 }
 0x5b4   :  { %v2015_v47 = vpop.eup %2014  ;;  %v1480_v48 = vmul.f32 %v2013_v37, %v1478_v16  ;;  %2016 = vrcp.f32 %v1517_v36  ;;  %vm1485_vm4 = vweird.f32 %v2013_v37  ;;  %v1529_v10 = vand.u32 2147483648, %v1517_v36 }
 0x5b5   :  { %v1499_v56 = vmul.f32 %v2015_v47, %v1497_v23  ;;  %2018 = vtanh.f32 %v1473_v40  ;;  %vm1504_vm5 = vweird.f32 %v2015_v47  ;;  %vm1486_vm8 = vmor %vm1484_vm6, %vm1485_vm4  ;;  %vm1523_vm13 = vweird.f32 %v1517_v36 }
 0x5b6   :  { %v1481_v57 = vsub.f32 1.0, %v1480_v48  ;;  %vm1505_vm9 = vmor %vm1503_vm7, %vm1504_vm5  ;;  %v1527_v60 = vand.u32 2147483647, %v1517_v36  ;;  %v1530_v17 = vor.u32 1.1754944e-38, %v1529_v10 }
 0x5b7   :  { %v1500_v6 = vsub.f32 1.0, %v1499_v56 }
 0x5b8   :  { %v1482_v14 = vmul.f32 %v2013_v37, %v1481_v57  ;;  %vm1528_vm15 = vcmp.eq.f32.partialorder %v1527_v60, 8.507059e+37 }
 0x5b9   :  { %v1501_v21 = vmul.f32 %v2015_v47, %v1500_v6 }
 0x5ba   :  { %v2017_v4 = vpop.eup %2016  ;;  %v1483_v33 = vadd.f32 %v2013_v37, %v1482_v14 }
 0x5bb   :  { %v1502_v35 = vadd.f32 %v2015_v47, %v1501_v21  ;;  %v1519_v44 = vmul.f32 %v2017_v4, %v1517_v36  ;;  %v2019_v34 = vpop.eup %2018  ;;  %vm1524_vm12 = vweird.f32 %v2017_v4 }
 0x5bc   :  { %v1487_v53 = vsel %vm1486_vm8, %v2013_v37, %v1483_v33  ;;  %vm1525_vm14 = vmor %vm1523_vm13, %vm1524_vm12 }
 0x5bd   :  { %v1492_v26 = vsel %vm1489_vm10, %v1491_v15, %v1487_v53  ;;  %v1506_v22 = vsel %vm1505_vm9, %v2015_v47, %v1502_v35  ;;  %v1520_v0 = vsub.f32 1.0, %v1519_v44 }
 0x5be   :  { %v1511_v59 = vsel %vm1508_vm11, %v1510_v42, %v1506_v22  ;;  %v1534_v46 = vmul.f32 %v2019_v34, %v1492_v26 }
 0x5bf   :  { %v1533_v54 = vmul.f32 %v1511_v59, %v2605_v41  ;;  %v1521_v27 = vmul.f32 %v2017_v4, %v1520_v0 }
 0x5c1   :  { %v1535_v28 = vadd.f32 %v1534_v46, %v1533_v54  ;;  %v1522_v31 = vadd.f32 %v2017_v4, %v1521_v27 }
 0x5c3   :  { %2020 = vtanh.f32 %v1535_v28  ;;  %v1526_v5 = vsel %vm1525_vm14, %v2017_v4, %v1522_v31 }
 0x5c4   :  { %v1531_v18 = vsel %vm1528_vm15, %v1530_v17, %v1526_v5 }
 0x5c9   :  { %v2021_v13 = vpop.eup %2020 }
 0x5ca   :  { %v1537_v58 = vmul.f32 %v2021_v13, %v1531_v18 }
 0x5cc   :  { %1538 = vst [vmem:[%s2623_s4 + $0x38] sm:$0xff] %v1537_v58 }
 0x5cd   :  { %1543 = vsyncpa [#allocation3], 1 }
 0x5ce   :  { %1544 = vsyncpa [#allocation5], 1 }

// kernel: rnn_forward.3
= control target key start
LH: loop header
LB: loop body
LE: loop exit
PB: predicated region body
PF: predicated region fallthrough
CT: control target
= control target key end

     0   :  { %11 = vsyncpa [#allocation3], 0  ;;  %s2767_s0 = inlined_call_operand.vmem [shape: f32[64,128], index: 0, kind: input, shape index: {}]   ;;  %s2768_s1 = inlined_call_operand.hbm [shape: bf16[128,512], index: 1, kind: input, shape index: {}]   ;;  %s2769_s2 = inlined_call_operand.hbm [shape: bf16[128,512], index: 2, kind: input, shape index: {}]   ;;  %s2770_s3 = inlined_call_operand.vmem [shape: f32[1,512], index: 3, kind: input, shape index: {}]   ;;  %s2771_s4 = inlined_call_operand.vmem [shape: bf16[128,128], index: 4, kind: input, shape index: {}]   ;;  %s2772_s5 = inlined_call_operand.vmem [shape: f32[1,128], index: 5, kind: input, shape index: {}]   ;;  %s2773_s6 = inlined_call_operand.vmem [shape: f32[8,128], index: 6, kind: output, shape index: {}]  }
   0x1   :  { %s19_s23 = sshll.u32 %s2768_s1, 4  ;;  %s20_s23 = int_to_ptr.hbm [resolvable:$true] %s19_s23 }
   0x2   :  { %12 = vsyncpa [#allocation5], 0  ;;  %s2196_s24 = smov [#allocation2]   ;;  %s32_s28 = sshll.u32 %s2769_s2, 4  ;;  %s33_s28 = int_to_ptr.hbm [resolvable:$true] %s32_s28 }
   0x3   :  { %s21_s25 = sshll.u32 %s2196_s24, 4  ;;  %s2197_s29 = smov 256   ;;  %s22_s25 = int_to_ptr.vmem [resolvable:$true] %s21_s25 }
   0x4   :  { %s2198_s30 = smov 16   ;;  %s2199_s7 = smov [#allocation4]  }
   0x5   :  { %27 = dma.hbm_to_vmem [thread:$0]  %s20_s23, 4096, %s22_s25, [#allocation3], %s2197_s29, %s2197_s29, %s2198_s30  }
   0x6   :  { %s34_s8 = sshll.u32 %s2199_s7, 4  ;;  %s35_s8 = int_to_ptr.vmem [resolvable:$true] %s34_s8 }
   0x7   :  { %40 = dma.hbm_to_vmem [thread:$0]  %s33_s28, 4096, %s35_s8, [#allocation5], %s2197_s29, %s2197_s29, %s2198_s30  }
   0x8   :  { %2192 = dma.done.wait [#allocation3], 4096  }
   0x9   :  { %2193 = vsyncadd [#allocation3], 4294963200 }
   0xa   :  { %2194 = dma.done.wait [#allocation5], 4096  }
   0xb   :  { %2195 = vsyncadd [#allocation5], 4294963200  ;;  %v1740_v0 = vld [vmem:[#allocation2 + $0xe0] sm:$0xf]  ;;  %v1968_v1 = vld [vmem:[#allocation2 + $0xec] sm:$0xf0] }
   0xc   :  { %v1966_v2 = vld [vmem:[#allocation2 + $0xe4] sm:$0xf]  ;;  %v1741_v3 = vor.u32 %v1968_v1, %v1740_v0  ;;  %v1742_v4 = vld [vmem:[#allocation2 + $0xf0] sm:$0xf0]  ;;  %v1748_v5 = vld [vmem:[#allocation2 + $0xe8] sm:$0xf] }
   0xd   :  { %v1969_v6 = vld [vmem:[#allocation2 + $0xf4] sm:$0xf0]  ;;  %v1745_v7 = vor.u32 %v1966_v2, %v1742_v4  ;;  %v1967_v9 = vld [vmem:[#allocation2 + $0xec] sm:$0xf]  ;;  %v1750_v10 = vld [vmem:[#allocation2 + $0xf8] sm:$0xf0] }
   0xe   :  { %v1749_v8 = vor.u32 %v1969_v6, %v1748_v5  ;;  %v1724_v11 = vld [vmem:[#allocation2 + $0xc0] sm:$0xf]  ;;  %270 = vmatpush.bf16.msra.mxu0 %v1741_v3  ;;  %v1753_v12 = vor.u32 %v1967_v9, %v1750_v10  ;;  %v1964_v13 = vld [vmem:[#allocation2 + $0xcc] sm:$0xf0]  ;;  %v1962_v14 = vld [vmem:[#allocation2 + $0xc4] sm:$0xf] }
   0xf   :  { %v1726_v15 = vld [vmem:[#allocation2 + $0xd0] sm:$0xf0]  ;;  %299 = vmatpush.bf16.msra.mxu1 %v1745_v7  ;;  %v1725_v16 = vor.u32 %v1964_v13, %v1724_v11  ;;  %v1732_v18 = vld [vmem:[#allocation2 + $0xc8] sm:$0xf]  ;;  %v1965_v19 = vld [vmem:[#allocation2 + $0xd4] sm:$0xf0] }
  0x10   :  { %328 = vmatpush.bf16.msra.mxu2 %v1749_v8  ;;  %v1729_v17 = vor.u32 %v1962_v14, %v1726_v15  ;;  %v1963_v20 = vld [vmem:[#allocation2 + $0xcc] sm:$0xf]  ;;  %357 = vmatpush.bf16.msra.mxu3 %v1753_v12  ;;  %v1733_v21 = vor.u32 %v1965_v19, %v1732_v18  ;;  %v1734_v22 = vld [vmem:[#allocation2 + $0xd8] sm:$0xf0]  ;;  %v1708_v23 = vld [vmem:[#allocation2 + $0xa0] sm:$0xf] }
  0x11   :  { %v1960_v24 = vld [vmem:[#allocation2 + $0xac] sm:$0xf0]  ;;  %v1737_v25 = vor.u32 %v1963_v20, %v1734_v22  ;;  %v1958_v26 = vld [vmem:[#allocation2 + $0xa4] sm:$0xf]  ;;  %v1710_v27 = vld [vmem:[#allocation2 + $0xb0] sm:$0xf0] }
  0x12   :  { %v1716_v28 = vld [vmem:[#allocation2 + $0xa8] sm:$0xf]  ;;  %271 = vmatpush.bf16.msra.mxu0 %v1725_v16  ;;  %v1709_v29 = vor.u32 %v1960_v24, %v1708_v23  ;;  %v1961_v30 = vld [vmem:[#allocation2 + $0xb4] sm:$0xf0]  ;;  %v1959_v31 = vld [vmem:[#allocation2 + $0xac] sm:$0xf]  ;;  %v1713_v33 = vor.u32 %v1958_v26, %v1710_v27 }
  0x13   :  { %v1718_v32 = vld [vmem:[#allocation2 + $0xb8] sm:$0xf0]  ;;  %300 = vmatpush.bf16.msra.mxu1 %v1729_v17  ;;  %v1717_v34 = vor.u32 %v1961_v30, %v1716_v28  ;;  %v1692_v35 = vld [vmem:[#allocation2 + $0x80] sm:$0xf]  ;;  %v1956_v36 = vld [vmem:[#allocation2 + $0x8c] sm:$0xf0] }
  0x14   :  { %329 = vmatpush.bf16.msra.mxu2 %v1733_v21  ;;  %v1954_v37 = vld [vmem:[#allocation2 + $0x84] sm:$0xf]  ;;  %358 = vmatpush.bf16.msra.mxu3 %v1737_v25  ;;  %v1721_v38 = vor.u32 %v1959_v31, %v1718_v32  ;;  %v1694_v39 = vld [vmem:[#allocation2 + $0x90] sm:$0xf0]  ;;  %v1700_v40 = vld [vmem:[#allocation2 + $0x88] sm:$0xf]  ;;  %v1693_v44 = vor.u32 %v1956_v36, %v1692_v35 }
  0x15   :  { %v1957_v41 = vld [vmem:[#allocation2 + $0x94] sm:$0xf0]  ;;  %v1955_v42 = vld [vmem:[#allocation2 + $0x8c] sm:$0xf]  ;;  %v1702_v43 = vld [vmem:[#allocation2 + $0x98] sm:$0xf0]  ;;  %v1697_v45 = vor.u32 %v1954_v37, %v1694_v39 }
  0x16   :  { %272 = vmatpush.bf16.msra.mxu0 %v1709_v29  ;;  %v1701_v46 = vor.u32 %v1957_v41, %v1700_v40  ;;  %v1676_v47 = vld [vmem:[#allocation2 + $0x60] sm:$0xf]  ;;  %v1952_v48 = vld [vmem:[#allocation2 + $0x6c] sm:$0xf0]  ;;  %v1950_v49 = vld [vmem:[#allocation2 + $0x64] sm:$0xf]  ;;  %v1705_v50 = vor.u32 %v1955_v42, %v1702_v43 }
  0x17   :  { %301 = vmatpush.bf16.msra.mxu1 %v1713_v33  ;;  %v1678_v51 = vld [vmem:[#allocation2 + $0x70] sm:$0xf0]  ;;  %v1684_v52 = vld [vmem:[#allocation2 + $0x68] sm:$0xf]  ;;  %v1953_v53 = vld [vmem:[#allocation2 + $0x74] sm:$0xf0]  ;;  %v1677_v56 = vor.u32 %v1952_v48, %v1676_v47 }
  0x18   :  { %330 = vmatpush.bf16.msra.mxu2 %v1717_v34  ;;  %359 = vmatpush.bf16.msra.mxu3 %v1721_v38  ;;  %v1951_v54 = vld [vmem:[#allocation2 + $0x6c] sm:$0xf]  ;;  %v1686_v55 = vld [vmem:[#allocation2 + $0x78] sm:$0xf0]  ;;  %v1681_v57 = vor.u32 %v1950_v49, %v1678_v51  ;;  %v1685_v58 = vor.u32 %v1953_v53, %v1684_v52  ;;  %v1660_v59 = vld [vmem:[#allocation2 + $0x40] sm:$0xf] }
  0x19   :  { %v1948_v60 = vld [vmem:[#allocation2 + $0x4c] sm:$0xf0]  ;;  %v1946_v61 = vld [vmem:[#allocation2 + $0x44] sm:$0xf]  ;;  %v1689_v62 = vor.u32 %v1951_v54, %v1686_v55  ;;  %v1662_v63 = vld [vmem:[#allocation2 + $0x50] sm:$0xf0] }
  0x1a   :  { %273 = vmatpush.bf16.msra.mxu0 %v1693_v44  ;;  %v1668_v0 = vld [vmem:[#allocation2 + $0x48] sm:$0xf]  ;;  %v1949_v1 = vld [vmem:[#allocation2 + $0x54] sm:$0xf0]  ;;  %v1947_v2 = vld [vmem:[#allocation2 + $0x4c] sm:$0xf]  ;;  %v1661_v4 = vor.u32 %v1948_v60, %v1660_v59  ;;  %v1665_v5 = vor.u32 %v1946_v61, %v1662_v63 }
  0x1b   :  { %302 = vmatpush.bf16.msra.mxu1 %v1697_v45  ;;  %v1670_v3 = vld [vmem:[#allocation2 + $0x58] sm:$0xf0]  ;;  %v1669_v6 = vor.u32 %v1949_v1, %v1668_v0  ;;  %v1644_v7 = vld [vmem:[#allocation2 + $0x20] sm:$0xf]  ;;  %v1944_v8 = vld [vmem:[#allocation2 + $0x2c] sm:$0xf0] }
  0x1c   :  { %331 = vmatpush.bf16.msra.mxu2 %v1701_v46  ;;  %360 = vmatpush.bf16.msra.mxu3 %v1705_v50  ;;  %v1942_v9 = vld [vmem:[#allocation2 + $0x24] sm:$0xf]  ;;  %v1673_v10 = vor.u32 %v1947_v2, %v1670_v3  ;;  %v1646_v11 = vld [vmem:[#allocation2 + $0x30] sm:$0xf0]  ;;  %v1652_v12 = vld [vmem:[#allocation2 + $0x28] sm:$0xf]  ;;  %v1645_v16 = vor.u32 %v1944_v8, %v1644_v7 }
  0x1d   :  { %v1945_v13 = vld [vmem:[#allocation2 + $0x34] sm:$0xf0]  ;;  %v1943_v14 = vld [vmem:[#allocation2 + $0x2c] sm:$0xf]  ;;  %v1654_v15 = vld [vmem:[#allocation2 + $0x38] sm:$0xf0]  ;;  %v1649_v19 = vor.u32 %v1942_v9, %v1646_v11 }
  0x1e   :  { %274 = vmatpush.bf16.msra.mxu0 %v1677_v56  ;;  %v1628_v17 = vld [vmem:[#allocation2] sm:$0xf]  ;;  %v1940_v18 = vld [vmem:[#allocation2 + $0xc] sm:$0xf0]  ;;  %v1653_v20 = vor.u32 %v1945_v13, %v1652_v12  ;;  %v1938_v21 = vld [vmem:[#allocation2 + $0x4] sm:$0xf]  ;;  %v1657_v24 = vor.u32 %v1943_v14, %v1654_v15 }
  0x1f   :  { %303 = vmatpush.bf16.msra.mxu1 %v1681_v57  ;;  %v1630_v22 = vld [vmem:[#allocation2 + $0x10] sm:$0xf0]  ;;  %v1636_v23 = vld [vmem:[#allocation2 + $0x8] sm:$0xf]  ;;  %v1941_v25 = vld [vmem:[#allocation2 + $0x14] sm:$0xf0]  ;;  %v1629_v31 = vor.u32 %v1940_v18, %v1628_v17 }
  0x20   :  { %332 = vmatpush.bf16.msra.mxu2 %v1685_v58  ;;  %361 = vmatpush.bf16.msra.mxu3 %v1689_v62  ;;  %v1939_v26 = vld [vmem:[#allocation2 + $0xc] sm:$0xf]  ;;  %v1638_v27 = vld [vmem:[#allocation2 + $0x18] sm:$0xf0]  ;;  %v56_v28 = vld [vmem:[%s2767_s0] sm:$0xff]  ;;  %v1633_v35 = vor.u32 %v1938_v21, %v1630_v22  ;;  %v1637_v36 = vor.u32 %v1941_v25, %v1636_v23 }
  0x21   :  { %v1868_v29 = vld [vmem:[#allocation4 + $0xe0] sm:$0xf]  ;;  %v2000_v30 = vld [vmem:[#allocation4 + $0xec] sm:$0xf0]  ;;  %v57_v32 = vld [vmem:[%s2767_s0 + $0x8] sm:$0xff]  ;;  %v1641_v37 = vor.u32 %v1939_v26, %v1638_v27 }
  0x22   :  { %275 = vmatpush.bf16.msra.mxu0 %v1661_v4  ;;  %v1998_v33 = vld [vmem:[#allocation4 + $0xe4] sm:$0xf]  ;;  %v1870_v34 = vld [vmem:[#allocation4 + $0xf0] sm:$0xf0]  ;;  %v2248_v38 = vor.u32 %v2000_v30, %v1868_v29  ;;  %v1999_v39 = vld [vmem:[#allocation4 + $0xec] sm:$0xf]  ;;  %v64_v42 = vpack.c.bf16 %v57_v32, %v56_v28 }
  0x23   :  { %304 = vmatpush.bf16.msra.mxu1 %v1665_v5  ;;  %v1876_v40 = vld [vmem:[#allocation4 + $0xe8] sm:$0xf]  ;;  %v2001_v41 = vld [vmem:[#allocation4 + $0xf4] sm:$0xf0]  ;;  %v2250_v43 = vor.u32 %v1998_v33, %v1870_v34  ;;  %v1878_v44 = vld [vmem:[#allocation4 + $0xf8] sm:$0xf0] }
  0x24   :  { %333 = vmatpush.bf16.msra.mxu2 %v1669_v6  ;;  %362 = vmatpush.bf16.msra.mxu3 %v1673_v10  ;;  %v1852_v45 = vld [vmem:[#allocation4 + $0xc0] sm:$0xf]  ;;  %v1996_v46 = vld [vmem:[#allocation4 + $0xcc] sm:$0xf0]  ;;  %v1994_v47 = vld [vmem:[#allocation4 + $0xc4] sm:$0xf]  ;;  %v2252_v50 = vor.u32 %v2001_v41, %v1876_v40  ;;  %v2255_v51 = vor.u32 %v1999_v39, %v1878_v44 }
  0x25   :  { %v1854_v48 = vld [vmem:[#allocation4 + $0xd0] sm:$0xf0]  ;;  %v1995_v49 = vld [vmem:[#allocation4 + $0xcc] sm:$0xf]  ;;  %v2257_v52 = vor.u32 %v1996_v46, %v1852_v45  ;;  %v1860_v53 = vld [vmem:[#allocation4 + $0xc8] sm:$0xf] }
  0x26   :  { %276 = vmatpush.bf16.msra.mxu0 %v1645_v16  ;;  %v1997_v54 = vld [vmem:[#allocation4 + $0xd4] sm:$0xf0]  ;;  %v2260_v55 = vor.u32 %v1994_v47, %v1854_v48  ;;  %v1862_v56 = vld [vmem:[#allocation4 + $0xd8] sm:$0xf0]  ;;  %v1836_v57 = vld [vmem:[#allocation4 + $0xa0] sm:$0xf] }
  0x27   :  { %305 = vmatpush.bf16.msra.mxu1 %v1649_v19  ;;  %v1992_v58 = vld [vmem:[#allocation4 + $0xac] sm:$0xf0]  ;;  %v1990_v59 = vld [vmem:[#allocation4 + $0xa4] sm:$0xf]  ;;  %v1838_v60 = vld [vmem:[#allocation4 + $0xb0] sm:$0xf0]  ;;  %v2263_v61 = vor.u32 %v1997_v54, %v1860_v53  ;;  %v2267_v62 = vor.u32 %v1995_v49, %v1862_v56 }
  0x28   :  { %334 = vmatpush.bf16.msra.mxu2 %v1653_v20  ;;  %363 = vmatpush.bf16.msra.mxu3 %v1657_v24  ;;  %v2269_v63 = vor.u32 %v1992_v58, %v1836_v57  ;;  %v1991_v0 = vld [vmem:[#allocation4 + $0xac] sm:$0xf]  ;;  %v1844_v1 = vld [vmem:[#allocation4 + $0xa8] sm:$0xf]  ;;  %v1993_v2 = vld [vmem:[#allocation4 + $0xb4] sm:$0xf0]  ;;  %v2272_v3 = vor.u32 %v1990_v59, %v1838_v60 }
  0x29   :  { %v1846_v4 = vld [vmem:[#allocation4 + $0xb8] sm:$0xf0]  ;;  %v1820_v5 = vld [vmem:[#allocation4 + $0x80] sm:$0xf]  ;;  %v1988_v6 = vld [vmem:[#allocation4 + $0x8c] sm:$0xf0]  ;;  %v2275_v9 = vor.u32 %v1993_v2, %v1844_v1 }
  0x2a   :  { %277 = vmatpush.bf16.msra.mxu0 %v1629_v31  ;;  %v1986_v7 = vld [vmem:[#allocation4 + $0x84] sm:$0xf]  ;;  %v1822_v8 = vld [vmem:[#allocation4 + $0x90] sm:$0xf0]  ;;  %v2282_v11 = vor.u32 %v1991_v0, %v1846_v4  ;;  %v2284_v12 = vor.u32 %v1988_v6, %v1820_v5  ;;  %v1987_v13 = vld [vmem:[#allocation4 + $0x8c] sm:$0xf] }
  0x2b   :  { %306 = vmatpush.bf16.msra.mxu1 %v1633_v35  ;;  %v58_v10 = vld [vmem:[%s2767_s0 + $0x10] sm:$0xff]  ;;  %v1828_v14 = vld [vmem:[#allocation4 + $0x88] sm:$0xf]  ;;  %v1989_v15 = vld [vmem:[#allocation4 + $0x94] sm:$0xf0]  ;;  %v2287_v16 = vor.u32 %v1986_v7, %v1822_v8 }
  0x2c   :  { %335 = vmatpush.bf16.msra.mxu2 %v1637_v36  ;;  %364 = vmatpush.bf16.msra.mxu3 %v1641_v37  ;;  %v1830_v17 = vld [vmem:[#allocation4 + $0x98] sm:$0xf0]  ;;  %v1804_v18 = vld [vmem:[#allocation4 + $0x60] sm:$0xf]  ;;  %v1984_v19 = vld [vmem:[#allocation4 + $0x6c] sm:$0xf0]  ;;  %v2293_v23 = vor.u32 %v1989_v15, %v1828_v14 }
  0x2d   :  { %278 = vmatmul.bf16.vlgmr.msra.gmra.mxu0 %v64_v42  ;;  %v59_v20 = vld [vmem:[%s2767_s0 + $0x18] sm:$0xff]  ;;  %v1982_v21 = vld [vmem:[#allocation4 + $0x64] sm:$0xf]  ;;  %v1806_v22 = vld [vmem:[#allocation4 + $0x70] sm:$0xf0]  ;;  %v2297_v24 = vor.u32 %v1987_v13, %v1830_v17  ;;  %v2299_v25 = vor.u32 %v1984_v19, %v1804_v18 }
  0x2e   :  { %578 = vmatpush.bf16.msrb.mxu0 %v2248_v38  ;;  %307 = vmatmul.bf16.vlgmr.msra.gmra.mxu1 %v64_v42  ;;  %v1983_v26 = vld [vmem:[#allocation4 + $0x6c] sm:$0xf]  ;;  %v1812_v27 = vld [vmem:[#allocation4 + $0x68] sm:$0xf]  ;;  %v1985_v28 = vld [vmem:[#allocation4 + $0x74] sm:$0xf0]  ;;  %v65_v29 = vpack.c.bf16 %v59_v20, %v58_v10  ;;  %v2302_v30 = vor.u32 %v1982_v21, %v1806_v22 }
  0x2f   :  { %591 = vmatpush.bf16.msrb.mxu1 %v2250_v43  ;;  %336 = vmatmul.bf16.vlgmr.msra.gmra.mxu2 %v64_v42  ;;  %v1814_v31 = vld [vmem:[#allocation4 + $0x78] sm:$0xf0]  ;;  %v1788_v32 = vld [vmem:[#allocation4 + $0x40] sm:$0xf]  ;;  %v1980_v33 = vld [vmem:[#allocation4 + $0x4c] sm:$0xf0]  ;;  %v2305_v36 = vor.u32 %v1985_v28, %v1812_v27 }
  0x30   :  { %365 = vmatmul.bf16.vlgmr.msra.gmra.mxu3 %v64_v42  ;;  %604 = vmatpush.bf16.msrb.mxu2 %v2252_v50  ;;  %v1978_v34 = vld [vmem:[#allocation4 + $0x44] sm:$0xf]  ;;  %v1790_v35 = vld [vmem:[#allocation4 + $0x50] sm:$0xf0]  ;;  %v2309_v37 = vor.u32 %v1983_v26, %v1814_v31  ;;  %v2311_v39 = vor.u32 %v1980_v33, %v1788_v32  ;;  %v1979_v41 = vld [vmem:[#allocation4 + $0x4c] sm:$0xf] }
  0x31   :  { %617 = vmatpush.bf16.msrb.mxu3 %v2255_v51  ;;  %v2314_v40 = vor.u32 %v1978_v34, %v1790_v35  ;;  %v1798_v42 = vld [vmem:[#allocation4 + $0x58] sm:$0xf0]  ;;  %v1772_v44 = vld [vmem:[#allocation4 + $0x20] sm:$0xf]  ;;  %v1976_v45 = vld [vmem:[#allocation4 + $0x2c] sm:$0xf0] }
  0x32   :  { %579 = vmatpush.bf16.msrb.mxu0 %v2257_v52  ;;  %v1974_v46 = vld [vmem:[#allocation4 + $0x24] sm:$0xf]  ;;  %v2319_v47 = vor.u32 %v1979_v41, %v1798_v42  ;;  %v2321_v48 = vor.u32 %v1976_v45, %v1772_v44  ;;  %v1774_v49 = vld [vmem:[#allocation4 + $0x30] sm:$0xf0]  ;;  %v1796_v53 = vld [vmem:[#allocation4 + $0x48] sm:$0xf] }
  0x33   :  { %592 = vmatpush.bf16.msrb.mxu1 %v2260_v55  ;;  %v1981_v54 = vld [vmem:[#allocation4 + $0x54] sm:$0xf0]  ;;  %v2324_v56 = vor.u32 %v1974_v46, %v1774_v49  ;;  %v1975_v58 = vld [vmem:[#allocation4 + $0x2c] sm:$0xf]  ;;  %v1782_v59 = vld [vmem:[#allocation4 + $0x38] sm:$0xf0] }
  0x34   :  { %605 = vmatpush.bf16.msrb.mxu2 %v2263_v61  ;;  %v2326_v57 = vor.u32 %v1981_v54, %v1796_v53  ;;  %v1756_v60 = vld [vmem:[#allocation4] sm:$0xf]  ;;  %v1972_v0 = vld [vmem:[#allocation4 + $0xc] sm:$0xf0]  ;;  %v1970_v1 = vld [vmem:[#allocation4 + $0x4] sm:$0xf]  ;;  %v2331_v6 = vor.u32 %v1975_v58, %v1782_v59 }
  0x35   :  { %618 = vmatpush.bf16.msrb.mxu3 %v2267_v62  ;;  %v1758_v2 = vld [vmem:[#allocation4 + $0x10] sm:$0xf0]  ;;  %v1780_v4 = vld [vmem:[#allocation4 + $0x28] sm:$0xf]  ;;  %v1977_v5 = vld [vmem:[#allocation4 + $0x34] sm:$0xf0]  ;;  %v2333_v7 = vor.u32 %v1972_v0, %v1756_v60 }
  0x36   :  { %580 = vmatpush.bf16.msrb.mxu0 %v2269_v63  ;;  %v2335_v8 = vor.u32 %v1977_v5, %v1780_v4  ;;  %v1764_v10 = vld [vmem:[#allocation4 + $0x8] sm:$0xf]  ;;  %v1973_v13 = vld [vmem:[#allocation4 + $0x14] sm:$0xf0]  ;;  %v2338_v14 = vor.u32 %v1970_v1, %v1758_v2  ;;  %v1971_v15 = vld [vmem:[#allocation4 + $0xc] sm:$0xf] }
  0x37   :  { %593 = vmatpush.bf16.msrb.mxu1 %v2272_v3  ;;  %v1766_v17 = vld [vmem:[#allocation4 + $0x18] sm:$0xf0]  ;;  %v60_v18 = vld [vmem:[%s2767_s0 + $0x20] sm:$0xff]  ;;  %v61_v19 = vld [vmem:[%s2767_s0 + $0x28] sm:$0xff]  ;;  %v2347_v20 = vor.u32 %v1973_v13, %v1764_v10 }
  0x38   :  { %606 = vmatpush.bf16.msrb.mxu2 %v2275_v9  ;;  %v2351_v21 = vor.u32 %v1971_v15, %v1766_v17  ;;  %v66_v22 = vpack.c.bf16 %v61_v19, %v60_v18  ;;  %v62_v26 = vld [vmem:[%s2767_s0 + $0x30] sm:$0xff]  ;;  %v63_v27 = vld [vmem:[%s2767_s0 + $0x38] sm:$0xff]  ;;  %v100_v33 = vld [vmem:[%s2770_s3] sm:$0xf] }
  0x39   :  { %619 = vmatpush.bf16.msrb.mxu3 %v2282_v11  ;;  %v67_v28 = vpack.c.bf16 %v63_v27, %v62_v26  ;;  %v103_v35 = vperm.slane %v100_v33, 1  ;;  %v2437_v46 = vperm.slane %v100_v33, 2  ;;  %v2439_v49 = vperm.slane %v100_v33, 0 }
  0x3a   :  { %581 = vmatpush.bf16.msrb.mxu0 %v2284_v12  ;;  %v2441_v53 = vperm.slane %v100_v33, 3 }
  0x3b   :  { %594 = vmatpush.bf16.msrb.mxu1 %v2287_v16 }
  0x3c   :  { %607 = vmatpush.bf16.msrb.mxu2 %v2293_v23 }
  0x3d   :  { %620 = vmatpush.bf16.msrb.mxu3 %v2297_v24  ;;  %283 = vmatmul.bf16.gmra.mxu0 %v65_v29 }
  0x3e   :  { %582 = vmatpush.bf16.msrb.mxu0 %v2299_v25  ;;  %312 = vmatmul.bf16.gmra.mxu1 %v65_v29 }
  0x3f   :  { %595 = vmatpush.bf16.msrb.mxu1 %v2302_v30  ;;  %341 = vmatmul.bf16.gmra.mxu2 %v65_v29 }
  0x40   :  { %370 = vmatmul.bf16.gmra.mxu3 %v65_v29  ;;  %608 = vmatpush.bf16.msrb.mxu2 %v2305_v36  ;;  %v2200_v29 = vmov 0  }
  0x41   :  { %621 = vmatpush.bf16.msrb.mxu3 %v2309_v37 }
  0x42   :  { %583 = vmatpush.bf16.msrb.mxu0 %v2311_v39 }
  0x43   :  { %596 = vmatpush.bf16.msrb.mxu1 %v2314_v40 }
  0x44   :  { %609 = vmatpush.bf16.msrb.mxu2 %v2326_v57 }
  0x45   :  { %622 = vmatpush.bf16.msrb.mxu3 %v2319_v47 }
  0x46   :  { %584 = vmatpush.bf16.msrb.mxu0 %v2321_v48 }
  0x47   :  { %597 = vmatpush.bf16.msrb.mxu1 %v2324_v56 }
  0x48   :  { %610 = vmatpush.bf16.msrb.mxu2 %v2335_v8 }
  0x49   :  { %623 = vmatpush.bf16.msrb.mxu3 %v2331_v6 }
  0x4a   :  { %585 = vmatpush.bf16.msrb.mxu0 %v2333_v7 }
  0x4b   :  { %598 = vmatpush.bf16.msrb.mxu1 %v2338_v14 }
  0x4c   :  { %611 = vmatpush.bf16.msrb.mxu2 %v2347_v20 }
  0x4d   :  { %624 = vmatpush.bf16.msrb.mxu3 %v2351_v21  ;;  %288 = vmatmul.bf16.gmra.mxu0 %v66_v22 }
  0x4e   :  { %698 = vmatpush.bf16.msra.mxu0 %v2248_v38  ;;  %317 = vmatmul.bf16.gmra.mxu1 %v66_v22 }
  0x4f   :  { %711 = vmatpush.bf16.msra.mxu1 %v2250_v43  ;;  %346 = vmatmul.bf16.gmra.mxu2 %v66_v22 }
  0x50   :  { %724 = vmatpush.bf16.msra.mxu2 %v2252_v50  ;;  %375 = vmatmul.bf16.gmra.mxu3 %v66_v22 }
  0x51   :  { %737 = vmatpush.bf16.msra.mxu3 %v2255_v51 }
  0x52   :  { %699 = vmatpush.bf16.msra.mxu0 %v2257_v52 }
  0x53   :  { %712 = vmatpush.bf16.msra.mxu1 %v2260_v55 }
  0x54   :  { %725 = vmatpush.bf16.msra.mxu2 %v2263_v61 }
  0x55   :  { %738 = vmatpush.bf16.msra.mxu3 %v2267_v62 }
  0x56   :  { %700 = vmatpush.bf16.msra.mxu0 %v2269_v63 }
  0x57   :  { %713 = vmatpush.bf16.msra.mxu1 %v2272_v3 }
  0x58   :  { %726 = vmatpush.bf16.msra.mxu2 %v2275_v9 }
  0x59   :  { %739 = vmatpush.bf16.msra.mxu3 %v2282_v11 }
  0x5a   :  { %701 = vmatpush.bf16.msra.mxu0 %v2284_v12 }
  0x5b   :  { %714 = vmatpush.bf16.msra.mxu1 %v2287_v16 }
  0x5c   :  { %727 = vmatpush.bf16.msra.mxu2 %v2293_v23 }
  0x5d   :  { %740 = vmatpush.bf16.msra.mxu3 %v2297_v24  ;;  %293 = vmatmul.bf16.gmra.mxu0 %v67_v28 }
  0x5e   :  { %702 = vmatpush.bf16.msra.mxu0 %v2299_v25  ;;  %322 = vmatmul.bf16.gmra.mxu1 %v67_v28 }
  0x5f   :  { %715 = vmatpush.bf16.msra.mxu1 %v2302_v30  ;;  %351 = vmatmul.bf16.gmra.mxu2 %v67_v28 }
  0x60   :  { %728 = vmatpush.bf16.msra.mxu2 %v2305_v36  ;;  %380 = vmatmul.bf16.gmra.mxu3 %v67_v28 }
  0x61   :  { %741 = vmatpush.bf16.msra.mxu3 %v2309_v37 }
  0x62   :  { %703 = vmatpush.bf16.msra.mxu0 %v2311_v39 }
  0x63   :  { %716 = vmatpush.bf16.msra.mxu1 %v2314_v40 }
  0x64   :  { %729 = vmatpush.bf16.msra.mxu2 %v2326_v57 }
  0x65   :  { %742 = vmatpush.bf16.msra.mxu3 %v2319_v47 }
  0x66   :  { %704 = vmatpush.bf16.msra.mxu0 %v2321_v48 }
  0x67   :  { %717 = vmatpush.bf16.msra.mxu1 %v2324_v56 }
  0x68   :  { %730 = vmatpush.bf16.msra.mxu2 %v2335_v8 }
  0x69   :  { %743 = vmatpush.bf16.msra.mxu3 %v2331_v6 }
  0x6a   :  { %705 = vmatpush.bf16.msra.mxu0 %v2333_v7 }
  0x6b   :  { %718 = vmatpush.bf16.msra.mxu1 %v2338_v14 }
  0x6c   :  { %731 = vmatpush.bf16.msra.mxu2 %v2347_v20 }
  0x6d   :  { %744 = vmatpush.bf16.msra.mxu3 %v2351_v21  ;;  %586 = vmatmul.bf16.vlgmr.msrb.gmra.mxu0 %v2200_v29 }
  0x6e   :  { %599 = vmatmul.bf16.vlgmr.msrb.gmra.mxu1 %v2200_v29  ;;  %818 = vmatpush.bf16.msrb.mxu0 %v2248_v38 }
  0x6f   :  { %612 = vmatmul.bf16.vlgmr.msrb.gmra.mxu2 %v2200_v29  ;;  %831 = vmatpush.bf16.msrb.mxu1 %v2250_v43 }
  0x70   :  { %625 = vmatmul.bf16.vlgmr.msrb.gmra.mxu3 %v2200_v29  ;;  %844 = vmatpush.bf16.msrb.mxu2 %v2252_v50 }
  0x71   :  { %857 = vmatpush.bf16.msrb.mxu3 %v2255_v51 }
  0x72   :  { %819 = vmatpush.bf16.msrb.mxu0 %v2257_v52 }
  0x73   :  { %832 = vmatpush.bf16.msrb.mxu1 %v2260_v55 }
  0x74   :  { %845 = vmatpush.bf16.msrb.mxu2 %v2263_v61 }
  0x75   :  { %858 = vmatpush.bf16.msrb.mxu3 %v2267_v62 }
  0x76   :  { %820 = vmatpush.bf16.msrb.mxu0 %v2269_v63 }
  0x77   :  { %833 = vmatpush.bf16.msrb.mxu1 %v2272_v3 }
  0x78   :  { %846 = vmatpush.bf16.msrb.mxu2 %v2275_v9 }
  0x79   :  { %859 = vmatpush.bf16.msrb.mxu3 %v2282_v11 }
  0x7a   :  { %821 = vmatpush.bf16.msrb.mxu0 %v2284_v12 }
  0x7b   :  { %834 = vmatpush.bf16.msrb.mxu1 %v2287_v16 }
  0x7c   :  { %847 = vmatpush.bf16.msrb.mxu2 %v2293_v23 }
  0x7d   :  { %860 = vmatpush.bf16.msrb.mxu3 %v2297_v24 }
  0x7e   :  { %822 = vmatpush.bf16.msrb.mxu0 %v2299_v25 }
  0x7f   :  { %835 = vmatpush.bf16.msrb.mxu1 %v2302_v30 }
  0x80   :  { %848 = vmatpush.bf16.msrb.mxu2 %v2305_v36 }
  0x81   :  { %861 = vmatpush.bf16.msrb.mxu3 %v2309_v37 }
  0x82   :  { %823 = vmatpush.bf16.msrb.mxu0 %v2311_v39 }
  0x83   :  { %836 = vmatpush.bf16.msrb.mxu1 %v2314_v40 }
  0x84   :  { %849 = vmatpush.bf16.msrb.mxu2 %v2326_v57 }
  0x85   :  { %862 = vmatpush.bf16.msrb.mxu3 %v2319_v47 }
  0x86   :  { %824 = vmatpush.bf16.msrb.mxu0 %v2321_v48 }
  0x87   :  { %837 = vmatpush.bf16.msrb.mxu1 %v2324_v56 }
  0x88   :  { %850 = vmatpush.bf16.msrb.mxu2 %v2335_v8 }
  0x89   :  { %863 = vmatpush.bf16.msrb.mxu3 %v2331_v6 }
  0x8a   :  { %825 = vmatpush.bf16.msrb.mxu0 %v2333_v7 }
  0x8b   :  { %838 = vmatpush.bf16.msrb.mxu1 %v2338_v14 }
  0x8c   :  { %851 = vmatpush.bf16.msrb.mxu2 %v2347_v20 }
  0x8d   :  { %864 = vmatpush.bf16.msrb.mxu3 %v2351_v21 }
  0xaa   :  { %v279_v31 = vpop.f32.mrf.mxu0 }
  0xab   :  { %v308_v32 = vpop.f32.mrf.mxu1 }
  0xb2   :  { %v2429_v34 = vpop.f32.mrf.mxu2  ;;  %v2433_v42 = vpop.f32.mrf.mxu0 }
  0xb3   :  { %v2431_v41 = vpop.f32.mrf.mxu3  ;;  %v310_v44 = vpop.f32.mrf.mxu1 }
  0xb4   :  { %v2435_v45 = vadd.f32 %v310_v44, %v103_v35 }
  0xba   :  { %v339_v54 = vpop.f32.mrf.mxu2  ;;  %v284_v60 = vpop.f32.mrf.mxu0 }
  0xbb   :  { %v2444_v58 = vadd.f32 %v339_v54, %v2437_v46  ;;  %v368_v59 = vpop.f32.mrf.mxu3  ;;  %v2450_v1 = vadd.f32 %v284_v60, %v2439_v49  ;;  %v313_v2 = vpop.f32.mrf.mxu1 }
  0xbc   :  { %v2447_v0 = vadd.f32 %v368_v59, %v2441_v53  ;;  %v2452_v4 = vadd.f32 %v313_v2, %v103_v35 }
  0xc2   :  { %v342_v5 = vpop.f32.mrf.mxu2  ;;  %v286_v15 = vpop.f32.mrf.mxu0 }
  0xc3   :  { %v2455_v10 = vadd.f32 %v342_v5, %v2437_v46  ;;  %v371_v13 = vpop.f32.mrf.mxu3  ;;  %v2461_v18 = vadd.f32 %v286_v15, %v2439_v49  ;;  %v315_v19 = vpop.f32.mrf.mxu1 }
  0xc4   :  { %v2458_v17 = vadd.f32 %v371_v13, %v2441_v53  ;;  %v2463_v22 = vadd.f32 %v315_v19, %v103_v35 }
  0xc5   :  { %2774 = vst [vmem:[#allocation8_spill] sm:$0xff] %v2455_v10 }
  0xc6   :  { %2775 = vst [vmem:[#allocation9_spill] sm:$0xff] %v2458_v17 }
  0xc7   :  { %2776 = vst [vmem:[#allocation10_spill] sm:$0xff] %v2461_v18 }
  0xc8   :  { %2777 = vst [vmem:[#allocation11_spill] sm:$0xff] %v2463_v22 }
  0xca   :  { %v344_v26 = vpop.f32.mrf.mxu2  ;;  %v289_v29 = vpop.f32.mrf.mxu0 }
  0xcb   :  { %v2466_v27 = vadd.f32 %v344_v26, %v2437_v46  ;;  %v373_v28 = vpop.f32.mrf.mxu3  ;;  %v2472_v44 = vadd.f32 %v289_v29, %v2439_v49  ;;  %v318_v54 = vpop.f32.mrf.mxu1 }
  0xcc   :  { %v2469_v33 = vadd.f32 %v373_v28, %v2441_v53  ;;  %v2474_v59 = vadd.f32 %v318_v54, %v103_v35 }
  0xcd   :  { %2778 = vst [vmem:[#allocation12_spill] sm:$0xff] %v2466_v27 }
  0xce   :  { %2779 = vst [vmem:[#allocation13_spill] sm:$0xff] %v2469_v33 }
  0xcf   :  { %2780 = vst [vmem:[#allocation14_spill] sm:$0xff] %v2472_v44 }
  0xd0   :  { %2781 = vst [vmem:[#allocation15_spill] sm:$0xff] %v2474_v59 }
  0xd2   :  { %v347_v60 = vpop.f32.mrf.mxu2  ;;  %v291_v13 = vpop.f32.mrf.mxu0 }
  0xd3   :  { %v2477_v2 = vadd.f32 %v347_v60, %v2437_v46  ;;  %v376_v5 = vpop.f32.mrf.mxu3  ;;  %v2483_v19 = vadd.f32 %v291_v13, %v2439_v49  ;;  %v320_v26 = vpop.f32.mrf.mxu1 }
  0xd4   :  { %v2480_v15 = vadd.f32 %v376_v5, %v2441_v53  ;;  %v2485_v28 = vadd.f32 %v320_v26, %v103_v35 }
  0xd5   :  { %2782 = vst [vmem:[#allocation16_spill] sm:$0xff] %v2477_v2 }
  0xd6   :  { %2783 = vst [vmem:[#allocation17_spill] sm:$0xff] %v2480_v15 }
  0xd7   :  { %2784 = vst [vmem:[#allocation18_spill] sm:$0xff] %v2483_v19 }
  0xd8   :  { %2785 = vst [vmem:[#allocation19_spill] sm:$0xff] %v2485_v28 }
  0xda   :  { %v349_v29 = vpop.f32.mrf.mxu2  ;;  %v294_v59 = vpop.f32.mrf.mxu0 }
  0xdb   :  { %v2488_v44 = vadd.f32 %v349_v29, %v2437_v46  ;;  %v378_v54 = vpop.f32.mrf.mxu3  ;;  %v2494_v2 = vadd.f32 %v294_v59, %v2439_v49  ;;  %v323_v5 = vpop.f32.mrf.mxu1  ;;  %v280_v59 = vadd.f32 %v279_v31, %v2439_v49  ;;  %v367_v31 = vadd.f32 %v2431_v41, %v2441_v53 }
  0xdc   :  { %v2491_v60 = vadd.f32 %v378_v54, %v2441_v53  ;;  %v2496_v15 = vadd.f32 %v323_v5, %v103_v35  ;;  %v309_v5 = vadd.f32 %v308_v32, %v103_v35 }
  0xdd   :  { %2786 = vst [vmem:[#allocation20_spill] sm:$0xff] %v2488_v44 }
  0xde   :  { %2787 = vst [vmem:[#allocation21_spill] sm:$0xff] %v2491_v60 }
  0xdf   :  { %2788 = vst [vmem:[#allocation22_spill] sm:$0xff] %v2494_v2 }
  0xe0   :  { %2789 = vst [vmem:[#allocation23_spill] sm:$0xff] %v2496_v15 }
  0xe2   :  { %v352_v13 = vpop.f32.mrf.mxu2  ;;  %v296_v28 = vpop.f32.mrf.mxu0 }
  0xe3   :  { %v2499_v19 = vadd.f32 %v352_v13, %v2437_v46  ;;  %v381_v26 = vpop.f32.mrf.mxu3  ;;  %v2505_v44 = vadd.f32 %v296_v28, %v2439_v49  ;;  %v325_v54 = vpop.f32.mrf.mxu1 }
  0xe4   :  { %v2502_v29 = vadd.f32 %v381_v26, %v2441_v53  ;;  %v2507_v60 = vadd.f32 %v325_v54, %v103_v35 }
  0xe5   :  { %2790 = vst [vmem:[#allocation24_spill] sm:$0xff] %v2499_v19 }
  0xe6   :  { %2791 = vst [vmem:[#allocation25_spill] sm:$0xff] %v2502_v29 }
  0xe7   :  { %2792 = vst [vmem:[#allocation26_spill] sm:$0xff] %v2505_v44 }
  0xe8   :  { %2793 = vst [vmem:[#allocation27_spill] sm:$0xff] %v2507_v60 }
  0xea   :  { %v354_v2 = vpop.f32.mrf.mxu2  ;;  %v587_v19 = vpop.f32.mrf.mxu0 }
  0xeb   :  { %v2511_v15 = vadd.f32 %v354_v2, %v2437_v46  ;;  %v383_v13 = vpop.f32.mrf.mxu3  ;;  %v630_v26 = vadd.f32 %v587_v19, %v280_v59  ;;  %v600_v29 = vpop.f32.mrf.mxu1 }
  0xec   :  { %v2514_v27 = vadd.f32 %v383_v13, %v2441_v53  ;;  %v631_v33 = vadd.f32 %v600_v29, %v309_v5 }
  0xed   :  { %2794 = vst [vmem:[#allocation28_spill] sm:$0xff] %v2511_v15  ;;  %v1882_v28 = vmul.f32 -1.442695, %v630_v26 }
  0xee   :  { %2795 = vst [vmem:[#allocation29_spill] sm:$0xff] %v2514_v27  ;;  %v1883_v44 = vmul.f32 -1.442695, %v631_v33 }
  0xef   :  { %2016 = vpow2.f32 %v1882_v28 }
  0xf0   :  { %2018 = vpow2.f32 %v1883_v44  ;;  %v338_v44 = vadd.f32 %v2429_v34, %v2437_v46 }
  0xf2   :  { %v613_v54 = vpop.f32.mrf.mxu2  ;;  %v589_v35 = vpop.f32.mrf.mxu0 }
  0xf3   :  { %v626_v32 = vpop.f32.mrf.mxu3  ;;  %v602_v15 = vpop.f32.mrf.mxu1  ;;  %v632_v53 = vadd.f32 %v613_v54, %v338_v44 }
  0xf4   :  { %v633_v2 = vadd.f32 %v626_v32, %v367_v31 }
  0xf5   :  { %v2017_v60 = vpop.eup %2016 }
  0xf6   :  { %v1884_v22 = vmul.f32 -1.442695, %v633_v2  ;;  %v2019_v18 = vpop.eup %2018  ;;  %v637_v13 = vadd.f32 1.0, %v2017_v60 }
  0xf7   :  { %v656_v27 = vadd.f32 1.0, %v2019_v18 }
  0xf8   :  { %2020 = vpow2.f32 %v1884_v22  ;;  %v649_v60 = vand.u32 2147483648, %v637_v13  ;;  %v647_v32 = vand.u32 2147483647, %v637_v13  ;;  %vm643_vm2 = vweird.f32 %v637_v13 }
  0xf9   :  { %2022 = vrcp.f32 %v637_v13  ;;  %v668_v18 = vand.u32 2147483648, %v656_v27  ;;  %v666_v2 = vand.u32 2147483647, %v656_v27  ;;  %vm662_vm3 = vweird.f32 %v656_v27 }
  0xfa   :  { %2024 = vrcp.f32 %v656_v27  ;;  %v615_v19 = vpop.f32.mrf.mxu2  ;;  %v650_v54 = vor.u32 1.1754944e-38, %v649_v60  ;;  %vm648_vm5 = vcmp.eq.f32.partialorder %v647_v32, 8.507059e+37 }
  0xfb   :  { %v628_v33 = vpop.f32.mrf.mxu3  ;;  %vm667_vm7 = vcmp.eq.f32.partialorder %v666_v2, 8.507059e+37 }
  0xfc   :  { %v669_v33 = vor.u32 1.1754944e-38, %v668_v18 }
  0xfe   :  { %v2021_v29 = vpop.eup %2020 }
  0xff   :  { %v2023_v41 = vpop.eup %2022  ;;  %v676_v59 = vadd.f32 1.0, %v2021_v29 }
 0x100   :  { %v2025_v5 = vpop.eup %2024  ;;  %v639_v26 = vmul.f32 %v2023_v41, %v637_v13  ;;  %vm644_vm0 = vweird.f32 %v2023_v41 }
 0x101   :  { %v658_v15 = vmul.f32 %v2025_v5, %v656_v27  ;;  %2026 = vrcp.f32 %v676_v59  ;;  %vm663_vm1 = vweird.f32 %v2025_v5  ;;  %vm645_vm4 = vmor %vm643_vm2, %vm644_vm0  ;;  %v688_v60 = vand.u32 2147483648, %v676_v59 }
 0x102   :  { %v640_v28 = vsub.f32 1.0, %v639_v26  ;;  %2028 = vtanh.f32 %v632_v53  ;;  %vm664_vm6 = vmor %vm662_vm3, %vm663_vm1  ;;  %vm682_vm9 = vweird.f32 %v676_v59 }
 0x103   :  { %v659_v31 = vsub.f32 1.0, %v658_v15  ;;  %v689_v32 = vor.u32 1.1754944e-38, %v688_v60 }
 0x104   :  { %v641_v22 = vmul.f32 %v2023_v41, %v640_v28 }
 0x105   :  { %v660_v35 = vmul.f32 %v2025_v5, %v659_v31 }
 0x106   :  { %v642_v34 = vadd.f32 %v2023_v41, %v641_v22 }
 0x107   :  { %v2027_v46 = vpop.eup %2026  ;;  %v661_v19 = vadd.f32 %v2025_v5, %v660_v35 }
 0x108   :  { %v646_v44 = vsel %vm645_vm4, %v2023_v41, %v642_v34  ;;  %v678_v29 = vmul.f32 %v2027_v46, %v676_v59  ;;  %v2029_v53 = vpop.eup %2028  ;;  %vm683_vm8 = vweird.f32 %v2027_v46  ;;  %v686_v41 = vand.u32 2147483647, %v676_v59 }
 0x109   :  { %v651_v26 = vsel %vm648_vm5, %v650_v54, %v646_v44  ;;  %v665_v15 = vsel %vm664_vm6, %v2025_v5, %v661_v19  ;;  %vm684_vm10 = vmor %vm682_vm9, %vm683_vm8 }
 0x10a   :  { %v670_v28 = vsel %vm667_vm7, %v669_v33, %v665_v15  ;;  %v693_v31 = vmul.f32 %v2029_v53, %v651_v26  ;;  %v679_v10 = vsub.f32 1.0, %v678_v29  ;;  %vm687_vm11 = vcmp.eq.f32.partialorder %v686_v41, 8.507059e+37 }
 0x10b   :  { %v692_v17 = vmul.f32 0.0, %v670_v28 }
 0x10c   :  { %v680_v22 = vmul.f32 %v2027_v46, %v679_v10  ;;  %v282_v10 = vadd.f32 %v2433_v42, %v2439_v49 }
 0x10d   :  { %v2520_v13 = vadd.f32 %v693_v31, %v692_v17 }
 0x10e   :  { %v681_v27 = vadd.f32 %v2027_v46, %v680_v22 }
 0x10f   :  { %2030 = vtanh.f32 %v2520_v13 }
 0x110   :  { %v685_v18 = vsel %vm684_vm10, %v2027_v46, %v681_v27 }
 0x111   :  { %v690_v35 = vsel %vm687_vm11, %v689_v32, %v685_v18 }
 0x115   :  { %v2031_v5 = vpop.eup %2030 }
 0x116   :  { %v696_v2 = vmul.f32 %v2031_v5, %v690_v35 }
 0x118   :  { %v697_v34 = vpack.c.bf16 %v696_v2, %v696_v2 }
 0x11a   :  { %706 = vmatmul.bf16.vlgmr.msra.gmra.mxu0 %v697_v34  ;;  %719 = vmatmul.bf16.vlgmr.msra.gmra.mxu1 %v697_v34 }
 0x11b   :  { %732 = vmatmul.bf16.vlgmr.msra.gmra.mxu2 %v697_v34  ;;  %745 = vmatmul.bf16.vlgmr.msra.gmra.mxu3 %v697_v34 }
 0x11c   :  { %938 = vmatpush.bf16.msra.mxu0 %v2248_v38  ;;  %951 = vmatpush.bf16.msra.mxu1 %v2250_v43 }
 0x11d   :  { %964 = vmatpush.bf16.msra.mxu2 %v2252_v50  ;;  %977 = vmatpush.bf16.msra.mxu3 %v2255_v51 }
 0x120   :  { %939 = vmatpush.bf16.msra.mxu0 %v2257_v52  ;;  %952 = vmatpush.bf16.msra.mxu1 %v2260_v55 }
 0x121   :  { %965 = vmatpush.bf16.msra.mxu2 %v2263_v61  ;;  %978 = vmatpush.bf16.msra.mxu3 %v2267_v62 }
 0x124   :  { %940 = vmatpush.bf16.msra.mxu0 %v2269_v63  ;;  %953 = vmatpush.bf16.msra.mxu1 %v2272_v3 }
 0x125   :  { %966 = vmatpush.bf16.msra.mxu2 %v2275_v9  ;;  %979 = vmatpush.bf16.msra.mxu3 %v2282_v11 }
 0x128   :  { %941 = vmatpush.bf16.msra.mxu0 %v2284_v12  ;;  %954 = vmatpush.bf16.msra.mxu1 %v2287_v16 }
 0x129   :  { %967 = vmatpush.bf16.msra.mxu2 %v2293_v23  ;;  %980 = vmatpush.bf16.msra.mxu3 %v2297_v24 }
 0x12c   :  { %942 = vmatpush.bf16.msra.mxu0 %v2299_v25  ;;  %955 = vmatpush.bf16.msra.mxu1 %v2302_v30 }
 0x12d   :  { %968 = vmatpush.bf16.msra.mxu2 %v2305_v36  ;;  %981 = vmatpush.bf16.msra.mxu3 %v2309_v37 }
 0x130   :  { %943 = vmatpush.bf16.msra.mxu0 %v2311_v39  ;;  %956 = vmatpush.bf16.msra.mxu1 %v2314_v40 }
 0x131   :  { %969 = vmatpush.bf16.msra.mxu2 %v2326_v57  ;;  %982 = vmatpush.bf16.msra.mxu3 %v2319_v47 }
 0x134   :  { %944 = vmatpush.bf16.msra.mxu0 %v2321_v48  ;;  %957 = vmatpush.bf16.msra.mxu1 %v2324_v56 }
 0x135   :  { %970 = vmatpush.bf16.msra.mxu2 %v2335_v8  ;;  %983 = vmatpush.bf16.msra.mxu3 %v2331_v6 }
 0x138   :  { %945 = vmatpush.bf16.msra.mxu0 %v2333_v7  ;;  %958 = vmatpush.bf16.msra.mxu1 %v2338_v14 }
 0x139   :  { %971 = vmatpush.bf16.msra.mxu2 %v2347_v20  ;;  %984 = vmatpush.bf16.msra.mxu3 %v2351_v21 }
 0x197   :  { %v707_v17 = vpop.f32.mrf.mxu0  ;;  %v720_v59 = vpop.f32.mrf.mxu1 }
 0x198   :  { %v750_v46 = vadd.f32 %v707_v17, %v282_v10  ;;  %v751_v54 = vadd.f32 %v720_v59, %v2435_v45 }
 0x19a   :  { %v1885_v19 = vmul.f32 -1.442695, %v750_v46  ;;  %v1886_v33 = vmul.f32 -1.442695, %v751_v54 }
 0x19c   :  { %2032 = vpow2.f32 %v1885_v19 }
 0x19d   :  { %2034 = vpow2.f32 %v1886_v33 }
 0x19e   :  { %v733_v44 = vpop.f32.mrf.mxu2  ;;  %v746_v29 = vpop.f32.mrf.mxu3 }
 0x19f   :  { %v753_v53 = vadd.f32 %v746_v29, %v2447_v0  ;;  %v709_v26 = vpop.f32.mrf.mxu0  ;;  %v722_v15 = vpop.f32.mrf.mxu1  ;;  %v752_v32 = vadd.f32 %v733_v44, %v2444_v58 }
 0x1a1   :  { %v1887_v28 = vmul.f32 -1.442695, %v753_v53 }
 0x1a2   :  { %v2033_v31 = vpop.eup %2032 }
 0x1a3   :  { %v2035_v22 = vpop.eup %2034  ;;  %v757_v27 = vadd.f32 1.0, %v2033_v31  ;;  %2036 = vpow2.f32 %v1887_v28 }
 0x1a4   :  { %v776_v42 = vadd.f32 1.0, %v2035_v22 }
 0x1a5   :  { %2038 = vrcp.f32 %v757_v27  ;;  %v769_v10 = vand.u32 2147483648, %v757_v27  ;;  %v767_v46 = vand.u32 2147483647, %v757_v27  ;;  %vm763_vm14 = vweird.f32 %v757_v27 }
 0x1a6   :  { %2040 = vrcp.f32 %v776_v42  ;;  %v735_v49 = vpop.f32.mrf.mxu2  ;;  %v748_v45 = vpop.f32.mrf.mxu3  ;;  %v788_v17 = vand.u32 2147483648, %v776_v42  ;;  %v786_v19 = vand.u32 2147483647, %v776_v42  ;;  %vm782_vm15 = vweird.f32 %v776_v42 }
 0x1a7   :  { %v770_v58 = vor.u32 1.1754944e-38, %v769_v10  ;;  %vm768_vm2 = vcmp.eq.f32.partialorder %v767_v46, 8.507059e+37 }
 0x1a8   :  { %v789_v26 = vor.u32 1.1754944e-38, %v788_v17  ;;  %vm787_vm3 = vcmp.eq.f32.partialorder %v786_v19, 8.507059e+37 }
 0x1a9   :  { %v2037_v60 = vpop.eup %2036 }
 0x1aa   :  { %v796_v41 = vadd.f32 1.0, %v2037_v60 }
 0x1ab   :  { %v2039_v18 = vpop.eup %2038 }
 0x1ac   :  { %v2041_v5 = vpop.eup %2040  ;;  %v759_v35 = vmul.f32 %v2039_v18, %v757_v27  ;;  %2042 = vrcp.f32 %v796_v41  ;;  %vm764_vm12 = vweird.f32 %v2039_v18  ;;  %vm802_vm5 = vweird.f32 %v796_v41 }
 0x1ad   :  { %v778_v0 = vmul.f32 %v2041_v5, %v776_v42  ;;  %2044 = vtanh.f32 %v752_v32  ;;  %vm783_vm13 = vweird.f32 %v2041_v5  ;;  %vm765_vm0 = vmor %vm763_vm14, %vm764_vm12 }
 0x1ae   :  { %v760_v2 = vsub.f32 1.0, %v759_v35  ;;  %vm784_vm1 = vmor %vm782_vm15, %vm783_vm13 }
 0x1af   :  { %v779_v34 = vsub.f32 1.0, %v778_v0  ;;  %v808_v0 = vand.u32 2147483648, %v796_v41 }
 0x1b0   :  { %v761_v59 = vmul.f32 %v2039_v18, %v760_v2 }
 0x1b1   :  { %v780_v54 = vmul.f32 %v2041_v5, %v779_v34  ;;  %v809_v34 = vor.u32 1.1754944e-38, %v808_v0 }
 0x1b2   :  { %v2043_v33 = vpop.eup %2042  ;;  %v762_v29 = vadd.f32 %v2039_v18, %v761_v59 }
 0x1b3   :  { %v781_v44 = vadd.f32 %v2041_v5, %v780_v54  ;;  %v798_v53 = vmul.f32 %v2043_v33, %v796_v41  ;;  %v2045_v28 = vpop.eup %2044  ;;  %vm803_vm4 = vweird.f32 %v2043_v33 }
 0x1b4   :  { %v766_v15 = vsel %vm765_vm0, %v2039_v18, %v762_v29  ;;  %v806_v18 = vand.u32 2147483647, %v796_v41  ;;  %vm804_vm6 = vmor %vm802_vm5, %vm803_vm4 }
 0x1b5   :  { %v771_v31 = vsel %vm768_vm2, %v770_v58, %v766_v15  ;;  %v785_v22 = vsel %vm784_vm1, %v2041_v5, %v781_v44  ;;  %v799_v49 = vsub.f32 1.0, %v798_v53  ;;  %v2796_v44 = vld [vmem:[#allocation9_spill] sm:$0xff] }
 0x1b6   :  { %v790_v45 = vsel %vm787_vm3, %v789_v26, %v785_v22  ;;  %v813_v60 = vmul.f32 %v2045_v28, %v771_v31  ;;  %vm807_vm7 = vcmp.eq.f32.partialorder %v806_v18, 8.507059e+37 }
 0x1b7   :  { %v812_v32 = vmul.f32 %v790_v45, %v2520_v13  ;;  %v800_v35 = vmul.f32 %v2043_v33, %v799_v49 }
 0x1b9   :  { %v2561_v27 = vadd.f32 %v813_v60, %v812_v32  ;;  %v801_v42 = vadd.f32 %v2043_v33, %v800_v35 }
 0x1bb   :  { %2046 = vtanh.f32 %v2561_v27  ;;  %v805_v2 = vsel %vm804_vm6, %v2043_v33, %v801_v42  ;;  %v2797_v42 = vld [vmem:[#allocation8_spill] sm:$0xff] }
 0x1bc   :  { %v810_v10 = vsel %vm807_vm7, %v809_v34, %v805_v2 }
 0x1c1   :  { %v2047_v5 = vpop.eup %2046 }
 0x1c2   :  { %v816_v17 = vmul.f32 %v2047_v5, %v810_v10 }
 0x1c4   :  { %v817_v59 = vpack.c.bf16 %v816_v17, %v816_v17 }
 0x1c6   :  { %826 = vmatmul.bf16.vlgmr.msrb.gmra.mxu0 %v817_v59  ;;  %839 = vmatmul.bf16.vlgmr.msrb.gmra.mxu1 %v817_v59 }
 0x1c7   :  { %852 = vmatmul.bf16.vlgmr.msrb.gmra.mxu2 %v817_v59  ;;  %865 = vmatmul.bf16.vlgmr.msrb.gmra.mxu3 %v817_v59 }
 0x1c8   :  { %1058 = vmatpush.bf16.msrb.mxu0 %v2248_v38  ;;  %1071 = vmatpush.bf16.msrb.mxu1 %v2250_v43 }
 0x1c9   :  { %1084 = vmatpush.bf16.msrb.mxu2 %v2252_v50  ;;  %1097 = vmatpush.bf16.msrb.mxu3 %v2255_v51 }
 0x1cc   :  { %1059 = vmatpush.bf16.msrb.mxu0 %v2257_v52  ;;  %1072 = vmatpush.bf16.msrb.mxu1 %v2260_v55 }
 0x1cd   :  { %1085 = vmatpush.bf16.msrb.mxu2 %v2263_v61  ;;  %1098 = vmatpush.bf16.msrb.mxu3 %v2267_v62 }
 0x1d0   :  { %1060 = vmatpush.bf16.msrb.mxu0 %v2269_v63  ;;  %1073 = vmatpush.bf16.msrb.mxu1 %v2272_v3 }
 0x1d1   :  { %1086 = vmatpush.bf16.msrb.mxu2 %v2275_v9  ;;  %1099 = vmatpush.bf16.msrb.mxu3 %v2282_v11 }
 0x1d4   :  { %1061 = vmatpush.bf16.msrb.mxu0 %v2284_v12  ;;  %1074 = vmatpush.bf16.msrb.mxu1 %v2287_v16 }
 0x1d5   :  { %1087 = vmatpush.bf16.msrb.mxu2 %v2293_v23  ;;  %1100 = vmatpush.bf16.msrb.mxu3 %v2297_v24 }
 0x1d8   :  { %1062 = vmatpush.bf16.msrb.mxu0 %v2299_v25  ;;  %1075 = vmatpush.bf16.msrb.mxu1 %v2302_v30 }
 0x1d9   :  { %1088 = vmatpush.bf16.msrb.mxu2 %v2305_v36  ;;  %1101 = vmatpush.bf16.msrb.mxu3 %v2309_v37 }
 0x1dc   :  { %1063 = vmatpush.bf16.msrb.mxu0 %v2311_v39  ;;  %1076 = vmatpush.bf16.msrb.mxu1 %v2314_v40 }
 0x1dd   :  { %1089 = vmatpush.bf16.msrb.mxu2 %v2326_v57  ;;  %1102 = vmatpush.bf16.msrb.mxu3 %v2319_v47 }
 0x1e0   :  { %1064 = vmatpush.bf16.msrb.mxu0 %v2321_v48  ;;  %1077 = vmatpush.bf16.msrb.mxu1 %v2324_v56 }
 0x1e1   :  { %1090 = vmatpush.bf16.msrb.mxu2 %v2335_v8  ;;  %1103 = vmatpush.bf16.msrb.mxu3 %v2331_v6 }
 0x1e4   :  { %1065 = vmatpush.bf16.msrb.mxu0 %v2333_v7  ;;  %1078 = vmatpush.bf16.msrb.mxu1 %v2338_v14 }
 0x1e5   :  { %1091 = vmatpush.bf16.msrb.mxu2 %v2347_v20  ;;  %1104 = vmatpush.bf16.msrb.mxu3 %v2351_v21 }
 0x243   :  { %v827_v13 = vpop.f32.mrf.mxu0  ;;  %v840_v41 = vpop.f32.mrf.mxu1 }
 0x244   :  { %v870_v46 = vadd.f32 %v827_v13, %v2450_v1  ;;  %v871_v54 = vadd.f32 %v840_v41, %v2452_v4 }
 0x246   :  { %v1888_v19 = vmul.f32 -1.442695, %v870_v46  ;;  %v1889_v33 = vmul.f32 -1.442695, %v871_v54 }
 0x248   :  { %2048 = vpow2.f32 %v1888_v19 }
 0x249   :  { %2050 = vpow2.f32 %v1889_v33 }
 0x24a   :  { %v853_v29 = vpop.f32.mrf.mxu2  ;;  %v866_v58 = vpop.f32.mrf.mxu3 }
 0x24b   :  { %v873_v53 = vadd.f32 %v866_v58, %v2796_v44  ;;  %v829_v26 = vpop.f32.mrf.mxu0  ;;  %v842_v15 = vpop.f32.mrf.mxu1  ;;  %v872_v0 = vadd.f32 %v853_v29, %v2797_v42 }
 0x24d   :  { %v1890_v28 = vmul.f32 -1.442695, %v873_v53 }
 0x24e   :  { %v2049_v31 = vpop.eup %2048 }
 0x24f   :  { %v2051_v22 = vpop.eup %2050  ;;  %v877_v49 = vadd.f32 1.0, %v2049_v31  ;;  %2052 = vpow2.f32 %v1890_v28 }
 0x250   :  { %v896_v45 = vadd.f32 1.0, %v2051_v22 }
 0x251   :  { %2054 = vrcp.f32 %v877_v49  ;;  %v889_v17 = vand.u32 2147483648, %v877_v49  ;;  %v887_v41 = vand.u32 2147483647, %v877_v49  ;;  %vm883_vm10 = vweird.f32 %v877_v49 }
 0x252   :  { %2056 = vrcp.f32 %v896_v45  ;;  %v855_v1 = vpop.f32.mrf.mxu2  ;;  %v868_v4 = vpop.f32.mrf.mxu3  ;;  %v908_v59 = vand.u32 2147483648, %v896_v45  ;;  %v906_v54 = vand.u32 2147483647, %v896_v45  ;;  %vm902_vm11 = vweird.f32 %v896_v45 }
 0x253   :  { %v890_v29 = vor.u32 1.1754944e-38, %v889_v17  ;;  %vm888_vm14 = vcmp.eq.f32.partialorder %v887_v41, 8.507059e+37  ;;  %v2799_v41 = vld [vmem:[#allocation11_spill] sm:$0xff] }
 0x254   :  { %v909_v53 = vor.u32 1.1754944e-38, %v908_v59  ;;  %vm907_vm15 = vcmp.eq.f32.partialorder %v906_v54, 8.507059e+37  ;;  %v2798_v59 = vld [vmem:[#allocation10_spill] sm:$0xff] }
 0x255   :  { %v2053_v60 = vpop.eup %2052 }
 0x256   :  { %v916_v32 = vadd.f32 1.0, %v2053_v60 }
 0x257   :  { %v2055_v35 = vpop.eup %2054 }
 0x258   :  { %v2057_v18 = vpop.eup %2056  ;;  %v879_v2 = vmul.f32 %v2055_v35, %v877_v49  ;;  %2058 = vrcp.f32 %v916_v32  ;;  %vm884_vm8 = vweird.f32 %v2055_v35  ;;  %vm922_vm1 = vweird.f32 %v916_v32 }
 0x259   :  { %v898_v34 = vmul.f32 %v2057_v18, %v896_v45  ;;  %2060 = vtanh.f32 %v872_v0  ;;  %vm903_vm9 = vweird.f32 %v2057_v18  ;;  %vm885_vm12 = vmor %vm883_vm10, %vm884_vm8  ;;  %v928_v0 = vand.u32 2147483648, %v916_v32 }
 0x25a   :  { %v880_v5 = vsub.f32 1.0, %v879_v2  ;;  %vm904_vm13 = vmor %vm902_vm11, %vm903_vm9 }
 0x25b   :  { %v899_v10 = vsub.f32 1.0, %v898_v34  ;;  %v929_v34 = vor.u32 1.1754944e-38, %v928_v0 }
 0x25c   :  { %v881_v13 = vmul.f32 %v2055_v35, %v880_v5 }
 0x25d   :  { %v900_v46 = vmul.f32 %v2057_v18, %v899_v10 }
 0x25e   :  { %v2059_v19 = vpop.eup %2058  ;;  %v882_v33 = vadd.f32 %v2055_v35, %v881_v13 }
 0x25f   :  { %v901_v58 = vadd.f32 %v2057_v18, %v900_v46  ;;  %v918_v44 = vmul.f32 %v2059_v19, %v916_v32  ;;  %v2061_v15 = vpop.eup %2060  ;;  %vm923_vm0 = vweird.f32 %v2059_v19 }
 0x260   :  { %v886_v26 = vsel %vm885_vm12, %v2055_v35, %v882_v33  ;;  %v926_v35 = vand.u32 2147483647, %v916_v32  ;;  %vm924_vm2 = vmor %vm922_vm1, %vm923_vm0 }
 0x261   :  { %v891_v28 = vsel %vm888_vm14, %v890_v29, %v886_v26  ;;  %v905_v31 = vsel %vm904_vm13, %v2057_v18, %v901_v58  ;;  %v919_v22 = vsub.f32 1.0, %v918_v44  ;;  %v2800_v58 = vld [vmem:[#allocation13_spill] sm:$0xff] }
 0x262   :  { %v910_v1 = vsel %vm907_vm15, %v909_v53, %v905_v31  ;;  %v933_v4 = vmul.f32 %v2061_v15, %v891_v28  ;;  %vm927_vm3 = vcmp.eq.f32.partialorder %v926_v35, 8.507059e+37  ;;  %v2801_v35 = vld [vmem:[#allocation12_spill] sm:$0xff] }
 0x263   :  { %v932_v60 = vmul.f32 %v910_v1, %v2561_v27  ;;  %v920_v42 = vmul.f32 %v2059_v19, %v919_v22 }
 0x265   :  { %v2601_v49 = vadd.f32 %v933_v4, %v932_v60  ;;  %v921_v45 = vadd.f32 %v2059_v19, %v920_v42 }
 0x267   :  { %2062 = vtanh.f32 %v2601_v49  ;;  %v925_v2 = vsel %vm924_vm2, %v2059_v19, %v921_v45 }
 0x268   :  { %v930_v5 = vsel %vm927_vm3, %v929_v34, %v925_v2 }
 0x26d   :  { %v2063_v18 = vpop.eup %2062 }
 0x26e   :  { %v936_v10 = vmul.f32 %v2063_v18, %v930_v5 }
 0x270   :  { %v937_v17 = vpack.c.bf16 %v936_v10, %v936_v10 }
 0x272   :  { %946 = vmatmul.bf16.vlgmr.msra.gmra.mxu0 %v937_v17  ;;  %959 = vmatmul.bf16.vlgmr.msra.gmra.mxu1 %v937_v17 }
 0x273   :  { %972 = vmatmul.bf16.vlgmr.msra.gmra.mxu2 %v937_v17  ;;  %985 = vmatmul.bf16.vlgmr.msra.gmra.mxu3 %v937_v17 }
 0x274   :  { %1178 = vmatpush.bf16.msra.mxu0 %v2248_v38  ;;  %1191 = vmatpush.bf16.msra.mxu1 %v2250_v43 }
 0x275   :  { %1204 = vmatpush.bf16.msra.mxu2 %v2252_v50  ;;  %1217 = vmatpush.bf16.msra.mxu3 %v2255_v51 }
 0x278   :  { %1179 = vmatpush.bf16.msra.mxu0 %v2257_v52  ;;  %1192 = vmatpush.bf16.msra.mxu1 %v2260_v55 }
 0x279   :  { %1205 = vmatpush.bf16.msra.mxu2 %v2263_v61  ;;  %1218 = vmatpush.bf16.msra.mxu3 %v2267_v62 }
 0x27c   :  { %1180 = vmatpush.bf16.msra.mxu0 %v2269_v63  ;;  %1193 = vmatpush.bf16.msra.mxu1 %v2272_v3 }
 0x27d   :  { %1206 = vmatpush.bf16.msra.mxu2 %v2275_v9  ;;  %1219 = vmatpush.bf16.msra.mxu3 %v2282_v11 }
 0x280   :  { %1181 = vmatpush.bf16.msra.mxu0 %v2284_v12  ;;  %1194 = vmatpush.bf16.msra.mxu1 %v2287_v16 }
 0x281   :  { %1207 = vmatpush.bf16.msra.mxu2 %v2293_v23  ;;  %1220 = vmatpush.bf16.msra.mxu3 %v2297_v24 }
 0x284   :  { %1182 = vmatpush.bf16.msra.mxu0 %v2299_v25  ;;  %1195 = vmatpush.bf16.msra.mxu1 %v2302_v30 }
 0x285   :  { %1208 = vmatpush.bf16.msra.mxu2 %v2305_v36  ;;  %1221 = vmatpush.bf16.msra.mxu3 %v2309_v37 }
 0x288   :  { %1183 = vmatpush.bf16.msra.mxu0 %v2311_v39  ;;  %1196 = vmatpush.bf16.msra.mxu1 %v2314_v40 }
 0x289   :  { %1209 = vmatpush.bf16.msra.mxu2 %v2326_v57  ;;  %1222 = vmatpush.bf16.msra.mxu3 %v2319_v47 }
 0x28c   :  { %1184 = vmatpush.bf16.msra.mxu0 %v2321_v48  ;;  %1197 = vmatpush.bf16.msra.mxu1 %v2324_v56 }
 0x28d   :  { %1210 = vmatpush.bf16.msra.mxu2 %v2335_v8  ;;  %1223 = vmatpush.bf16.msra.mxu3 %v2331_v6 }
 0x290   :  { %1185 = vmatpush.bf16.msra.mxu0 %v2333_v7  ;;  %1198 = vmatpush.bf16.msra.mxu1 %v2338_v14 }
 0x291   :  { %1211 = vmatpush.bf16.msra.mxu2 %v2347_v20  ;;  %1224 = vmatpush.bf16.msra.mxu3 %v2351_v21 }
 0x2ef   :  { %v947_v27 = vpop.f32.mrf.mxu0  ;;  %v960_v32 = vpop.f32.mrf.mxu1 }
 0x2f0   :  { %v990_v13 = vadd.f32 %v947_v27, %v2798_v59  ;;  %v991_v46 = vadd.f32 %v960_v32, %v2799_v41 }
 0x2f2   :  { %v1891_v54 = vmul.f32 -1.442695, %v990_v13  ;;  %v1892_v19 = vmul.f32 -1.442695, %v991_v46 }
 0x2f4   :  { %2064 = vpow2.f32 %v1891_v54 }
 0x2f5   :  { %2066 = vpow2.f32 %v1892_v19 }
 0x2f6   :  { %v973_v33 = vpop.f32.mrf.mxu2  ;;  %v986_v29 = vpop.f32.mrf.mxu3 }
 0x2f7   :  { %v993_v44 = vadd.f32 %v986_v29, %v2800_v58  ;;  %v949_v53 = vpop.f32.mrf.mxu0  ;;  %v962_v26 = vpop.f32.mrf.mxu1  ;;  %v992_v2 = vadd.f32 %v973_v33, %v2801_v35 }
 0x2f9   :  { %v1893_v15 = vmul.f32 -1.442695, %v993_v44 }
 0x2fa   :  { %v2065_v28 = vpop.eup %2064 }
 0x2fb   :  { %v2067_v31 = vpop.eup %2066  ;;  %v997_v22 = vadd.f32 1.0, %v2065_v28  ;;  %2068 = vpow2.f32 %v1893_v15 }
 0x2fc   :  { %v1016_v1 = vadd.f32 1.0, %v2067_v31 }
 0x2fd   :  { %2070 = vrcp.f32 %v997_v22  ;;  %v1009_v27 = vand.u32 2147483648, %v997_v22  ;;  %v1007_v13 = vand.u32 2147483647, %v997_v22  ;;  %vm1003_vm6 = vweird.f32 %v997_v22 }
 0x2fe   :  { %2072 = vrcp.f32 %v1016_v1  ;;  %v975_v4 = vpop.f32.mrf.mxu2  ;;  %v988_v60 = vpop.f32.mrf.mxu3  ;;  %v1028_v32 = vand.u32 2147483648, %v1016_v1  ;;  %v1026_v46 = vand.u32 2147483647, %v1016_v1  ;;  %vm1022_vm7 = vweird.f32 %v1016_v1 }
 0x2ff   :  { %v1010_v33 = vor.u32 1.1754944e-38, %v1009_v27  ;;  %vm1008_vm10 = vcmp.eq.f32.partialorder %v1007_v13, 8.507059e+37  ;;  %v2803_v13 = vld [vmem:[#allocation15_spill] sm:$0xff] }
 0x300   :  { %v1029_v44 = vor.u32 1.1754944e-38, %v1028_v32  ;;  %vm1027_vm11 = vcmp.eq.f32.partialorder %v1026_v46, 8.507059e+37  ;;  %v2802_v32 = vld [vmem:[#allocation14_spill] sm:$0xff] }
 0x301   :  { %v2069_v42 = vpop.eup %2068 }
 0x302   :  { %v1036_v45 = vadd.f32 1.0, %v2069_v42 }
 0x303   :  { %v2071_v0 = vpop.eup %2070 }
 0x304   :  { %v2073_v34 = vpop.eup %2072  ;;  %v999_v18 = vmul.f32 %v2071_v0, %v997_v22  ;;  %2074 = vrcp.f32 %v1036_v45  ;;  %vm1004_vm4 = vweird.f32 %v2071_v0  ;;  %vm1042_vm13 = vweird.f32 %v1036_v45 }
 0x305   :  { %v1018_v5 = vmul.f32 %v2073_v34, %v1016_v1  ;;  %2076 = vtanh.f32 %v992_v2  ;;  %vm1023_vm5 = vweird.f32 %v2073_v34  ;;  %vm1005_vm8 = vmor %vm1003_vm6, %vm1004_vm4  ;;  %v1048_v2 = vand.u32 2147483648, %v1036_v45 }
 0x306   :  { %v1000_v10 = vsub.f32 1.0, %v999_v18  ;;  %vm1024_vm9 = vmor %vm1022_vm7, %vm1023_vm5 }
 0x307   :  { %v1019_v17 = vsub.f32 1.0, %v1018_v5  ;;  %v1049_v5 = vor.u32 1.1754944e-38, %v1048_v2 }
 0x308   :  { %v1001_v59 = vmul.f32 %v2071_v0, %v1000_v10 }
 0x309   :  { %v1020_v41 = vmul.f32 %v2073_v34, %v1019_v17 }
 0x30a   :  { %v2075_v54 = vpop.eup %2074  ;;  %v1002_v19 = vadd.f32 %v2071_v0, %v1001_v59 }
 0x30b   :  { %v1021_v29 = vadd.f32 %v2073_v34, %v1020_v41  ;;  %v1038_v58 = vmul.f32 %v2075_v54, %v1036_v45  ;;  %v2077_v26 = vpop.eup %2076  ;;  %vm1043_vm12 = vweird.f32 %v2075_v54 }
 0x30c   :  { %v1006_v53 = vsel %vm1005_vm8, %v2071_v0, %v1002_v19  ;;  %v1046_v0 = vand.u32 2147483647, %v1036_v45  ;;  %vm1044_vm14 = vmor %vm1042_vm13, %vm1043_vm12 }
 0x30d   :  { %v1011_v15 = vsel %vm1008_vm10, %v1010_v33, %v1006_v53  ;;  %v1025_v28 = vsel %vm1024_vm9, %v2073_v34, %v1021_v29  ;;  %v1039_v31 = vsub.f32 1.0, %v1038_v58  ;;  %v2804_v29 = vld [vmem:[#allocation17_spill] sm:$0xff] }
 0x30e   :  { %v1030_v4 = vsel %vm1027_vm11, %v1029_v44, %v1025_v28  ;;  %v1053_v60 = vmul.f32 %v2077_v26, %v1011_v15  ;;  %vm1047_vm15 = vcmp.eq.f32.partialorder %v1046_v0, 8.507059e+37  ;;  %v2805_v0 = vld [vmem:[#allocation16_spill] sm:$0xff] }
 0x30f   :  { %v1052_v42 = vmul.f32 %v1030_v4, %v2601_v49  ;;  %v1040_v35 = vmul.f32 %v2075_v54, %v1039_v31 }
 0x311   :  { %v2641_v22 = vadd.f32 %v1053_v60, %v1052_v42  ;;  %v1041_v1 = vadd.f32 %v2075_v54, %v1040_v35 }
 0x313   :  { %2078 = vtanh.f32 %v2641_v22  ;;  %v1045_v18 = vsel %vm1044_vm14, %v2075_v54, %v1041_v1 }
 0x314   :  { %v1050_v10 = vsel %vm1047_vm15, %v1049_v5, %v1045_v18 }
 0x319   :  { %v2079_v34 = vpop.eup %2078 }
 0x31a   :  { %v1056_v17 = vmul.f32 %v2079_v34, %v1050_v10 }
 0x31c   :  { %v1057_v27 = vpack.c.bf16 %v1056_v17, %v1056_v17 }
 0x31e   :  { %1066 = vmatmul.bf16.vlgmr.msrb.gmra.mxu0 %v1057_v27  ;;  %1079 = vmatmul.bf16.vlgmr.msrb.gmra.mxu1 %v1057_v27 }
 0x31f   :  { %1092 = vmatmul.bf16.vlgmr.msrb.gmra.mxu2 %v1057_v27  ;;  %1105 = vmatmul.bf16.vlgmr.msrb.gmra.mxu3 %v1057_v27 }
 0x320   :  { %1298 = vmatpush.bf16.msrb.mxu0 %v2248_v38  ;;  %1311 = vmatpush.bf16.msrb.mxu1 %v2250_v43 }
 0x321   :  { %1324 = vmatpush.bf16.msrb.mxu2 %v2252_v50  ;;  %1337 = vmatpush.bf16.msrb.mxu3 %v2255_v51 }
 0x324   :  { %1299 = vmatpush.bf16.msrb.mxu0 %v2257_v52  ;;  %1312 = vmatpush.bf16.msrb.mxu1 %v2260_v55 }
 0x325   :  { %1325 = vmatpush.bf16.msrb.mxu2 %v2263_v61  ;;  %1338 = vmatpush.bf16.msrb.mxu3 %v2267_v62 }
 0x328   :  { %1300 = vmatpush.bf16.msrb.mxu0 %v2269_v63  ;;  %1313 = vmatpush.bf16.msrb.mxu1 %v2272_v3 }
 0x329   :  { %1326 = vmatpush.bf16.msrb.mxu2 %v2275_v9  ;;  %1339 = vmatpush.bf16.msrb.mxu3 %v2282_v11 }
 0x32c   :  { %1301 = vmatpush.bf16.msrb.mxu0 %v2284_v12  ;;  %1314 = vmatpush.bf16.msrb.mxu1 %v2287_v16 }
 0x32d   :  { %1327 = vmatpush.bf16.msrb.mxu2 %v2293_v23  ;;  %1340 = vmatpush.bf16.msrb.mxu3 %v2297_v24 }
 0x330   :  { %1302 = vmatpush.bf16.msrb.mxu0 %v2299_v25  ;;  %1315 = vmatpush.bf16.msrb.mxu1 %v2302_v30 }
 0x331   :  { %1328 = vmatpush.bf16.msrb.mxu2 %v2305_v36  ;;  %1341 = vmatpush.bf16.msrb.mxu3 %v2309_v37 }
 0x334   :  { %1303 = vmatpush.bf16.msrb.mxu0 %v2311_v39  ;;  %1316 = vmatpush.bf16.msrb.mxu1 %v2314_v40 }
 0x335   :  { %1329 = vmatpush.bf16.msrb.mxu2 %v2326_v57  ;;  %1342 = vmatpush.bf16.msrb.mxu3 %v2319_v47 }
 0x338   :  { %1304 = vmatpush.bf16.msrb.mxu0 %v2321_v48  ;;  %1317 = vmatpush.bf16.msrb.mxu1 %v2324_v56 }
 0x339   :  { %1330 = vmatpush.bf16.msrb.mxu2 %v2335_v8  ;;  %1343 = vmatpush.bf16.msrb.mxu3 %v2331_v6 }
 0x33c   :  { %1305 = vmatpush.bf16.msrb.mxu0 %v2333_v7  ;;  %1318 = vmatpush.bf16.msrb.mxu1 %v2338_v14 }
 0x33d   :  { %1331 = vmatpush.bf16.msrb.mxu2 %v2347_v20  ;;  %1344 = vmatpush.bf16.msrb.mxu3 %v2351_v21 }
 0x39b   :  { %v1067_v49 = vpop.f32.mrf.mxu0  ;;  %v1080_v45 = vpop.f32.mrf.mxu1 }
 0x39c   :  { %v1110_v59 = vadd.f32 %v1067_v49, %v2802_v32  ;;  %v1111_v41 = vadd.f32 %v1080_v45, %v2803_v13 }
 0x39e   :  { %v1894_v46 = vmul.f32 -1.442695, %v1110_v59  ;;  %v1895_v54 = vmul.f32 -1.442695, %v1111_v41 }
 0x3a0   :  { %2080 = vpow2.f32 %v1894_v46 }
 0x3a1   :  { %2082 = vpow2.f32 %v1895_v54 }
 0x3a2   :  { %v1093_v19 = vpop.f32.mrf.mxu2  ;;  %v1106_v33 = vpop.f32.mrf.mxu3 }
 0x3a3   :  { %v1113_v58 = vadd.f32 %v1106_v33, %v2804_v29  ;;  %v1069_v44 = vpop.f32.mrf.mxu0  ;;  %v1082_v53 = vpop.f32.mrf.mxu1  ;;  %v1112_v18 = vadd.f32 %v1093_v19, %v2805_v0 }
 0x3a5   :  { %v1896_v26 = vmul.f32 -1.442695, %v1113_v58 }
 0x3a6   :  { %v2081_v15 = vpop.eup %2080 }
 0x3a7   :  { %v2083_v28 = vpop.eup %2082  ;;  %v1117_v31 = vadd.f32 1.0, %v2081_v15  ;;  %2084 = vpow2.f32 %v1896_v26 }
 0x3a8   :  { %v1136_v4 = vadd.f32 1.0, %v2083_v28 }
 0x3a9   :  { %2086 = vrcp.f32 %v1117_v31  ;;  %v1129_v49 = vand.u32 2147483648, %v1117_v31  ;;  %v1127_v59 = vand.u32 2147483647, %v1117_v31  ;;  %vm1123_vm2 = vweird.f32 %v1117_v31 }
 0x3aa   :  { %2088 = vrcp.f32 %v1136_v4  ;;  %v1095_v60 = vpop.f32.mrf.mxu2  ;;  %v1108_v42 = vpop.f32.mrf.mxu3  ;;  %v1148_v45 = vand.u32 2147483648, %v1136_v4  ;;  %v1146_v41 = vand.u32 2147483647, %v1136_v4  ;;  %vm1142_vm3 = vweird.f32 %v1136_v4 }
 0x3ab   :  { %v1130_v19 = vor.u32 1.1754944e-38, %v1129_v49  ;;  %vm1128_vm6 = vcmp.eq.f32.partialorder %v1127_v59, 8.507059e+37 }
 0x3ac   :  { %v1149_v58 = vor.u32 1.1754944e-38, %v1148_v45  ;;  %vm1147_vm7 = vcmp.eq.f32.partialorder %v1146_v41, 8.507059e+37 }
 0x3ad   :  { %v2085_v35 = vpop.eup %2084 }
 0x3ae   :  { %v1156_v1 = vadd.f32 1.0, %v2085_v35 }
 0x3af   :  { %v2087_v2 = vpop.eup %2086 }
 0x3b0   :  { %v2089_v5 = vpop.eup %2088  ;;  %v1119_v34 = vmul.f32 %v2087_v2, %v1117_v31  ;;  %2090 = vrcp.f32 %v1156_v1  ;;  %vm1124_vm0 = vweird.f32 %v2087_v2  ;;  %vm1162_vm9 = vweird.f32 %v1156_v1 }
 0x3b1   :  { %v1138_v10 = vmul.f32 %v2089_v5, %v1136_v4  ;;  %2092 = vtanh.f32 %v1112_v18  ;;  %vm1143_vm1 = vweird.f32 %v2089_v5  ;;  %vm1125_vm4 = vmor %vm1123_vm2, %vm1124_vm0  ;;  %v1168_v18 = vand.u32 2147483648, %v1156_v1 }
 0x3b2   :  { %v1120_v17 = vsub.f32 1.0, %v1119_v34  ;;  %vm1144_vm5 = vmor %vm1142_vm3, %vm1143_vm1 }
 0x3b3   :  { %v1139_v27 = vsub.f32 1.0, %v1138_v10  ;;  %v1169_v10 = vor.u32 1.1754944e-38, %v1168_v18 }
 0x3b4   :  { %v1121_v32 = vmul.f32 %v2087_v2, %v1120_v17 }
 0x3b5   :  { %v1140_v13 = vmul.f32 %v2089_v5, %v1139_v27 }
 0x3b6   :  { %v2091_v46 = vpop.eup %2090  ;;  %v1122_v54 = vadd.f32 %v2087_v2, %v1121_v32 }
 0x3b7   :  { %v1141_v33 = vadd.f32 %v2089_v5, %v1140_v13  ;;  %v1158_v29 = vmul.f32 %v2091_v46, %v1156_v1  ;;  %v2093_v53 = vpop.eup %2092  ;;  %vm1163_vm8 = vweird.f32 %v2091_v46 }
 0x3b8   :  { %v1126_v44 = vsel %vm1125_vm4, %v2087_v2, %v1122_v54  ;;  %v1166_v2 = vand.u32 2147483647, %v1156_v1  ;;  %vm1164_vm10 = vmor %vm1162_vm9, %vm1163_vm8 }
 0x3b9   :  { %v1131_v26 = vsel %vm1128_vm6, %v1130_v19, %v1126_v44  ;;  %v1145_v15 = vsel %vm1144_vm5, %v2089_v5, %v1141_v33  ;;  %v1159_v28 = vsub.f32 1.0, %v1158_v29 }
 0x3ba   :  { %v1150_v60 = vsel %vm1147_vm7, %v1149_v58, %v1145_v15  ;;  %v1173_v42 = vmul.f32 %v2093_v53, %v1131_v26  ;;  %vm1167_vm11 = vcmp.eq.f32.partialorder %v1166_v2, 8.507059e+37 }
 0x3bb   :  { %v1172_v35 = vmul.f32 %v1150_v60, %v2641_v22  ;;  %v1160_v0 = vmul.f32 %v2091_v46, %v1159_v28 }
 0x3bd   :  { %v2681_v31 = vadd.f32 %v1173_v42, %v1172_v35  ;;  %v1161_v4 = vadd.f32 %v2091_v46, %v1160_v0 }
 0x3bf   :  { %2094 = vtanh.f32 %v2681_v31  ;;  %v1165_v34 = vsel %vm1164_vm10, %v2091_v46, %v1161_v4 }
 0x3c0   :  { %v1170_v17 = vsel %vm1167_vm11, %v1169_v10, %v1165_v34 }
 0x3c5   :  { %v2095_v5 = vpop.eup %2094 }
 0x3c6   :  { %v1176_v27 = vmul.f32 %v2095_v5, %v1170_v17 }
 0x3c8   :  { %v1177_v49 = vpack.c.bf16 %v1176_v27, %v1176_v27 }
 0x3ca   :  { %1186 = vmatmul.bf16.vlgmr.msra.gmra.mxu0 %v1177_v49  ;;  %1199 = vmatmul.bf16.vlgmr.msra.gmra.mxu1 %v1177_v49 }
 0x3cb   :  { %1212 = vmatmul.bf16.vlgmr.msra.gmra.mxu2 %v1177_v49  ;;  %1225 = vmatmul.bf16.vlgmr.msra.gmra.mxu3 %v1177_v49 }
 0x3cc   :  { %1418 = vmatpush.bf16.msra.mxu0 %v2248_v38  ;;  %1431 = vmatpush.bf16.msra.mxu1 %v2250_v43 }
 0x3cd   :  { %1444 = vmatpush.bf16.msra.mxu2 %v2252_v50  ;;  %1457 = vmatpush.bf16.msra.mxu3 %v2255_v51  ;;  %v2806_v50 = vld [vmem:[#allocation18_spill] sm:$0xff] }
 0x3d0   :  { %1419 = vmatpush.bf16.msra.mxu0 %v2257_v52  ;;  %1432 = vmatpush.bf16.msra.mxu1 %v2260_v55  ;;  %v2807_v52 = vld [vmem:[#allocation19_spill] sm:$0xff] }
 0x3d1   :  { %1445 = vmatpush.bf16.msra.mxu2 %v2263_v61  ;;  %1458 = vmatpush.bf16.msra.mxu3 %v2267_v62 }
 0x3d4   :  { %1420 = vmatpush.bf16.msra.mxu0 %v2269_v63  ;;  %1433 = vmatpush.bf16.msra.mxu1 %v2272_v3 }
 0x3d5   :  { %1446 = vmatpush.bf16.msra.mxu2 %v2275_v9  ;;  %1459 = vmatpush.bf16.msra.mxu3 %v2282_v11  ;;  %v2808_v9 = vld [vmem:[#allocation21_spill] sm:$0xff] }
 0x3d8   :  { %1421 = vmatpush.bf16.msra.mxu0 %v2284_v12  ;;  %1434 = vmatpush.bf16.msra.mxu1 %v2287_v16 }
 0x3d9   :  { %1447 = vmatpush.bf16.msra.mxu2 %v2293_v23  ;;  %1460 = vmatpush.bf16.msra.mxu3 %v2297_v24 }
 0x3dc   :  { %1422 = vmatpush.bf16.msra.mxu0 %v2299_v25  ;;  %1435 = vmatpush.bf16.msra.mxu1 %v2302_v30 }
 0x3dd   :  { %1448 = vmatpush.bf16.msra.mxu2 %v2305_v36  ;;  %1461 = vmatpush.bf16.msra.mxu3 %v2309_v37 }
 0x3e0   :  { %1423 = vmatpush.bf16.msra.mxu0 %v2311_v39  ;;  %1436 = vmatpush.bf16.msra.mxu1 %v2314_v40 }
 0x3e1   :  { %1449 = vmatpush.bf16.msra.mxu2 %v2326_v57  ;;  %1462 = vmatpush.bf16.msra.mxu3 %v2319_v47 }
 0x3e4   :  { %1424 = vmatpush.bf16.msra.mxu0 %v2321_v48  ;;  %1437 = vmatpush.bf16.msra.mxu1 %v2324_v56  ;;  %v2809_v56 = vld [vmem:[#allocation20_spill] sm:$0xff] }
 0x3e5   :  { %1450 = vmatpush.bf16.msra.mxu2 %v2335_v8  ;;  %1463 = vmatpush.bf16.msra.mxu3 %v2331_v6 }
 0x3e8   :  { %1425 = vmatpush.bf16.msra.mxu0 %v2333_v7  ;;  %1438 = vmatpush.bf16.msra.mxu1 %v2338_v14 }
 0x3e9   :  { %1451 = vmatpush.bf16.msra.mxu2 %v2347_v20  ;;  %1464 = vmatpush.bf16.msra.mxu3 %v2351_v21 }
 0x447   :  { %v1187_v38 = vpop.f32.mrf.mxu0  ;;  %v1200_v43 = vpop.f32.mrf.mxu1 }
 0x448   :  { %v1230_v51 = vadd.f32 %v1187_v38, %v2806_v50  ;;  %v1231_v55 = vadd.f32 %v1200_v43, %v2807_v52  ;;  %v2810_v38 = vld [vmem:[#allocation22_spill] sm:$0xff]  ;;  %v2811_v50 = vld [vmem:[#allocation23_spill] sm:$0xff] }
 0x44a   :  { %v1897_v61 = vmul.f32 -1.442695, %v1230_v51  ;;  %v1898_v62 = vmul.f32 -1.442695, %v1231_v55 }
 0x44c   :  { %2096 = vpow2.f32 %v1897_v61 }
 0x44d   :  { %2098 = vpow2.f32 %v1898_v62 }
 0x44e   :  { %v1213_v63 = vpop.f32.mrf.mxu2  ;;  %v1226_v3 = vpop.f32.mrf.mxu3 }
 0x44f   :  { %v1233_v11 = vadd.f32 %v1226_v3, %v2808_v9  ;;  %v1189_v12 = vpop.f32.mrf.mxu0  ;;  %v1202_v16 = vpop.f32.mrf.mxu1  ;;  %v1232_v57 = vadd.f32 %v1213_v63, %v2809_v56  ;;  %v2812_v63 = vld [vmem:[#allocation25_spill] sm:$0xff] }
 0x451   :  { %v1899_v23 = vmul.f32 -1.442695, %v1233_v11 }
 0x452   :  { %v2097_v24 = vpop.eup %2096 }
 0x453   :  { %v2099_v25 = vpop.eup %2098  ;;  %v1237_v30 = vadd.f32 1.0, %v2097_v24  ;;  %2100 = vpow2.f32 %v1899_v23 }
 0x454   :  { %v1256_v36 = vadd.f32 1.0, %v2099_v25 }
 0x455   :  { %2102 = vrcp.f32 %v1237_v30  ;;  %v1249_v21 = vand.u32 2147483648, %v1237_v30  ;;  %v1247_v45 = vand.u32 2147483647, %v1237_v30  ;;  %vm1243_vm14 = vweird.f32 %v1237_v30 }
 0x456   :  { %2104 = vrcp.f32 %v1256_v36  ;;  %v1215_v37 = vpop.f32.mrf.mxu2  ;;  %v1228_v39 = vpop.f32.mrf.mxu3  ;;  %v1268_v22 = vand.u32 2147483648, %v1256_v36  ;;  %v1266_v59 = vand.u32 2147483647, %v1256_v36  ;;  %vm1262_vm15 = vweird.f32 %v1256_v36 }
 0x457   :  { %v1250_v46 = vor.u32 1.1754944e-38, %v1249_v21  ;;  %vm1248_vm2 = vcmp.eq.f32.partialorder %v1247_v45, 8.507059e+37 }
 0x458   :  { %v1269_v33 = vor.u32 1.1754944e-38, %v1268_v22  ;;  %vm1267_vm3 = vcmp.eq.f32.partialorder %v1266_v59, 8.507059e+37 }
 0x459   :  { %v2101_v40 = vpop.eup %2100 }
 0x45a   :  { %v1276_v47 = vadd.f32 1.0, %v2101_v40 }
 0x45b   :  { %v2103_v48 = vpop.eup %2102 }
 0x45c   :  { %v2105_v6 = vpop.eup %2104  ;;  %v1239_v7 = vmul.f32 %v2103_v48, %v1237_v30  ;;  %2106 = vrcp.f32 %v1276_v47  ;;  %vm1244_vm12 = vweird.f32 %v2103_v48  ;;  %v1288_v4 = vand.u32 2147483648, %v1276_v47 }
 0x45d   :  { %v1258_v8 = vmul.f32 %v2105_v6, %v1256_v36  ;;  %2108 = vtanh.f32 %v1232_v57  ;;  %vm1263_vm13 = vweird.f32 %v2105_v6  ;;  %vm1245_vm0 = vmor %vm1243_vm14, %vm1244_vm12  ;;  %vm1282_vm5 = vweird.f32 %v1276_v47 }
 0x45e   :  { %v1240_v14 = vsub.f32 1.0, %v1239_v7  ;;  %vm1264_vm1 = vmor %vm1262_vm15, %vm1263_vm13  ;;  %v1286_v18 = vand.u32 2147483647, %v1276_v47  ;;  %v1289_v34 = vor.u32 1.1754944e-38, %v1288_v4 }
 0x45f   :  { %v1259_v20 = vsub.f32 1.0, %v1258_v8 }
 0x460   :  { %v1241_v1 = vmul.f32 %v2103_v48, %v1240_v14  ;;  %vm1287_vm7 = vcmp.eq.f32.partialorder %v1286_v18, 8.507059e+37 }
 0x461   :  { %v1260_v32 = vmul.f32 %v2105_v6, %v1259_v20 }
 0x462   :  { %v2107_v13 = vpop.eup %2106  ;;  %v1242_v41 = vadd.f32 %v2103_v48, %v1241_v1 }
 0x463   :  { %v1261_v54 = vadd.f32 %v2105_v6, %v1260_v32  ;;  %v1278_v19 = vmul.f32 %v2107_v13, %v1276_v47  ;;  %v2109_v58 = vpop.eup %2108  ;;  %vm1283_vm4 = vweird.f32 %v2107_v13  ;;  %v2813_v47 = vld [vmem:[#allocation24_spill] sm:$0xff] }
 0x464   :  { %v1246_v29 = vsel %vm1245_vm0, %v2103_v48, %v1242_v41  ;;  %vm1284_vm6 = vmor %vm1282_vm5, %vm1283_vm4 }
 0x465   :  { %v1251_v44 = vsel %vm1248_vm2, %v1250_v46, %v1246_v29  ;;  %v1265_v53 = vsel %vm1264_vm1, %v2105_v6, %v1261_v54  ;;  %v1279_v26 = vsub.f32 1.0, %v1278_v19 }
 0x466   :  { %v1270_v15 = vsel %vm1267_vm3, %v1269_v33, %v1265_v53  ;;  %v1293_v28 = vmul.f32 %v2109_v58, %v1251_v44 }
 0x467   :  { %v1292_v60 = vmul.f32 %v1270_v15, %v2681_v31  ;;  %v1280_v42 = vmul.f32 %v2107_v13, %v1279_v26 }
 0x469   :  { %v2721_v35 = vadd.f32 %v1293_v28, %v1292_v60  ;;  %v1281_v0 = vadd.f32 %v2107_v13, %v1280_v42 }
 0x46b   :  { %2110 = vtanh.f32 %v2721_v35  ;;  %v1285_v2 = vsel %vm1284_vm6, %v2107_v13, %v1281_v0 }
 0x46c   :  { %v1290_v5 = vsel %vm1287_vm7, %v1289_v34, %v1285_v2 }
 0x471   :  { %v2111_v10 = vpop.eup %2110 }
 0x472   :  { %v1296_v17 = vmul.f32 %v2111_v10, %v1290_v5 }
 0x474   :  { %v1297_v27 = vpack.c.bf16 %v1296_v17, %v1296_v17 }
 0x476   :  { %1306 = vmatmul.bf16.vlgmr.msrb.gmra.mxu0 %v1297_v27  ;;  %1319 = vmatmul.bf16.vlgmr.msrb.gmra.mxu1 %v1297_v27 }
 0x477   :  { %1332 = vmatmul.bf16.vlgmr.msrb.gmra.mxu2 %v1297_v27  ;;  %1345 = vmatmul.bf16.vlgmr.msrb.gmra.mxu3 %v1297_v27  ;;  %v2008_v27 = vld [vmem:[%s2771_s4 + $0x30] sm:$0xff] }
 0x4f3   :  { %v1307_v31 = vpop.f32.mrf.mxu0  ;;  %v1320_v49 = vpop.f32.mrf.mxu1 }
 0x4f4   :  { %v1350_v43 = vadd.f32 %v1307_v31, %v2810_v38  ;;  %v1351_v51 = vadd.f32 %v1320_v49, %v2811_v50  ;;  %v2007_v31 = vld [vmem:[%s2771_s4 + $0x28] sm:$0xff]  ;;  %v2006_v49 = vld [vmem:[%s2771_s4 + $0x20] sm:$0xff]  ;;  %v2005_v38 = vld [vmem:[%s2771_s4 + $0x18] sm:$0xff] }
 0x4f6   :  { %v1900_v52 = vmul.f32 -1.442695, %v1350_v43  ;;  %v1901_v55 = vmul.f32 -1.442695, %v1351_v51  ;;  %v2814_v51 = vld [vmem:[#allocation26_spill] sm:$0xff] }
 0x4f8   :  { %2112 = vpow2.f32 %v1900_v52 }
 0x4f9   :  { %2114 = vpow2.f32 %v1901_v55  ;;  %v2815_v55 = vld [vmem:[#allocation27_spill] sm:$0xff] }
 0x4fa   :  { %v1333_v61 = vpop.f32.mrf.mxu2  ;;  %v1346_v62 = vpop.f32.mrf.mxu3 }
 0x4fb   :  { %v1353_v3 = vadd.f32 %v1346_v62, %v2812_v63  ;;  %v1309_v9 = vpop.f32.mrf.mxu0  ;;  %v1322_v11 = vpop.f32.mrf.mxu1  ;;  %v1352_v48 = vadd.f32 %v1333_v61, %v2813_v47 }
 0x4fc   :  { %v2003_v9 = vld [vmem:[%s2771_s4 + $0x8] sm:$0xff] }
 0x4fd   :  { %v1902_v12 = vmul.f32 -1.442695, %v1353_v3  ;;  %v2004_v3 = vld [vmem:[%s2771_s4 + $0x10] sm:$0xff] }
 0x4fe   :  { %v2113_v16 = vpop.eup %2112 }
 0x4ff   :  { %v2115_v23 = vpop.eup %2114  ;;  %v1357_v24 = vadd.f32 1.0, %v2113_v16  ;;  %2116 = vpow2.f32 %v1902_v12  ;;  %v2816_v16 = vld [vmem:[#allocation29_spill] sm:$0xff] }
 0x500   :  { %v1376_v25 = vadd.f32 1.0, %v2115_v23 }
 0x501   :  { %2118 = vrcp.f32 %v1357_v24  ;;  %v1369_v14 = vand.u32 2147483648, %v1357_v24  ;;  %v1367_v22 = vand.u32 2147483647, %v1357_v24  ;;  %vm1363_vm10 = vweird.f32 %v1357_v24 }
 0x502   :  { %2120 = vrcp.f32 %v1376_v25  ;;  %v1335_v30 = vpop.f32.mrf.mxu2  ;;  %v1348_v36 = vpop.f32.mrf.mxu3  ;;  %v1388_v20 = vand.u32 2147483648, %v1376_v25  ;;  %v1386_v45 = vand.u32 2147483647, %v1376_v25  ;;  %vm1382_vm11 = vweird.f32 %v1376_v25 }
 0x503   :  { %v1370_v13 = vor.u32 1.1754944e-38, %v1369_v14  ;;  %vm1368_vm14 = vcmp.eq.f32.partialorder %v1367_v22, 8.507059e+37  ;;  %v2002_v30 = vld [vmem:[%s2771_s4] sm:$0xff] }
 0x504   :  { %v1389_v54 = vor.u32 1.1754944e-38, %v1388_v20  ;;  %vm1387_vm15 = vcmp.eq.f32.partialorder %v1386_v45, 8.507059e+37 }
 0x505   :  { %v2117_v37 = vpop.eup %2116 }
 0x506   :  { %v1396_v39 = vadd.f32 1.0, %v2117_v37 }
 0x507   :  { %v2119_v40 = vpop.eup %2118 }
 0x508   :  { %v2121_v56 = vpop.eup %2120  ;;  %v1359_v57 = vmul.f32 %v2119_v40, %v1357_v24  ;;  %2122 = vrcp.f32 %v1396_v39  ;;  %vm1364_vm8 = vweird.f32 %v2119_v40  ;;  %v1408_v0 = vand.u32 2147483648, %v1396_v39 }
 0x509   :  { %v1378_v6 = vmul.f32 %v2121_v56, %v1376_v25  ;;  %2124 = vtanh.f32 %v1352_v48  ;;  %vm1383_vm9 = vweird.f32 %v2121_v56  ;;  %vm1365_vm12 = vmor %vm1363_vm10, %vm1364_vm8  ;;  %vm1402_vm1 = vweird.f32 %v1396_v39 }
 0x50a   :  { %v1360_v7 = vsub.f32 1.0, %v1359_v57  ;;  %vm1384_vm13 = vmor %vm1382_vm11, %vm1383_vm9  ;;  %v1406_v4 = vand.u32 2147483647, %v1396_v39  ;;  %v1409_v2 = vor.u32 1.1754944e-38, %v1408_v0 }
 0x50b   :  { %v1379_v8 = vsub.f32 1.0, %v1378_v6 }
 0x50c   :  { %v1361_v21 = vmul.f32 %v2119_v40, %v1360_v7  ;;  %vm1407_vm3 = vcmp.eq.f32.partialorder %v1406_v4, 8.507059e+37 }
 0x50d   :  { %v1380_v1 = vmul.f32 %v2121_v56, %v1379_v8  ;;  %v2817_v8 = vld [vmem:[#allocation28_spill] sm:$0xff] }
 0x50e   :  { %v2123_v32 = vpop.eup %2122  ;;  %v1362_v59 = vadd.f32 %v2119_v40, %v1361_v21 }
 0x50f   :  { %v1381_v41 = vadd.f32 %v2121_v56, %v1380_v1  ;;  %v1398_v46 = vmul.f32 %v2123_v32, %v1396_v39  ;;  %v2125_v33 = vpop.eup %2124  ;;  %vm1403_vm0 = vweird.f32 %v2123_v32 }
 0x510   :  { %v1366_v19 = vsel %vm1365_vm12, %v2119_v40, %v1362_v59  ;;  %vm1404_vm2 = vmor %vm1402_vm1, %vm1403_vm0 }
 0x511   :  { %v1371_v29 = vsel %vm1368_vm14, %v1370_v13, %v1366_v19  ;;  %v1385_v58 = vsel %vm1384_vm13, %v2121_v56, %v1381_v41  ;;  %v1399_v44 = vsub.f32 1.0, %v1398_v46 }
 0x512   :  { %v1390_v53 = vsel %vm1387_vm15, %v1389_v54, %v1385_v58  ;;  %v1413_v26 = vmul.f32 %v2125_v33, %v1371_v29 }
 0x513   :  { %v1412_v15 = vmul.f32 %v1390_v53, %v2721_v35  ;;  %v1400_v28 = vmul.f32 %v2123_v32, %v1399_v44  ;;  %v2009_v35 = vld [vmem:[%s2771_s4 + $0x38] sm:$0xff] }
 0x514   :  { %1606 = vmatpush.bf16.msrb.mxu0 %v2009_v35 }
 0x515   :  { %v2729_v60 = vadd.f32 %v1413_v26, %v1412_v15  ;;  %v1401_v42 = vadd.f32 %v2123_v32, %v1400_v28 }
 0x517   :  { %2126 = vtanh.f32 %v2729_v60  ;;  %v1405_v18 = vsel %vm1404_vm2, %v2123_v32, %v1401_v42 }
 0x518   :  { %v1410_v10 = vsel %vm1407_vm3, %v1409_v2, %v1405_v18  ;;  %1607 = vmatpush.bf16.msrb.mxu0 %v2008_v27 }
 0x51c   :  { %1608 = vmatpush.bf16.msrb.mxu0 %v2007_v31 }
 0x51d   :  { %v2127_v34 = vpop.eup %2126 }
 0x51e   :  { %v1416_v5 = vmul.f32 %v2127_v34, %v1410_v10 }
 0x520   :  { %v1417_v17 = vpack.c.bf16 %v1416_v5, %v1416_v5  ;;  %1609 = vmatpush.bf16.msrb.mxu0 %v2006_v49 }
 0x522   :  { %1426 = vmatmul.bf16.vlgmr.msra.gmra.mxu0 %v1417_v17  ;;  %1439 = vmatmul.bf16.vlgmr.msra.gmra.mxu1 %v1417_v17 }
 0x523   :  { %1452 = vmatmul.bf16.vlgmr.msra.gmra.mxu2 %v1417_v17  ;;  %1465 = vmatmul.bf16.vlgmr.msra.gmra.mxu3 %v1417_v17 }
 0x524   :  { %1610 = vmatpush.bf16.msrb.mxu0 %v2005_v38 }
 0x528   :  { %1611 = vmatpush.bf16.msrb.mxu0 %v2004_v3 }
 0x52c   :  { %1612 = vmatpush.bf16.msrb.mxu0 %v2003_v9 }
 0x530   :  { %1613 = vmatpush.bf16.msrb.mxu0 %v2002_v30 }
 0x59f   :  { %v1427_v43 = vpop.f32.mrf.mxu0  ;;  %v1440_v50 = vpop.f32.mrf.mxu1 }
 0x5a0   :  { %v1470_v52 = vadd.f32 %v1427_v43, %v2814_v51  ;;  %v1471_v61 = vadd.f32 %v1440_v50, %v2815_v55 }
 0x5a2   :  { %v1903_v62 = vmul.f32 -1.442695, %v1470_v52  ;;  %v1904_v63 = vmul.f32 -1.442695, %v1471_v61 }
 0x5a4   :  { %2128 = vpow2.f32 %v1903_v62 }
 0x5a5   :  { %2130 = vpow2.f32 %v1904_v63 }
 0x5a6   :  { %v1453_v11 = vpop.f32.mrf.mxu2  ;;  %v1466_v12 = vpop.f32.mrf.mxu3 }
 0x5a7   :  { %v1473_v23 = vadd.f32 %v1466_v12, %v2816_v16  ;;  %v1429_v24 = vpop.f32.mrf.mxu0  ;;  %v1442_v25 = vpop.f32.mrf.mxu1  ;;  %v1472_v14 = vadd.f32 %v1453_v11, %v2817_v8 }
 0x5a9   :  { %v1905_v36 = vmul.f32 -1.442695, %v1473_v23 }
 0x5aa   :  { %v2129_v37 = vpop.eup %2128 }
 0x5ab   :  { %v2131_v39 = vpop.eup %2130  ;;  %v1477_v40 = vadd.f32 1.0, %v2129_v37  ;;  %2132 = vpow2.f32 %v1905_v36 }
 0x5ac   :  { %v1496_v47 = vadd.f32 1.0, %v2131_v39 }
 0x5ad   :  { %2134 = vrcp.f32 %v1477_v40  ;;  %v1489_v32 = vand.u32 2147483648, %v1477_v40  ;;  %v1487_v41 = vand.u32 2147483647, %v1477_v40  ;;  %vm1483_vm6 = vweird.f32 %v1477_v40 }
 0x5ae   :  { %2136 = vrcp.f32 %v1496_v47  ;;  %v1455_v48 = vpop.f32.mrf.mxu2  ;;  %v1468_v56 = vpop.f32.mrf.mxu3  ;;  %v1508_v59 = vand.u32 2147483648, %v1496_v47  ;;  %v1506_v54 = vand.u32 2147483647, %v1496_v47  ;;  %vm1502_vm7 = vweird.f32 %v1496_v47 }
 0x5af   :  { %v1490_v29 = vor.u32 1.1754944e-38, %v1489_v32  ;;  %vm1488_vm10 = vcmp.eq.f32.partialorder %v1487_v41, 8.507059e+37 }
 0x5b0   :  { %v1509_v53 = vor.u32 1.1754944e-38, %v1508_v59  ;;  %vm1507_vm11 = vcmp.eq.f32.partialorder %v1506_v54, 8.507059e+37 }
 0x5b1   :  { %v2133_v57 = vpop.eup %2132 }
 0x5b2   :  { %v1516_v6 = vadd.f32 1.0, %v2133_v57 }
 0x5b3   :  { %v2135_v7 = vpop.eup %2134 }
 0x5b4   :  { %v2137_v20 = vpop.eup %2136  ;;  %v1479_v21 = vmul.f32 %v2135_v7, %v1477_v40  ;;  %2138 = vrcp.f32 %v1516_v6  ;;  %vm1484_vm4 = vweird.f32 %v2135_v7  ;;  %v1528_v17 = vand.u32 2147483648, %v1516_v6 }
 0x5b5   :  { %v1498_v22 = vmul.f32 %v2137_v20, %v1496_v47  ;;  %2140 = vtanh.f32 %v1472_v14  ;;  %vm1503_vm5 = vweird.f32 %v2137_v20  ;;  %vm1485_vm8 = vmor %vm1483_vm6, %vm1484_vm4  ;;  %vm1522_vm13 = vweird.f32 %v1516_v6 }
 0x5b6   :  { %v1480_v1 = vsub.f32 1.0, %v1479_v21  ;;  %vm1504_vm9 = vmor %vm1502_vm7, %vm1503_vm5  ;;  %v1526_v35 = vand.u32 2147483647, %v1516_v6  ;;  %v1529_v31 = vor.u32 1.1754944e-38, %v1528_v17 }
 0x5b7   :  { %v1499_v45 = vsub.f32 1.0, %v1498_v22 }
 0x5b8   :  { %v1481_v13 = vmul.f32 %v2135_v7, %v1480_v1  ;;  %vm1527_vm15 = vcmp.eq.f32.partialorder %v1526_v35, 8.507059e+37 }
 0x5b9   :  { %v1500_v46 = vmul.f32 %v2137_v20, %v1499_v45 }
 0x5ba   :  { %v2139_v19 = vpop.eup %2138  ;;  %v1482_v33 = vadd.f32 %v2135_v7, %v1481_v13 }
 0x5bb   :  { %v1501_v58 = vadd.f32 %v2137_v20, %v1500_v46  ;;  %v1518_v44 = vmul.f32 %v2139_v19, %v1516_v6  ;;  %v2141_v15 = vpop.eup %2140  ;;  %vm1523_vm12 = vweird.f32 %v2139_v19 }
 0x5bc   :  { %v1486_v26 = vsel %vm1485_vm8, %v2135_v7, %v1482_v33  ;;  %vm1524_vm14 = vmor %vm1522_vm13, %vm1523_vm12 }
 0x5bd   :  { %v1491_v28 = vsel %vm1488_vm10, %v1490_v29, %v1486_v26  ;;  %v1505_v42 = vsel %vm1504_vm9, %v2137_v20, %v1501_v58  ;;  %v1519_v0 = vsub.f32 1.0, %v1518_v44 }
 0x5be   :  { %v1510_v4 = vsel %vm1507_vm11, %v1509_v53, %v1505_v42  ;;  %v1533_v18 = vmul.f32 %v2141_v15, %v1491_v28 }
 0x5bf   :  { %v1532_v2 = vmul.f32 %v1510_v4, %v2729_v60  ;;  %v1520_v34 = vmul.f32 %v2139_v19, %v1519_v0  ;;  %v2015_v60 = vld [vmem:[%s2772_s5] ss:$0 sm:$0xff] }
 0x5c1   :  { %v1534_v10 = vadd.f32 %v1533_v18, %v1532_v2  ;;  %v1521_v5 = vadd.f32 %v2139_v19, %v1520_v34 }
 0x5c3   :  { %2142 = vtanh.f32 %v1534_v10  ;;  %v1525_v27 = vsel %vm1524_vm14, %v2139_v19, %v1521_v5 }
 0x5c4   :  { %v1530_v38 = vsel %vm1527_vm15, %v1529_v31, %v1525_v27 }
 0x5c9   :  { %v2143_v49 = vpop.eup %2142 }
 0x5ca   :  { %v1536_v43 = vmul.f32 %v2143_v49, %v1530_v38 }
 0x5cc   :  { %v1537_v50 = vpack.c.bf16 %v1536_v43, %v1536_v43 }
 0x5ce   :  { %1614 = vmatmul.bf16.vlgmr.msrb.gmra.mxu0 %v1537_v50 }
 0x64b   :  { %v1615_v51 = vpop.f32.mrf.mxu0 }
 0x64c   :  { %v1616_v52 = vadd.f32 %v2015_v60, %v1615_v51 }
 0x64e   :  { %1619 = vst [vmem:[%s2773_s6] sm:$0xff] %v1616_v52 }
 0x653   :  { %v1617_v55 = vpop.f32.mrf.mxu0 }
 0x654   :  { %1624 = vsyncpa [#allocation3], 1 }
 0x655   :  { %1625 = vsyncpa [#allocation5], 1 }

</bundles_post_ra>
